<compile_context>
chip_gen: v6e
topology: v6e:2x2x1
jax: 0.10.0
libtpu: 0.0.40
codegen_flags: <defaults>
</compile_context>

<pallas_src>
import functools

import numpy as np

import jax
import jax.numpy as jnp
from jax.experimental import pallas as pl
from jax.experimental.pallas import tpu as pltpu


# --------------------------- host-side weight prep -------------------------- #

def conv_w_to_banded(w, n_x, in_stride, in_width):
    """Torch conv weight (Cout, Cin, K, K) -> banded matrices (K, in_width, n_x*Cout).

    Row (input lane) index : xi * in_stride + ci   (xi in [0, n_x))
    Col (output lane) index: xo * Cout + co        (xo in [0, n_x))
    band[dy][row, col] = w[co, ci, dy, xi - xo + pad] when that tap is in range.
    'Same' padding along W is realized by omitting out-of-range taps, so the
    kernel never materializes W-padding; `in_stride` > Cin lets the band read an
    un-compacted (post-pool) lane layout directly; `in_width` may exceed
    n_x*in_stride (zero rows) to lane-pad the input to a full vreg width.
    """
    w = np.asarray(w, np.float32)
    Cout, Cin, K, _ = w.shape
    pad = (K - 1) // 2
    band = np.zeros((K, in_width, n_x * Cout), np.float32)
    for dy in range(K):
        for dx in range(K):
            wt = w[:, :, dy, dx].T                       # (Cin, Cout)
            for xo in range(n_x):
                xi = xo + dx - pad
                if 0 <= xi < n_x:
                    r0 = xi * in_stride
                    band[dy, r0:r0 + Cin, xo * Cout:(xo + 1) * Cout] = wt
    return band


def prepare_params(params, height, width):
    """One-time repack of torch-layout params into the kernel's lane-dense layouts."""
    c1w = np.asarray(params["conv1_w"], np.float32)      # (C, 3, K, K)
    c2w = np.asarray(params["conv2_w"], np.float32)      # (C, C, K, K)
    f1w = np.asarray(params["fc1_w"], np.float32)        # (128, C*Hf*Wf)
    C, Cin, K, _ = c1w.shape
    H, W = height, width
    W2 = W // 2
    Hf, Wf = H // 4, W // 4
    n_hid = f1w.shape[0]
    assert f1w.shape[1] == C * Hf * Wf, "fc1 expects hidden*(H/4)*(W/4) inputs"

    lane1 = ((W * Cin + 127) // 128) * 128               # conv1 input lanes, padded to 128

    band1 = conv_w_to_banded(c1w, n_x=W, in_stride=Cin, in_width=lane1)
    # conv2 consumes the un-compacted pool1 output: valid input lanes = 2*x*C + c.
    band2 = conv_w_to_banded(c2w, n_x=W2, in_stride=2 * C, in_width=W * C)

    # fc1: torch flattens (C, Hf, Wf)-major; the kernel's pooled map is
    # (row = y, lane = 2*x*C + c).  Permute the weight rows here, once.
    w4 = f1w.reshape(n_hid, C, Hf, Wf)                   # (j, c, y, x)
    w1 = np.zeros((Hf, W2 * C, n_hid), np.float32)
    for x in range(Wf):
        for c in range(C):
            w1[:, 2 * x * C + c, :] = w4[:, c, :, x].T   # (Hf, n_hid)

    wdt = jnp.bfloat16   # bf16 weights, f32 accumulate in-kernel
    return dict(
        band1=jnp.asarray(band1, wdt),
        bias1=jnp.asarray(np.tile(np.asarray(params["conv1_b"], np.float32), W)[None, :]),
        band2=jnp.asarray(band2, wdt),
        bias2=jnp.asarray(np.tile(np.asarray(params["conv2_b"], np.float32), W2)[None, :]),
        w1=jnp.asarray(w1, wdt),
        b1=jnp.asarray(np.asarray(params["fc1_b"], np.float32)[None, :]),
        w2=jnp.asarray(np.asarray(params["fc2_w"], np.float32).T),   # (128, 3) f32
        b2=jnp.asarray(np.asarray(params["fc2_b"], np.float32)[None, :]),
    )


def prepare_input(x_nchw, *, lane_width, batch_block):
    """NCHW -> per-grid-step blocks (N/B, H*B, lane_width); rows y-major (y*B + b).

    Producer-side relayout (one pass), kept out of the hot forward path.
    """
    N, Cin, H, W = x_nchw.shape
    B = batch_block
    assert B % 16 == 0, "batch_block must be a multiple of 16 (bf16 sublane tile)"
    Np = ((N + B - 1) // B) * B
    x = jnp.transpose(x_nchw, (2, 0, 3, 1)).reshape(H, N, W * Cin)   # [y, n, x*Cin + c]
    x = jnp.pad(x, ((0, 0), (0, Np - N), (0, lane_width - W * Cin)))
    x = x.reshape(H, Np // B, B, lane_width)
    x = jnp.transpose(x, (1, 0, 2, 3)).reshape(Np // B, H * B, lane_width)
    return x


# ------------------------------ Pallas kernel ------------------------------- #

def cnn2_fused_kernel(x_ref, b1w_ref, b1b_ref, b2w_ref, b2b_ref,
                      w1_ref, w1b_ref, w2_ref, w2b_ref, o_ref,
                      x1p_ref, x2p_ref, *, K, H, C, B):
    pad = (K - 1) // 2
    H2, Hf = H // 2, H // 4
    Lin1 = x_ref.shape[-1]        # conv1 input lanes (padded to a vreg width)
    L1o = b1w_ref.shape[-1]       # conv1 output lanes = W*C      (lane = x*C + c)
    L2o = b2w_ref.shape[-1]       # conv2 output lanes = (W/2)*C
    wdt = b1w_ref.dtype           # bf16

    # ---------------- conv1 + bias + ReLU + 2x2 maxpool ----------------
    # Rows are y-major: row = y*B + b.  H 'same'-padding = pad*B zero rows at
    # the top/bottom of the bf16 scratch; W-padding is folded into band1.
    if pad:
        x1p_ref[0:pad * B, :] = jnp.zeros((pad * B, Lin1), wdt)
        x1p_ref[(pad + H) * B:(2 * pad + H) * B, :] = jnp.zeros((pad * B, Lin1), wdt)
    x1p_ref[pad * B:(pad + H) * B, :] = x_ref[0].astype(wdt)      # one cast per layer

    acc = jnp.zeros((H * B, L1o), jnp.float32)
    for dy in range(K):                    # K aligned-slice MXU matmuls, M = H*B
        acc = acc + jnp.dot(x1p_ref[dy * B:(dy + H) * B, :], b1w_ref[dy],
                            preferred_element_type=jnp.float32)
    acc = jnp.maximum(acc + b1b_ref[...], 0.0)

    # H pairs are adjacent B-row groups; W pairs via a lane roll by -C.  The
    # rolled-in (wrapped) lanes land only at odd-x lane positions, which every
    # downstream weight (band2 / fc1 rows) zeroes -- keep that invariant.
    a = acc.reshape(H2, 2 * B, L1o)
    a = jnp.maximum(a[:, :B, :], a[:, B:, :]).reshape(H2 * B, L1o)
    p1 = jnp.maximum(a, jnp.roll(a, -C, axis=1))          # un-compacted lanes (2*x*C + c valid)

    # ---------------- conv2 + bias + ReLU + 2x2 maxpool ----------------
    if pad:
        x2p_ref[0:pad * B, :] = jnp.zeros((pad * B, L1o), wdt)
        x2p_ref[(pad + H2) * B:(2 * pad + H2) * B, :] = jnp.zeros((pad * B, L1o), wdt)
    x2p_ref[pad * B:(pad + H2) * B, :] = p1.astype(wdt)

    acc2 = jnp.zeros((H2 * B, L2o), jnp.float32)
    for dy in range(K):                    # M = H2*B
        acc2 = acc2 + jnp.dot(x2p_ref[dy * B:(dy + H2) * B, :], b2w_ref[dy],
                              preferred_element_type=jnp.float32)
    acc2 = jnp.maximum(acc2 + b2b_ref[...], 0.0)
    a2 = acc2.reshape(Hf, 2 * B, L2o)
    a2 = jnp.maximum(a2[:, :B, :], a2[:, B:, :]).reshape(Hf * B, L2o)
    p2 = jnp.maximum(a2, jnp.roll(a2, -C, axis=1))        # (Hf*B, L2o), valid lanes 2*x*C + c

    # ---------------- fc1 + ReLU, fc2 ----------------
    # fc1 rows were pre-permuted on the host to p2's (y, lane) layout (incl. the
    # un-compacted pool lanes) -> no in-kernel flatten/transpose.  With y-major
    # rows the per-y LHS is a contiguous aligned (B, L2o) slice, so fc1 is Hf
    # matmuls with M = B instead of M = 1.
    p2b = p2.astype(wdt)                   # one cast feeding all Hf matmuls
    h = jnp.zeros((B, w1_ref.shape[-1]), jnp.float32)
    for y in range(Hf):
        h = h + jnp.dot(p2b[y * B:(y + 1) * B, :], w1_ref[y],
                        preferred_element_type=jnp.float32)
    h = jnp.maximum(h + w1b_ref[...], 0.0)
    out = jnp.dot(h, w2_ref[...], preferred_element_type=jnp.float32) + w2b_ref[...]
    o_ref[...] = out.astype(o_ref.dtype)


# --------------------------------- wrapper ---------------------------------- #

@functools.partial(jax.jit, static_argnames=("hidden",))
def cnn2_forward(prep, x_blocks, *, hidden):
    """Whole CNN_2 forward as one fused Pallas kernel, B images per grid step.

    x_blocks: output of prepare_input(), shape (N/B, H*B, lane1), rows y-major.
    Returns logits (N, 3) in image order.
    """
    G, HB, Lin1 = x_blocks.shape
    C = hidden
    K = prep["band1"].shape[0]
    L1o = prep["band1"].shape[2]
    L2o = prep["band2"].shape[2]
    Hf, F1 = prep["w1"].shape[0], prep["w1"].shape[2]
    O = prep["w2"].shape[1]
    H = 4 * Hf
    H2 = H // 2
    B = HB // H
    pad = (K - 1) // 2
    wdt = prep["band1"].dtype

    kern = functools.partial(cnn2_fused_kernel, K=K, H=H, C=C, B=B)
    out = pl.pallas_call(
        kern,
        out_shape=jax.ShapeDtypeStruct((G * B, O), jnp.float32),
        grid=(G,),
        in_specs=[
            pl.BlockSpec((1, H * B, Lin1), lambda n: (n, 0, 0)),   # B images, y-major rows
            pl.BlockSpec((K, Lin1, L1o), lambda n: (0, 0, 0)),     # banded conv1 w (bf16)
            pl.BlockSpec((1, L1o), lambda n: (0, 0)),              # conv1 bias (lane-tiled)
            pl.BlockSpec((K, L1o, L2o), lambda n: (0, 0, 0)),      # banded conv2 w (bf16)
            pl.BlockSpec((1, L2o), lambda n: (0, 0)),              # conv2 bias (lane-tiled)
            pl.BlockSpec((Hf, L2o, F1), lambda n: (0, 0, 0)),      # fc1 w (row-permuted, bf16)
            pl.BlockSpec((1, F1), lambda n: (0, 0)),               # fc1 bias
            pl.BlockSpec((F1, O), lambda n: (0, 0)),               # fc2 w
            pl.BlockSpec((1, O), lambda n: (0, 0)),                # fc2 bias
        ],
        out_specs=pl.BlockSpec((B, O), lambda n: (n, 0)),          # one (B, 3) block per step
        scratch_shapes=[
            pltpu.VMEM(((H + 2 * pad) * B, Lin1), wdt),            # H-padded conv1 input (bf16)
            pltpu.VMEM(((H2 + 2 * pad) * B, L1o), wdt),            # H-padded conv2 input (bf16)
        ],
        compiler_params=pltpu.CompilerParams(
            dimension_semantics=("parallel",)),                    # batch blocks across TCs
    )(x_blocks, prep["band1"], prep["bias1"], prep["band2"], prep["bias2"],
      prep["w1"], prep["b1"], prep["w2"], prep["b2"])
    return out


# --------------------------- params & f32 reference ------------------------- #

def init_params(key, hidden_size, kernel_size):
    K = kernel_size
    ks = jax.random.split(key, 8)

    def conv_init(kw, kb, cin, cout):
        bound = 1.0 / float(cin * K * K) ** 0.5
        w = jax.random.uniform(kw, (cout, cin, K, K), jnp.float32, -bound, bound)
        b = jax.random.uniform(kb, (cout,), jnp.float32, -bound, bound)
        return w, b

    def lin_init(kw, kb, fin, fout):
        bound = 1.0 / float(fin) ** 0.5
        w = jax.random.uniform(kw, (fout, fin), jnp.float32, -bound, bound)
        b = jax.random.uniform(kb, (fout,), jnp.float32, -bound, bound)
        return w, b

    c1w, c1b = conv_init(ks[0], ks[1], 3, hidden_size)
    c2w, c2b = conv_init(ks[2], ks[3], hidden_size, hidden_size)
    f1w, f1b = lin_init(ks[4], ks[5], hidden_size * 8 * 8, 128)
    f2w, f2b = lin_init(ks[6], ks[7], 128, 3)
    return dict(conv1_w=c1w, conv1_b=c1b, conv2_w=c2w, conv2_b=c2b,
                fc1_w=f1w, fc1_b=f1b, fc2_w=f2w, fc2_b=f2b)


def reference_forward(params, x_nchw, K):
    pad = (K - 1) // 2

    def conv(x, w, b):
        y = jax.lax.conv_general_dilated(
            x, w, window_strides=(1, 1), padding=[(pad, pad), (pad, pad)],
            dimension_numbers=("NCHW", "OIHW", "NCHW"))
        return y + b[None, :, None, None]

    def pool(x):
        return jax.lax.reduce_window(x, -jnp.inf, jax.lax.max,
                                     (1, 1, 2, 2), (1, 1, 2, 2), "VALID")

    x = pool(jax.nn.relu(conv(x_nchw, params["conv1_w"], params["conv1_b"])))
    x = pool(jax.nn.relu(conv(x, params["conv2_w"], params["conv2_b"])))
    x = x.reshape(x.shape[0], -1)
    x = jax.nn.relu(x @ params["fc1_w"].T + params["fc1_b"])
    return x @ params["fc2_w"].T + params["fc2_b"]


# ----------------------------------- main ------------------------------------ #

if __name__ == "__main__":
    hidden_size, kernel_size = 8, 3
    # Batch-block B: 16 fills the MXU on all generations (conv1 M=512, conv2
    # M=256, fc1 M=16); v6e/v7x can use 32, but keep N/B >= 2 (ideally 4-8) so
    # v7x's two TensorCores both get grid steps.  VMEM footprint is ~1-2 MiB.
    batch_block = 16
    N = 32                                   # -> 2 grid steps of 16 images

    key = jax.random.PRNGKey(0)
    kx, kp = jax.random.split(key)
    # NCHW input like the PyTorch module (32x32 spatial required by fc1).
    x = jax.random.normal(kx, (N, 3, 32, 32), dtype=jnp.float32)
    params = init_params(kp, hidden_size, kernel_size)

    prep = prepare_params(params, height=32, width=32)
    x_blocks = prepare_input(x, lane_width=prep["band1"].shape[1],
                             batch_block=batch_block)

    out = cnn2_forward(prep, x_blocks, hidden=hidden_size)
    out = jax.block_until_ready(out)[:N]

    ref = reference_forward(params, x, kernel_size)
    assert out.shape == (N, 3), out.shape
    max_err = float(jnp.max(jnp.abs(out - ref)))
    assert bool(jnp.allclose(out, ref, rtol=2e-2, atol=2e-2)), (max_err, out[:2], ref[:2])

    print("KERNEL_OK")
</pallas_src>

<mosaic_0001>
module attributes {stable_mosaic.version = 11 : i64} {
  func.func @cnn2_fused_kernel(%arg0: i32, %arg1: memref<1x512x128xf32, #tpu.memory_space<vmem>>, %arg2: memref<3x128x256xbf16, #tpu.memory_space<vmem>>, %arg3: memref<1x256xf32, #tpu.memory_space<vmem>>, %arg4: memref<3x256x128xbf16, #tpu.memory_space<vmem>>, %arg5: memref<1x128xf32, #tpu.memory_space<vmem>>, %arg6: memref<8x128x128xbf16, #tpu.memory_space<vmem>>, %arg7: memref<1x128xf32, #tpu.memory_space<vmem>>, %arg8: memref<128x3xf32, #tpu.memory_space<vmem>>, %arg9: memref<1x3xf32, #tpu.memory_space<vmem>>, %arg10: memref<16x3xf32, #tpu.memory_space<vmem>>, %arg11: memref<544x128xbf16, #tpu.memory_space<vmem>>, %arg12: memref<288x256xbf16, #tpu.memory_space<vmem>>) attributes {dimension_semantics = [#tpu.dimension_semantics<parallel>], iteration_bounds = array<i64: 2>, scalar_prefetch = 0 : i64, scratch_operands = 2 : i64, tpu.core_type = #tpu.core_type<tc>, window_params = [{transform_indices = @transform_0, window_bounds = array<i64: 1, 512, 128>}, {pipeline_mode = #tpu.pipeline_mode<synchronous>, transform_indices = @transform_1, window_bounds = array<i64: 3, 128, 256>}, {pipeline_mode = #tpu.pipeline_mode<synchronous>, transform_indices = @transform_2, window_bounds = array<i64: 1, 256>}, {pipeline_mode = #tpu.pipeline_mode<synchronous>, transform_indices = @transform_3, window_bounds = array<i64: 3, 256, 128>}, {pipeline_mode = #tpu.pipeline_mode<synchronous>, transform_indices = @transform_4, window_bounds = array<i64: 1, 128>}, {pipeline_mode = #tpu.pipeline_mode<synchronous>, transform_indices = @transform_5, window_bounds = array<i64: 8, 128, 128>}, {pipeline_mode = #tpu.pipeline_mode<synchronous>, transform_indices = @transform_6, window_bounds = array<i64: 1, 128>}, {pipeline_mode = #tpu.pipeline_mode<synchronous>, transform_indices = @transform_7, window_bounds = array<i64: 128, 3>}, {pipeline_mode = #tpu.pipeline_mode<synchronous>, transform_indices = @transform_8, window_bounds = array<i64: 1, 3>}, {transform_indices = @transform_9, window_bounds = array<i64: 16, 3>}]} {
    %cst = arith.constant 0.000000e+00 : bf16
    %0 = vector.broadcast %cst : bf16 to vector<16x128xbf16>
    %c0 = arith.constant 0 : index
    %c0_0 = arith.constant 0 : index
    %1 = vector.load %arg11[%c0, %c0_0] : memref<544x128xbf16, #tpu.memory_space<vmem>>, vector<16x128xbf16>
    tpu.vector_store %arg11[%c0, %c0_0], %0 {strides = array<i32>} : memref<544x128xbf16, #tpu.memory_space<vmem>>, vector<16x128xbf16>,
    %cst_1 = arith.constant 0.000000e+00 : bf16
    %2 = vector.broadcast %cst_1 : bf16 to vector<16x128xbf16>
    %c528 = arith.constant 528 : index
    %c0_2 = arith.constant 0 : index
    %3 = vector.load %arg11[%c528, %c0_2] : memref<544x128xbf16, #tpu.memory_space<vmem>>, vector<16x128xbf16>
    tpu.vector_store %arg11[%c528, %c0_2], %2 {strides = array<i32>} : memref<544x128xbf16, #tpu.memory_space<vmem>>, vector<16x128xbf16>,
    %c0_3 = arith.constant 0 : index
    %c0_4 = arith.constant 0 : index
    %c0_5 = arith.constant 0 : index
    %4 = vector.load %arg1[%c0_3, %c0_4, %c0_5] : memref<1x512x128xf32, #tpu.memory_space<vmem>>, vector<1x512x128xf32>
    %5 = vector.shape_cast %4 : vector<1x512x128xf32> to vector<512x128xf32>
    %6 = arith.truncf %5 : vector<512x128xf32> to vector<512x128xbf16>
    %c16 = arith.constant 16 : index
    %c0_6 = arith.constant 0 : index
    %7 = vector.load %arg11[%c16, %c0_6] : memref<544x128xbf16, #tpu.memory_space<vmem>>, vector<512x128xbf16>
    tpu.vector_store %arg11[%c16, %c0_6], %6 {strides = array<i32>} : memref<544x128xbf16, #tpu.memory_space<vmem>>, vector<512x128xbf16>,
    %cst_7 = arith.constant 0.000000e+00 : f32
    %8 = vector.broadcast %cst_7 : f32 to vector<512x256xf32>
    %c0_8 = arith.constant 0 : index
    %c0_9 = arith.constant 0 : index
    %9 = vector.load %arg11[%c0_8, %c0_9] : memref<544x128xbf16, #tpu.memory_space<vmem>>, vector<512x128xbf16>
    %c0_10 = arith.constant 0 : index
    %c0_11 = arith.constant 0 : index
    %c0_12 = arith.constant 0 : index
    %10 = vector.load %arg2[%c0_10, %c0_11, %c0_12] : memref<3x128x256xbf16, #tpu.memory_space<vmem>>, vector<1x128x256xbf16>
    %11 = vector.shape_cast %10 : vector<1x128x256xbf16> to vector<128x256xbf16>
    %cst_13 = arith.constant dense<0.000000e+00> : vector<512x256xf32>
    %12 = tpu.matmul %9, %11, %cst_13 {dimension_numbers = #tpu.dot_dimension_numbers<[1], [0], [0], [1], [0, 0, 1, 1], [], []>} : vector<512x128xbf16>, vector<128x256xbf16>, vector<512x256xf32> -> vector<512x256xf32>
    %13 = arith.addf %8, %12 : vector<512x256xf32>
    %c16_14 = arith.constant 16 : index
    %c0_15 = arith.constant 0 : index
    %14 = vector.load %arg11[%c16_14, %c0_15] : memref<544x128xbf16, #tpu.memory_space<vmem>>, vector<512x128xbf16>
    %c1 = arith.constant 1 : index
    %c0_16 = arith.constant 0 : index
    %c0_17 = arith.constant 0 : index
    %15 = vector.load %arg2[%c1, %c0_16, %c0_17] : memref<3x128x256xbf16, #tpu.memory_space<vmem>>, vector<1x128x256xbf16>
    %16 = vector.shape_cast %15 : vector<1x128x256xbf16> to vector<128x256xbf16>
    %cst_18 = arith.constant dense<0.000000e+00> : vector<512x256xf32>
    %17 = tpu.matmul %14, %16, %cst_18 {dimension_numbers = #tpu.dot_dimension_numbers<[1], [0], [0], [1], [0, 0, 1, 1], [], []>} : vector<512x128xbf16>, vector<128x256xbf16>, vector<512x256xf32> -> vector<512x256xf32>
    %18 = arith.addf %13, %17 : vector<512x256xf32>
    %c32 = arith.constant 32 : index
    %c0_19 = arith.constant 0 : index
    %19 = vector.load %arg11[%c32, %c0_19] : memref<544x128xbf16, #tpu.memory_space<vmem>>, vector<512x128xbf16>
    %c2 = arith.constant 2 : index
    %c0_20 = arith.constant 0 : index
    %c0_21 = arith.constant 0 : index
    %20 = vector.load %arg2[%c2, %c0_20, %c0_21] : memref<3x128x256xbf16, #tpu.memory_space<vmem>>, vector<1x128x256xbf16>
    %21 = vector.shape_cast %20 : vector<1x128x256xbf16> to vector<128x256xbf16>
    %cst_22 = arith.constant dense<0.000000e+00> : vector<512x256xf32>
    %22 = tpu.matmul %19, %21, %cst_22 {dimension_numbers = #tpu.dot_dimension_numbers<[1], [0], [0], [1], [0, 0, 1, 1], [], []>} : vector<512x128xbf16>, vector<128x256xbf16>, vector<512x256xf32> -> vector<512x256xf32>
    %23 = arith.addf %18, %22 : vector<512x256xf32>
    %c0_23 = arith.constant 0 : index
    %c0_24 = arith.constant 0 : index
    %24 = vector.load %arg3[%c0_23, %c0_24] : memref<1x256xf32, #tpu.memory_space<vmem>>, vector<1x256xf32>
    %25 = vector.broadcast %24 : vector<1x256xf32> to vector<512x256xf32>
    %26 = arith.addf %23, %25 : vector<512x256xf32>
    %cst_25 = arith.constant 0.000000e+00 : f32
    %27 = vector.broadcast %cst_25 : f32 to vector<512x256xf32>
    %28 = arith.maximumf %26, %27 : vector<512x256xf32>
    %29 = vector.shape_cast %28 : vector<512x256xf32> to vector<16x32x256xf32>
    %30 = vector.extract_strided_slice %29 {offsets = [0, 0, 0], sizes = [16, 16, 256], strides = [1, 1, 1]} : vector<16x32x256xf32> to vector<16x16x256xf32>
    %31 = vector.extract_strided_slice %29 {offsets = [0, 16, 0], sizes = [16, 16, 256], strides = [1, 1, 1]} : vector<16x32x256xf32> to vector<16x16x256xf32>
    %32 = arith.maximumf %30, %31 : vector<16x16x256xf32>
    %33 = vector.shape_cast %32 : vector<16x16x256xf32> to vector<256x256xf32>
    %34 = vector.extract_strided_slice %33 {offsets = [0, 8], sizes = [256, 248], strides = [1, 1]} : vector<256x256xf32> to vector<256x248xf32>
    %35 = vector.extract_strided_slice %33 {offsets = [0, 0], sizes = [256, 8], strides = [1, 1]} : vector<256x256xf32> to vector<256x8xf32>
    %36 = tpu.concatenate %34, %35 in 1 : vector<256x248xf32>, vector<256x8xf32> -> vector<256x256xf32>
    %37 = arith.maximumf %33, %36 : vector<256x256xf32>
    %cst_26 = arith.constant 0.000000e+00 : bf16
    %38 = vector.broadcast %cst_26 : bf16 to vector<16x256xbf16>
    %c0_27 = arith.constant 0 : index
    %c0_28 = arith.constant 0 : index
    %39 = vector.load %arg12[%c0_27, %c0_28] : memref<288x256xbf16, #tpu.memory_space<vmem>>, vector<16x256xbf16>
    tpu.vector_store %arg12[%c0_27, %c0_28], %38 {strides = array<i32>} : memref<288x256xbf16, #tpu.memory_space<vmem>>, vector<16x256xbf16>,
    %cst_29 = arith.constant 0.000000e+00 : bf16
    %40 = vector.broadcast %cst_29 : bf16 to vector<16x256xbf16>
    %c272 = arith.constant 272 : index
    %c0_30 = arith.constant 0 : index
    %41 = vector.load %arg12[%c272, %c0_30] : memref<288x256xbf16, #tpu.memory_space<vmem>>, vector<16x256xbf16>
    tpu.vector_store %arg12[%c272, %c0_30], %40 {strides = array<i32>} : memref<288x256xbf16, #tpu.memory_space<vmem>>, vector<16x256xbf16>,
    %42 = arith.truncf %37 : vector<256x256xf32> to vector<256x256xbf16>
    %c16_31 = arith.constant 16 : index
    %c0_32 = arith.constant 0 : index
    %43 = vector.load %arg12[%c16_31, %c0_32] : memref<288x256xbf16, #tpu.memory_space<vmem>>, vector<256x256xbf16>
    tpu.vector_store %arg12[%c16_31, %c0_32], %42 {strides = array<i32>} : memref<288x256xbf16, #tpu.memory_space<vmem>>, vector<256x256xbf16>,
    %cst_33 = arith.constant 0.000000e+00 : f32
    %44 = vector.broadcast %cst_33 : f32 to vector<256x128xf32>
    %c0_34 = arith.constant 0 : index
    %c0_35 = arith.constant 0 : index
    %45 = vector.load %arg12[%c0_34, %c0_35] : memref<288x256xbf16, #tpu.memory_space<vmem>>, vector<256x256xbf16>
    %c0_36 = arith.constant 0 : index
    %c0_37 = arith.constant 0 : index
    %c0_38 = arith.constant 0 : index
    %46 = vector.load %arg4[%c0_36, %c0_37, %c0_38] : memref<3x256x128xbf16, #tpu.memory_space<vmem>>, vector<1x256x128xbf16>
    %47 = vector.shape_cast %46 : vector<1x256x128xbf16> to vector<256x128xbf16>
    %cst_39 = arith.constant dense<0.000000e+00> : vector<256x128xf32>
    %48 = tpu.matmul %45, %47, %cst_39 {dimension_numbers = #tpu.dot_dimension_numbers<[1], [0], [0], [1], [0, 0, 1, 1], [], []>} : vector<256x256xbf16>, vector<256x128xbf16>, vector<256x128xf32> -> vector<256x128xf32>
    %49 = arith.addf %44, %48 : vector<256x128xf32>
    %c16_40 = arith.constant 16 : index
    %c0_41 = arith.constant 0 : index
    %50 = vector.load %arg12[%c16_40, %c0_41] : memref<288x256xbf16, #tpu.memory_space<vmem>>, vector<256x256xbf16>
    %c1_42 = arith.constant 1 : index
    %c0_43 = arith.constant 0 : index
    %c0_44 = arith.constant 0 : index
    %51 = vector.load %arg4[%c1_42, %c0_43, %c0_44] : memref<3x256x128xbf16, #tpu.memory_space<vmem>>, vector<1x256x128xbf16>
    %52 = vector.shape_cast %51 : vector<1x256x128xbf16> to vector<256x128xbf16>
    %cst_45 = arith.constant dense<0.000000e+00> : vector<256x128xf32>
    %53 = tpu.matmul %50, %52, %cst_45 {dimension_numbers = #tpu.dot_dimension_numbers<[1], [0], [0], [1], [0, 0, 1, 1], [], []>} : vector<256x256xbf16>, vector<256x128xbf16>, vector<256x128xf32> -> vector<256x128xf32>
    %54 = arith.addf %49, %53 : vector<256x128xf32>
    %c32_46 = arith.constant 32 : index
    %c0_47 = arith.constant 0 : index
    %55 = vector.load %arg12[%c32_46, %c0_47] : memref<288x256xbf16, #tpu.memory_space<vmem>>, vector<256x256xbf16>
    %c2_48 = arith.constant 2 : index
    %c0_49 = arith.constant 0 : index
    %c0_50 = arith.constant 0 : index
    %56 = vector.load %arg4[%c2_48, %c0_49, %c0_50] : memref<3x256x128xbf16, #tpu.memory_space<vmem>>, vector<1x256x128xbf16>
    %57 = vector.shape_cast %56 : vector<1x256x128xbf16> to vector<256x128xbf16>
    %cst_51 = arith.constant dense<0.000000e+00> : vector<256x128xf32>
    %58 = tpu.matmul %55, %57, %cst_51 {dimension_numbers = #tpu.dot_dimension_numbers<[1], [0], [0], [1], [0, 0, 1, 1], [], []>} : vector<256x256xbf16>, vector<256x128xbf16>, vector<256x128xf32> -> vector<256x128xf32>
    %59 = arith.addf %54, %58 : vector<256x128xf32>
    %c0_52 = arith.constant 0 : index
    %c0_53 = arith.constant 0 : index
    %60 = vector.load %arg5[%c0_52, %c0_53] : memref<1x128xf32, #tpu.memory_space<vmem>>, vector<1x128xf32>
    %61 = vector.broadcast %60 : vector<1x128xf32> to vector<256x128xf32>
    %62 = arith.addf %59, %61 : vector<256x128xf32>
    %cst_54 = arith.constant 0.000000e+00 : f32
    %63 = vector.broadcast %cst_54 : f32 to vector<256x128xf32>
    %64 = arith.maximumf %62, %63 : vector<256x128xf32>
    %65 = vector.shape_cast %64 : vector<256x128xf32> to vector<8x32x128xf32>
    %66 = vector.extract_strided_slice %65 {offsets = [0, 0, 0], sizes = [8, 16, 128], strides = [1, 1, 1]} : vector<8x32x128xf32> to vector<8x16x128xf32>
    %67 = vector.extract_strided_slice %65 {offsets = [0, 16, 0], sizes = [8, 16, 128], strides = [1, 1, 1]} : vector<8x32x128xf32> to vector<8x16x128xf32>
    %68 = arith.maximumf %66, %67 : vector<8x16x128xf32>
    %69 = vector.shape_cast %68 : vector<8x16x128xf32> to vector<128x128xf32>
    %70 = vector.extract_strided_slice %69 {offsets = [0, 8], sizes = [128, 120], strides = [1, 1]} : vector<128x128xf32> to vector<128x120xf32>
    %71 = vector.extract_strided_slice %69 {offsets = [0, 0], sizes = [128, 8], strides = [1, 1]} : vector<128x128xf32> to vector<128x8xf32>
    %72 = tpu.concatenate %70, %71 in 1 : vector<128x120xf32>, vector<128x8xf32> -> vector<128x128xf32>
    %73 = arith.maximumf %69, %72 : vector<128x128xf32>
    %74 = arith.truncf %73 : vector<128x128xf32> to vector<128x128xbf16>
    %cst_55 = arith.constant 0.000000e+00 : f32
    %75 = vector.broadcast %cst_55 : f32 to vector<16x128xf32>
    %76 = vector.extract_strided_slice %74 {offsets = [0, 0], sizes = [16, 128], strides = [1, 1]} : vector<128x128xbf16> to vector<16x128xbf16>
    %c0_56 = arith.constant 0 : index
    %c0_57 = arith.constant 0 : index
    %c0_58 = arith.constant 0 : index
    %77 = vector.load %arg6[%c0_56, %c0_57, %c0_58] : memref<8x128x128xbf16, #tpu.memory_space<vmem>>, vector<1x128x128xbf16>
    %78 = vector.shape_cast %77 : vector<1x128x128xbf16> to vector<128x128xbf16>
    %cst_59 = arith.constant dense<0.000000e+00> : vector<16x128xf32>
    %79 = tpu.matmul %76, %78, %cst_59 {dimension_numbers = #tpu.dot_dimension_numbers<[1], [0], [0], [1], [0, 0, 1, 1], [], []>} : vector<16x128xbf16>, vector<128x128xbf16>, vector<16x128xf32> -> vector<16x128xf32>
    %80 = arith.addf %75, %79 : vector<16x128xf32>
    %81 = vector.extract_strided_slice %74 {offsets = [16, 0], sizes = [16, 128], strides = [1, 1]} : vector<128x128xbf16> to vector<16x128xbf16>
    %c1_60 = arith.constant 1 : index
    %c0_61 = arith.constant 0 : index
    %c0_62 = arith.constant 0 : index
    %82 = vector.load %arg6[%c1_60, %c0_61, %c0_62] : memref<8x128x128xbf16, #tpu.memory_space<vmem>>, vector<1x128x128xbf16>
    %83 = vector.shape_cast %82 : vector<1x128x128xbf16> to vector<128x128xbf16>
    %cst_63 = arith.constant dense<0.000000e+00> : vector<16x128xf32>
    %84 = tpu.matmul %81, %83, %cst_63 {dimension_numbers = #tpu.dot_dimension_numbers<[1], [0], [0], [1], [0, 0, 1, 1], [], []>} : vector<16x128xbf16>, vector<128x128xbf16>, vector<16x128xf32> -> vector<16x128xf32>
    %85 = arith.addf %80, %84 : vector<16x128xf32>
    %86 = vector.extract_strided_slice %74 {offsets = [32, 0], sizes = [16, 128], strides = [1, 1]} : vector<128x128xbf16> to vector<16x128xbf16>
    %c2_64 = arith.constant 2 : index
    %c0_65 = arith.constant 0 : index
    %c0_66 = arith.constant 0 : index
    %87 = vector.load %arg6[%c2_64, %c0_65, %c0_66] : memref<8x128x128xbf16, #tpu.memory_space<vmem>>, vector<1x128x128xbf16>
    %88 = vector.shape_cast %87 : vector<1x128x128xbf16> to vector<128x128xbf16>
    %cst_67 = arith.constant dense<0.000000e+00> : vector<16x128xf32>
    %89 = tpu.matmul %86, %88, %cst_67 {dimension_numbers = #tpu.dot_dimension_numbers<[1], [0], [0], [1], [0, 0, 1, 1], [], []>} : vector<16x128xbf16>, vector<128x128xbf16>, vector<16x128xf32> -> vector<16x128xf32>
    %90 = arith.addf %85, %89 : vector<16x128xf32>
    %91 = vector.extract_strided_slice %74 {offsets = [48, 0], sizes = [16, 128], strides = [1, 1]} : vector<128x128xbf16> to vector<16x128xbf16>
    %c3 = arith.constant 3 : index
    %c0_68 = arith.constant 0 : index
    %c0_69 = arith.constant 0 : index
    %92 = vector.load %arg6[%c3, %c0_68, %c0_69] : memref<8x128x128xbf16, #tpu.memory_space<vmem>>, vector<1x128x128xbf16>
    %93 = vector.shape_cast %92 : vector<1x128x128xbf16> to vector<128x128xbf16>
    %cst_70 = arith.constant dense<0.000000e+00> : vector<16x128xf32>
    %94 = tpu.matmul %91, %93, %cst_70 {dimension_numbers = #tpu.dot_dimension_numbers<[1], [0], [0], [1], [0, 0, 1, 1], [], []>} : vector<16x128xbf16>, vector<128x128xbf16>, vector<16x128xf32> -> vector<16x128xf32>
    %95 = arith.addf %90, %94 : vector<16x128xf32>
    %96 = vector.extract_strided_slice %74 {offsets = [64, 0], sizes = [16, 128], strides = [1, 1]} : vector<128x128xbf16> to vector<16x128xbf16>
    %c4 = arith.constant 4 : index
    %c0_71 = arith.constant 0 : index
    %c0_72 = arith.constant 0 : index
    %97 = vector.load %arg6[%c4, %c0_71, %c0_72] : memref<8x128x128xbf16, #tpu.memory_space<vmem>>, vector<1x128x128xbf16>
    %98 = vector.shape_cast %97 : vector<1x128x128xbf16> to vector<128x128xbf16>
    %cst_73 = arith.constant dense<0.000000e+00> : vector<16x128xf32>
    %99 = tpu.matmul %96, %98, %cst_73 {dimension_numbers = #tpu.dot_dimension_numbers<[1], [0], [0], [1], [0, 0, 1, 1], [], []>} : vector<16x128xbf16>, vector<128x128xbf16>, vector<16x128xf32> -> vector<16x128xf32>
    %100 = arith.addf %95, %99 : vector<16x128xf32>
    %101 = vector.extract_strided_slice %74 {offsets = [80, 0], sizes = [16, 128], strides = [1, 1]} : vector<128x128xbf16> to vector<16x128xbf16>
    %c5 = arith.constant 5 : index
    %c0_74 = arith.constant 0 : index
    %c0_75 = arith.constant 0 : index
    %102 = vector.load %arg6[%c5, %c0_74, %c0_75] : memref<8x128x128xbf16, #tpu.memory_space<vmem>>, vector<1x128x128xbf16>
    %103 = vector.shape_cast %102 : vector<1x128x128xbf16> to vector<128x128xbf16>
    %cst_76 = arith.constant dense<0.000000e+00> : vector<16x128xf32>
    %104 = tpu.matmul %101, %103, %cst_76 {dimension_numbers = #tpu.dot_dimension_numbers<[1], [0], [0], [1], [0, 0, 1, 1], [], []>} : vector<16x128xbf16>, vector<128x128xbf16>, vector<16x128xf32> -> vector<16x128xf32>
    %105 = arith.addf %100, %104 : vector<16x128xf32>
    %106 = vector.extract_strided_slice %74 {offsets = [96, 0], sizes = [16, 128], strides = [1, 1]} : vector<128x128xbf16> to vector<16x128xbf16>
    %c6 = arith.constant 6 : index
    %c0_77 = arith.constant 0 : index
    %c0_78 = arith.constant 0 : index
    %107 = vector.load %arg6[%c6, %c0_77, %c0_78] : memref<8x128x128xbf16, #tpu.memory_space<vmem>>, vector<1x128x128xbf16>
    %108 = vector.shape_cast %107 : vector<1x128x128xbf16> to vector<128x128xbf16>
    %cst_79 = arith.constant dense<0.000000e+00> : vector<16x128xf32>
    %109 = tpu.matmul %106, %108, %cst_79 {dimension_numbers = #tpu.dot_dimension_numbers<[1], [0], [0], [1], [0, 0, 1, 1], [], []>} : vector<16x128xbf16>, vector<128x128xbf16>, vector<16x128xf32> -> vector<16x128xf32>
    %110 = arith.addf %105, %109 : vector<16x128xf32>
    %111 = vector.extract_strided_slice %74 {offsets = [112, 0], sizes = [16, 128], strides = [1, 1]} : vector<128x128xbf16> to vector<16x128xbf16>
    %c7 = arith.constant 7 : index
    %c0_80 = arith.constant 0 : index
    %c0_81 = arith.constant 0 : index
    %112 = vector.load %arg6[%c7, %c0_80, %c0_81] : memref<8x128x128xbf16, #tpu.memory_space<vmem>>, vector<1x128x128xbf16>
    %113 = vector.shape_cast %112 : vector<1x128x128xbf16> to vector<128x128xbf16>
    %cst_82 = arith.constant dense<0.000000e+00> : vector<16x128xf32>
    %114 = tpu.matmul %111, %113, %cst_82 {dimension_numbers = #tpu.dot_dimension_numbers<[1], [0], [0], [1], [0, 0, 1, 1], [], []>} : vector<16x128xbf16>, vector<128x128xbf16>, vector<16x128xf32> -> vector<16x128xf32>
    %115 = arith.addf %110, %114 : vector<16x128xf32>
    %c0_83 = arith.constant 0 : index
    %c0_84 = arith.constant 0 : index
    %116 = vector.load %arg7[%c0_83, %c0_84] : memref<1x128xf32, #tpu.memory_space<vmem>>, vector<1x128xf32>
    %117 = vector.broadcast %116 : vector<1x128xf32> to vector<16x128xf32>
    %118 = arith.addf %115, %117 : vector<16x128xf32>
    %cst_85 = arith.constant 0.000000e+00 : f32
    %119 = vector.broadcast %cst_85 : f32 to vector<16x128xf32>
    %120 = arith.maximumf %118, %119 : vector<16x128xf32>
    %c0_86 = arith.constant 0 : index
    %c0_87 = arith.constant 0 : index
    %121 = vector.load %arg8[%c0_86, %c0_87] : memref<128x3xf32, #tpu.memory_space<vmem>>, vector<128x3xf32>
    %cst_88 = arith.constant dense<0.000000e+00> : vector<16x3xf32>
    %122 = tpu.matmul %120, %121, %cst_88 {dimension_numbers = #tpu.dot_dimension_numbers<[1], [0], [0], [1], [0, 0, 1, 1], [], []>} : vector<16x128xf32>, vector<128x3xf32>, vector<16x3xf32> -> vector<16x3xf32>
    %c0_89 = arith.constant 0 : index
    %c0_90 = arith.constant 0 : index
    %123 = vector.load %arg9[%c0_89, %c0_90] : memref<1x3xf32, #tpu.memory_space<vmem>>, vector<1x3xf32>
    %124 = vector.broadcast %123 : vector<1x3xf32> to vector<16x3xf32>
    %125 = arith.addf %122, %124 : vector<16x3xf32>
    %c0_91 = arith.constant 0 : index
    %c0_92 = arith.constant 0 : index
    %126 = vector.load %arg10[%c0_91, %c0_92] : memref<16x3xf32, #tpu.memory_space<vmem>>, vector<16x3xf32>
    tpu.vector_store %arg10[%c0_91, %c0_92], %125 {strides = array<i32>} : memref<16x3xf32, #tpu.memory_space<vmem>>, vector<16x3xf32>,
    return
  }
  func.func @transform_0(%arg0: i32) -> (i32, i32, i32) {
    %c0_i32 = arith.constant 0 : i32
    %c0_i32_0 = arith.constant 0 : i32
    %c0_i32_1 = arith.constant 0 : i32
    return %arg0, %c0_i32, %c0_i32_0 : i32, i32, i32
  }
  func.func @transform_1(%arg0: i32) -> (i32, i32, i32) {
    %c0_i32 = arith.constant 0 : i32
    %c0_i32_0 = arith.constant 0 : i32
    %c0_i32_1 = arith.constant 0 : i32
    %c0_i32_2 = arith.constant 0 : i32
    return %c0_i32, %c0_i32_0, %c0_i32_1 : i32, i32, i32
  }
  func.func @transform_2(%arg0: i32) -> (i32, i32) {
    %c0_i32 = arith.constant 0 : i32
    %c0_i32_0 = arith.constant 0 : i32
    %c0_i32_1 = arith.constant 0 : i32
    return %c0_i32, %c0_i32_0 : i32, i32
  }
  func.func @transform_3(%arg0: i32) -> (i32, i32, i32) {
    %c0_i32 = arith.constant 0 : i32
    %c0_i32_0 = arith.constant 0 : i32
    %c0_i32_1 = arith.constant 0 : i32
    %c0_i32_2 = arith.constant 0 : i32
    return %c0_i32, %c0_i32_0, %c0_i32_1 : i32, i32, i32
  }
  func.func @transform_4(%arg0: i32) -> (i32, i32) {
    %c0_i32 = arith.constant 0 : i32
    %c0_i32_0 = arith.constant 0 : i32
    %c0_i32_1 = arith.constant 0 : i32
    return %c0_i32, %c0_i32_0 : i32, i32
  }
  func.func @transform_5(%arg0: i32) -> (i32, i32, i32) {
    %c0_i32 = arith.constant 0 : i32
    %c0_i32_0 = arith.constant 0 : i32
    %c0_i32_1 = arith.constant 0 : i32
    %c0_i32_2 = arith.constant 0 : i32
    return %c0_i32, %c0_i32_0, %c0_i32_1 : i32, i32, i32
  }
  func.func @transform_6(%arg0: i32) -> (i32, i32) {
    %c0_i32 = arith.constant 0 : i32
    %c0_i32_0 = arith.constant 0 : i32
    %c0_i32_1 = arith.constant 0 : i32
    return %c0_i32, %c0_i32_0 : i32, i32
  }
  func.func @transform_7(%arg0: i32) -> (i32, i32) {
    %c0_i32 = arith.constant 0 : i32
    %c0_i32_0 = arith.constant 0 : i32
    %c0_i32_1 = arith.constant 0 : i32
    return %c0_i32, %c0_i32_0 : i32, i32
  }
  func.func @transform_8(%arg0: i32) -> (i32, i32) {
    %c0_i32 = arith.constant 0 : i32
    %c0_i32_0 = arith.constant 0 : i32
    %c0_i32_1 = arith.constant 0 : i32
    return %c0_i32, %c0_i32_0 : i32, i32
  }
  func.func @transform_9(%arg0: i32) -> (i32, i32) {
    %c0_i32 = arith.constant 0 : i32
    %c0_i32_0 = arith.constant 0 : i32
    return %arg0, %c0_i32 : i32, i32
  }
}

</mosaic_0001>

<bundles_post_ra>
// kernel: cnn2_forward.1
= control target key start
LH: loop header
LB: loop body
LE: loop exit
PB: predicated region body
PF: predicated region fallthrough
CT: control target
= control target key end

     0   :  { %14 = vsyncpa [#allocation5], 0  ;;  %s10586_s0 = inlined_call_operand.hbm [shape: f32[2,512,128], index: 0, kind: input, shape index: {}]   ;;  %s10587_s1 = inlined_call_operand.hbm [shape: bf16[3,128,256], index: 1, kind: input, shape index: {}]   ;;  %s10588_s2 = inlined_call_operand.vmem [shape: f32[1,256], index: 2, kind: input, shape index: {}]   ;;  %s10589_s3 = inlined_call_operand.hbm [shape: bf16[3,256,128], index: 3, kind: input, shape index: {}]   ;;  %s10590_s4 = inlined_call_operand.vmem [shape: f32[1,128], index: 4, kind: input, shape index: {}]   ;;  %s10591_s5 = inlined_call_operand.hbm [shape: bf16[8,128,128], index: 5, kind: input, shape index: {}]   ;;  %s10592_s6 = inlined_call_operand.vmem [shape: f32[1,128], index: 6, kind: input, shape index: {}]   ;;  %s10593_s7 = inlined_call_operand.vmem [shape: f32[128,3], index: 7, kind: input, shape index: {}]   ;;  %s10594_s8 = inlined_call_operand.vmem [shape: f32[1,3], index: 8, kind: input, shape index: {}]   ;;  %s10595_s9 = inlined_call_operand.vmem [shape: f32[32,3], index: 9, kind: output, shape index: {}]  }
   0x1   :  { %16 = vsyncpa [#allocation5 + $0x1], 0 }
   0x2   :  { %17 = vsyncpa [#allocation7], 0 }
   0x3   :  { %18 = vsyncpa [#allocation10], 0  ;;  %s8390_s30 = smov 0   ;;  %s8392_s10 = smov 0  }
   0x4   :  { %s8394_s11 = smov 0   ;;  %s8396_s12 = smov 0  }
   0x5 LB: > { %s10596_s13 = sadd.s32 4294967295, %s8326_s12   ;;  %p44_p0 = scmp.ne.s32.totalorder %s8318_s10, %s8314_s30  ;;  %s8326_s12 = sphi %s8396_s12, %s11051_s12   ;;  %s8322_s11 = sphi %s8394_s11, %s11050_s11   ;;  %s8318_s10 = sphi %s8392_s10, %s11049_s10   ;;  %s8314_s30 = sphi %s8390_s30, %s11048_s30  }
   0x6   : > { %p8412_p1 = scmp.eq.s32.totalorder %s10596_s13, 0  ;;  %p6302_p2 = scmp.ge.s32.totalorder %s8326_s12, 1 }
   0x7   : > { %p249_p3 = scmp.lt.s32.totalorder %s8326_s12, 3  ;;  %s8328_s17 = smov [#allocation6]  }
   0x8   : > { %s10638_s14 = scalar_select %p8412_p1, 1, 0 }
   0x9   : > { %p8420_p4 = por %p8412_p1, %p44_p0  ;;  %p8424_p5 = pnand %p6302_p2, %p249_p3 }
   0xa   : > { %s261_s18 = sshll.u32 %s8328_s17, 4  ;;  %s8329_s20 = smov [#allocation8]   ;;  %s262_s18 = int_to_ptr.vmem [resolvable:$true] %s261_s18 }
   0xb   : > { %s10639_s15 = scalar_select %p8420_p4, 1, 0 }
   0xc   : > { %s10640_s16 = scalar_select %p8424_p5, 1, 0 }
   0xd   : > { %p7665_p6 = pneg %p8424_p5  ;;  %s277_s21 = sshll.u32 %s8329_s20, 4  ;;  %s278_s21 = int_to_ptr.vmem [resolvable:$true] %s277_s21 }
   0xe   : > { %s8189_s22 = scalar_lea.vmem %s262_s18, 6144  ;;  %p8197_p12 = scmp.lt.s32.totalorder %s262_s18, %s262_s18 }
   0xf   : > { %p8432_p7 = pnand %p7665_p6, %p8412_p1  ;;  %p8190_p9 = scmp.ne.s32.totalorder %s262_s18, %s8189_s22 }
  0x10   : > { %p8198_p13 = scmp.lt.s32.totalorder %s8189_s22, %s8189_s22 }
  0x11   : > { %p8180_p8 = pneg %p8432_p7 }
  0x12   : > { %p8199_p0 = por %p8198_p13, %p8197_p12 }
  0x13   : > { %p8192_p10 = pnand %p8190_p9, %p8180_p8 }
  0x15   : > { %p8193_p11 = pneg %p8192_p10 }
  0x17   : > { %p8200_p2 = pnand %p8199_p0, %p8193_p11 }
  0x19   : > { %8203 = shalt.err (!%p8200_p2)
}
  0x1a   : > { %s10597_s23 = smov 128   ;;  %s10598_s24 = smov 8  }
  0x1b   : > { %7668 = dma.hbm_to_vmem [thread:$0]  (!%p8432_p7), %s10587_s1, 6144, %s262_s18, [#allocation7], %s10597_s23, %s10597_s23, %s10598_s24  }
  0x1c   : > { %s8215_s27 = scalar_lea.vmem %s278_s21, 6144  ;;  %p8223_p10 = scmp.lt.s32.totalorder %s278_s21, %s278_s21 }
  0x1d   : > { %p8216_p3 = scmp.ne.s32.totalorder %s278_s21, %s8215_s27  ;;  %p8224_p11 = scmp.lt.s32.totalorder %s8215_s27, %s8215_s27 }
  0x1f   : > { %p8218_p6 = pnand %p8216_p3, %p8180_p8  ;;  %p8225_p12 = por %p8224_p11, %p8223_p10 }
  0x21   : > { %p8219_p9 = pneg %p8218_p6 }
  0x23   : > { %p8226_p13 = pnand %p8225_p12, %p8219_p9 }
  0x25   : > { %8229 = shalt.err (!%p8226_p13)
}
  0x26   : > { %s8332_s28 = smov 64   ;;  %s8333_s29 = smov 4  }
  0x27   : > { %7671 = dma.hbm_to_vmem [thread:$0]  (!%p8432_p7), %s10589_s3, 6144, %s278_s21, [#allocation7], %s8332_s28, %s8332_s28, %s8333_s29  }
  0x28   : > { %s8334_s18 = smov [#allocation9]   ;;  %s8458_s22 = sadd.s32 1, %s8326_s12  }
  0x29   : > { %s293_s20 = sshll.u32 %s8334_s18, 4  ;;  %s294_s20 = int_to_ptr.vmem [resolvable:$true] %s293_s20 }
  0x2a   : > { %s8241_s25 = scalar_lea.vmem %s294_s20, 8192  ;;  %p8249_p6 = scmp.lt.s32.totalorder %s294_s20, %s294_s20 }
  0x2b   : > { %p8242_p0 = scmp.ne.s32.totalorder %s294_s20, %s8241_s25  ;;  %p8250_p9 = scmp.lt.s32.totalorder %s8241_s25, %s8241_s25 }
  0x2d   : > { %p8244_p2 = pnand %p8242_p0, %p8180_p8  ;;  %p8251_p10 = por %p8250_p9, %p8249_p6 }
  0x2f   : > { %p8245_p3 = pneg %p8244_p2 }
  0x31   : > { %p8252_p11 = pnand %p8251_p10, %p8245_p3 }
  0x33   : > { %8255 = shalt.err (!%p8252_p11)
}
  0x34   : > { %7674 = dma.hbm_to_vmem [thread:$0]  (!%p8432_p7), %s10591_s5, 8192, %s294_s20, [#allocation10], %s8332_s28, %s8332_s28, %s8333_s29  }
  0x35   : > { %s28_s27 = ssub.s32 %s8326_s12, %s8458_s22  ;;  %s31_s30 = sadd.s32 1, %s8322_s11 }
  0x36   : > { %p29_p8 = scmp.eq.s32.totalorder %s28_s27, 0  ;;  %p38_p12 = scmp.ne.s32.totalorder %s8322_s11, %s8318_s10 }
  0x37   : > { %p39_p13 = scmp.eq.s32.totalorder %s8326_s12, 0  ;;  %p7682_p0 = scmp.lt.s32.totalorder %s8326_s12, 2 }
  0x38   : > { %s8476_s19 = scalar_select %p29_p8, %s8322_s11, %s31_s30  }
  0x39   : > { %p40_p2 = por %p39_p13, %p38_p12  ;;  %s316_s17 = sand.u32 1, %s8322_s11  }
  0x3a   : > { %s6307_s18 = sshll.u32 %s316_s17, 9  ;;  %s6709_s25 = sshll.u32 %s8326_s12, 13 }
  0x3b   : > { %s8483_s13 = scalar_lea.hbm %s10586_s0, %s6709_s25  ;;  %s320_s28 = scalar_lea.vmem [#allocation4], %s6307_s18 }
  0x3c   : > { %s327_s29 = sshll.u32 %s320_s28, 4  ;;  %p8487_p7 = pnand %p7682_p0, %p40_p2  ;;  %s8485_s29 = int_to_ptr.vmem [resolvable:$true] %s327_s29 }
  0x3d   : > { %s8491_s27 = scalar_lea.sflag [#allocation5], %s316_s17  ;;  %s8256_s30 = scalar_lea.hbm %s8483_s13, 8192 }
  0x3e   : > { %p8257_p3 = scmp.ne.s32.totalorder %s8483_s13, %s8256_s30  ;;  %p8258_p6 = pneg %p8487_p7 }
  0x3f   : > { %s8261_s18 = scalar_lea.hbm %s10586_s0, 16384  ;;  %p8262_p11 = scmp.lt.s32.totalorder %s8483_s13, %s10586_s0 }
  0x40   : > { %p8259_p9 = pnand %p8258_p6, %p8257_p3  ;;  %p8263_p8 = scmp.lt.s32.totalorder %s8261_s18, %s8256_s30 }
  0x42   : > { %p8260_p10 = pneg %p8259_p9  ;;  %p8264_p12 = por %p8263_p8, %p8262_p11 }
  0x44   : > { %p8265_p13 = pnand %p8264_p12, %p8260_p10 }
  0x46   : > { %8268 = shalt.err (!%p8265_p13)
}
  0x47   : > { %s8269_s17 = scalar_lea.vmem %s8485_s29, 8192  ;;  %s8335_s23 = smov [#allocation4]  }
  0x48   : > { %p8270_p0 = scmp.ne.s32.totalorder %s8485_s29, %s8269_s17  ;;  %s8274_s24 = sshll.u32 %s8335_s23, 4  ;;  %s8275_s24 = int_to_ptr.vmem [resolvable:$false] %s8274_s24 }
  0x49   : > { %s8276_s25 = scalar_lea.vmem %s8275_s24, 16384  ;;  %p8277_p9 = scmp.lt.s32.totalorder %s8485_s29, %s8275_s24 }
  0x4a   : > { %p8272_p2 = pnand %p8270_p0, %p8258_p6  ;;  %p8278_p1 = scmp.lt.s32.totalorder %s8276_s25, %s8269_s17 }
  0x4c   : > { %p8273_p3 = pneg %p8272_p2  ;;  %p8279_p4 = por %p8278_p1, %p8277_p9 }
  0x4e   : > { %p8280_p5 = pnand %p8279_p4, %p8273_p3 }
  0x50   : > { %8283 = shalt.err (!%p8280_p5)
}
  0x51   : > { %s10643_s30 = smov 8   ;;  %s10644_s26 = smov 128  }
  0x52   : > { %7678 = dma.hbm_to_vmem [thread:$0]  (!%p8487_p7), %s8483_s13, 8192, %s8485_s29, %s8491_s27, %s10644_s26, %s10644_s26, %s10643_s30  }
  0x53   : > { %p10645_p6 = scmp.ne.s32.totalorder %s10640_s16, 0 }
  0x55   : > { %339 = sbr.rel (%p10645_p6) target bundleno = 1896 (0x768), region = 56 }
  0x5a   : > { %s341_s23 = sand.u32 1, %s8318_s10   ;;  %p10646_p1 = scmp.ne.s32.totalorder %s10639_s15, 0 }
  0x5b   : > { %s6311_s24 = sshll.u32 %s341_s23, 9  ;;  %s342_s18 = scalar_lea.sflag [#allocation5], %s341_s23 }
  0x5c   : > { %s8518_s21 = scalar_lea.vmem [#allocation4], %s6311_s24 }
  0x5d   : > { %8301 = dma.done.wait (%p10646_p1), %s342_s18, 8192  }
  0x5e   : > { %8303 = vsyncadd (%p10646_p1), %s342_s18, 4294959104  ;;  %p10647_p4 = scmp.ne.s32.totalorder %s10638_s14, 0 }
  0x60   : > { %8305 = dma.done.wait (%p10647_p4), [#allocation7], 12288  }
  0x61   : > { %8307 = vsyncadd (%p10647_p4), [#allocation7], 4294955008 }
  0x62   : > { %8309 = dma.done.wait (%p10647_p4), [#allocation10], 8192  }
  0x63   : > { %8311 = vsyncadd (%p10647_p4), [#allocation10], 4294959104  ;;  %v10603_v0 = vmov 0   ;;  %v7929_v1 = vld [vmem:[#allocation6 + $0xf4] ss:$8 sps:$4 sm:$0xff]   ;;  %v403_v27 = vld [vmem:[%s8518_s21] sm:$0xff] }
  0x64   : > { %1190 = vmatprep.mubr.bf16.mxu0 %v10603_v0  ;;  %399 = vst [vmem:[#allocation2] sm:$0xf] %v10603_v0  ;;  %400 = vst [vmem:[#allocation2 + $0x4] sm:$0xf] %v10603_v0  ;;  %1629 = vmatprep.mubr.bf16.mxu1 %v10603_v0  ;;  %v7931_v2 = vld [vmem:[#allocation6 + $0x74] ss:$8 sps:$4 sm:$0xff]  }
  0x65   : > { %401 = vst [vmem:[#allocation2 + $0x108] sm:$0xf] %v10603_v0  ;;  %402 = vst [vmem:[#allocation2 + $0x10c] sm:$0xf] %v10603_v0  ;;  %1158 = vmatprep.subr.bf16.mxu0 %v7929_v1  ;;  %v7933_v3 = vld [vmem:[#allocation6 + $0xf0] ss:$8 sps:$4 sm:$0xff]   ;;  %1597 = vmatprep.subr.bf16.mxu1 %v7931_v2 }
  0x66   : > { %v7934_v4 = vld [vmem:[#allocation6 + $0x70] ss:$8 sps:$4 sm:$0xff]   ;;  %v7935_v5 = vld [vmem:[#allocation6 + $0xe4] ss:$8 sps:$4 sm:$0xff]   ;;  %1159 = vmatpush1.bf16.msra.mxu0 %v7933_v3  ;;  %v7939_v7 = vld [vmem:[#allocation6 + $0xe0] ss:$8 sps:$4 sm:$0xff]  }
  0x67   : > { %1598 = vmatpush1.bf16.msra.mxu1 %v7934_v4  ;;  %v7937_v6 = vld [vmem:[#allocation6 + $0x64] ss:$8 sps:$4 sm:$0xff]   ;;  %1160 = vmatprep.subr.bf16.mxu0 %v7935_v5  ;;  %v7940_v8 = vld [vmem:[#allocation6 + $0x60] ss:$8 sps:$4 sm:$0xff]   ;;  %v7941_v9 = vld [vmem:[#allocation6 + $0xd4] ss:$8 sps:$4 sm:$0xff]  }
  0x68   : > { %1599 = vmatprep.subr.bf16.mxu1 %v7937_v6  ;;  %v7943_v10 = vld [vmem:[#allocation6 + $0x54] ss:$8 sps:$4 sm:$0xff]   ;;  %v7945_v11 = vld [vmem:[#allocation6 + $0xd0] ss:$8 sps:$4 sm:$0xff]   ;;  %v7947_v13 = vld [vmem:[#allocation6 + $0xc4] ss:$8 sps:$4 sm:$0xff]  }
  0x69   : > { %v7946_v12 = vld [vmem:[#allocation6 + $0x50] ss:$8 sps:$4 sm:$0xff]   ;;  %v7949_v14 = vld [vmem:[#allocation6 + $0x44] ss:$8 sps:$4 sm:$0xff]   ;;  %v7951_v15 = vld [vmem:[#allocation6 + $0xc0] ss:$8 sps:$4 sm:$0xff]  }
  0x6a   : > { %1161 = vmatpush1.bf16.msra.mxu0 %v7939_v7  ;;  %v7952_v16 = vld [vmem:[#allocation6 + $0x40] ss:$8 sps:$4 sm:$0xff]   ;;  %v7953_v17 = vld [vmem:[#allocation6 + $0xb4] ss:$8 sps:$4 sm:$0xff]   ;;  %v7957_v19 = vld [vmem:[#allocation6 + $0xb0] ss:$8 sps:$4 sm:$0xff]  }
  0x6b   : > { %1600 = vmatpush1.bf16.msra.mxu1 %v7940_v8  ;;  %1162 = vmatprep.subr.bf16.mxu0 %v7941_v9  ;;  %v7955_v18 = vld [vmem:[#allocation6 + $0x34] ss:$8 sps:$4 sm:$0xff]   ;;  %v7958_v20 = vld [vmem:[#allocation6 + $0x30] ss:$8 sps:$4 sm:$0xff]   ;;  %v7959_v21 = vld [vmem:[#allocation6 + $0xa4] ss:$8 sps:$4 sm:$0xff]  }
  0x6c   : > { %1601 = vmatprep.subr.bf16.mxu1 %v7943_v10  ;;  %v7961_v22 = vld [vmem:[#allocation6 + $0x24] ss:$8 sps:$4 sm:$0xff]   ;;  %v7963_v23 = vld [vmem:[#allocation6 + $0xa0] ss:$8 sps:$4 sm:$0xff]   ;;  %v7965_v25 = vld [vmem:[#allocation6 + $0x94] ss:$8 sps:$4 sm:$0xff]  }
  0x6d   : > { %v7964_v24 = vld [vmem:[#allocation6 + $0x20] ss:$8 sps:$4 sm:$0xff]   ;;  %v7967_v26 = vld [vmem:[#allocation6 + $0x14] ss:$8 sps:$4 sm:$0xff]   ;;  %v7969_v29 = vld [vmem:[#allocation6 + $0x90] ss:$8 sps:$4 sm:$0xff]  }
  0x6e   : > { %1163 = vmatpush1.bf16.msra.mxu0 %v7945_v11  ;;  %v404_v28 = vld [vmem:[%s8518_s21 + $0x8] sm:$0xff]  ;;  %v7970_v30 = vld [vmem:[#allocation6 + $0x10] ss:$8 sps:$4 sm:$0xff]   ;;  %v407_v37 = vld [vmem:[%s8518_s21 + $0x20] sm:$0xff]  ;;  %s8337_s15 = smov 120   ;;  %vm3308_vm0 = vcmask 982016  }
  0x6f   : > { %1602 = vmatpush1.bf16.msra.mxu1 %v7946_v12  ;;  %1164 = vmatprep.subr.bf16.mxu0 %v7947_v13  ;;  %v6809_v31 = vpack.c.bf16 %v404_v28, %v403_v27  ;;  %v7971_v32 = vld [vmem:[#allocation6 + $0x84] ss:$8 sps:$4 sm:$0xff]   ;;  %v405_v34 = vld [vmem:[%s8518_s21 + $0x10] sm:$0xff]  ;;  %v406_v35 = vld [vmem:[%s8518_s21 + $0x18] sm:$0xff]  ;;  %vm8339_vm1 = vmmov 0   ;;  %s11047_s28 = sadd.s32 4294967295, %s8326_s12  }
  0x70   : > { %1603 = vmatprep.subr.bf16.mxu1 %v7949_v14  ;;  %v7973_v33 = vld [vmem:[#allocation6 + $0x4] ss:$8 sps:$4 sm:$0xff]   ;;  %v6814_v36 = vpack.c.bf16 %v406_v35, %v405_v34  ;;  %v409_v39 = vld [vmem:[%s8518_s21 + $0x30] sm:$0xff]  ;;  %v7975_v40 = vld [vmem:[#allocation6 + $0x80] ss:$8 sps:$4 sm:$0xff]   ;;  %s6315_s17 = sshll.u32 %s11047_s28, 1 }
  0x71   : > { %6966 = vst [vmem:[#allocation2 + $0x8] sm:$0xff] %v6809_v31   ;;  %v408_v38 = vld [vmem:[%s8518_s21 + $0x28] sm:$0xff]  ;;  %v410_v42 = vld [vmem:[%s8518_s21 + $0x38] sm:$0xff]  ;;  %v411_v43 = vld [vmem:[%s8518_s21 + $0x40] sm:$0xff]  ;;  %p393_p5 = scmp.lt.s32.totalorder %s6315_s17, 3  ;;  %vm6201_vm2 = vcmask 23552  }
  0x72   : > { %1165 = vmatpush1.bf16.msra.mxu0 %v7951_v15  ;;  %v6819_v41 = vpack.c.bf16 %v408_v38, %v407_v37  ;;  %v412_v44 = vld [vmem:[%s8518_s21 + $0x48] sm:$0xff]  ;;  %6967 = vst [vmem:[#allocation2 + $0x10] sm:$0xff] %v6814_v36   ;;  %v6824_v46 = vpack.c.bf16 %v410_v42, %v409_v39  ;;  %v7981_v48 = vld [vmem:[#allocation6 + $0x174] ss:$8 sps:$4 sm:$0xff]   ;;  %v415_v53 = vld [vmem:[%s8518_s21 + $0x60] sm:$0xff] }
  0x73   : > { %1604 = vmatpush1.bf16.msra.mxu1 %v7952_v16  ;;  %1166 = vmatprep.subr.bf16.mxu0 %v7953_v17  ;;  %v7976_v45 = vld [vmem:[#allocation6] ss:$8 sps:$4 sm:$0xff]   ;;  %v6829_v47 = vpack.c.bf16 %v412_v44, %v411_v43  ;;  %v413_v49 = vld [vmem:[%s8518_s21 + $0x50] sm:$0xff]  ;;  %v414_v50 = vld [vmem:[%s8518_s21 + $0x58] sm:$0xff]  ;;  %s11053_s17 = smov (!%p393_p5, %s6315_s17), 3 }
  0x74   : > { %1605 = vmatprep.subr.bf16.mxu1 %v7955_v18  ;;  %6968 = vst [vmem:[#allocation2 + $0x18] sm:$0xff] %v6819_v41   ;;  %v7978_v51 = vld [vmem:[#allocation2] sm:$0xff]   ;;  %6969 = vst [vmem:[#allocation2 + $0x20] sm:$0xff] %v6824_v46   ;;  %v6834_v52 = vpack.c.bf16 %v414_v50, %v413_v49  ;;  %v416_v54 = vld [vmem:[%s8518_s21 + $0x68] sm:$0xff]  ;;  %s6316_s25 = sshll.u32 %s11053_s17, 3 }
  0x75   : > { %6970 = vst [vmem:[#allocation2 + $0x28] sm:$0xff] %v6829_v47   ;;  %v417_v55 = vld [vmem:[%s8518_s21 + $0x70] sm:$0xff]  ;;  %v6839_v56 = vpack.c.bf16 %v416_v54, %v415_v53  ;;  %v418_v57 = vld [vmem:[%s8518_s21 + $0x78] sm:$0xff]  ;;  %v419_v58 = vld [vmem:[%s8518_s21 + $0x80] sm:$0xff]  ;;  %s396_s18 = scalar_lea.vmem %s10595_s9, %s6316_s25 }
  0x76   : > { %1167 = vmatpush1.bf16.msra.mxu0 %v7957_v19  ;;  %v420_v59 = vld [vmem:[%s8518_s21 + $0x88] sm:$0xff]  ;;  %6971 = vst [vmem:[#allocation2 + $0x30] sm:$0xff] %v6834_v52   ;;  %v6844_v61 = vpack.c.bf16 %v418_v57, %v417_v55  ;;  %v7979_v63 = vld [vmem:[#allocation6 + $0x170] ss:$8 sps:$4 sm:$0xff]   ;;  %v7995_v6 = vld [vmem:[#allocation6 + $0x154] ss:$8 sps:$4 sm:$0xff]  }
  0x77   : > { %1606 = vmatpush1.bf16.msra.mxu1 %v7958_v20  ;;  %1168 = vmatprep.subr.bf16.mxu0 %v7959_v21  ;;  %v6849_v62 = vpack.c.bf16 %v420_v59, %v419_v58  ;;  %6972 = vst [vmem:[#allocation2 + $0x38] sm:$0xff] %v6839_v56   ;;  %v7988_v1 = vld [vmem:[#allocation6 + $0x164] ss:$8 sps:$4 sm:$0xff]   ;;  %v421_v2 = vld [vmem:[%s8518_s21 + $0x90] sm:$0xff]  ;;  %v422_v3 = vld [vmem:[%s8518_s21 + $0x98] sm:$0xff] }
  0x78   : > { %1607 = vmatprep.subr.bf16.mxu1 %v7961_v22  ;;  %v7977_v60 = vld [vmem:[#allocation2 + $0x8] sm:$0xff]   ;;  %6973 = vst [vmem:[#allocation2 + $0x40] sm:$0xff] %v6844_v61   ;;  %v6854_v4 = vpack.c.bf16 %v422_v3, %v421_v2  ;;  %v7986_v5 = vld [vmem:[#allocation6 + $0x160] ss:$8 sps:$4 sm:$0xff]   ;;  %v425_v11 = vld [vmem:[%s8518_s21 + $0xb0] sm:$0xff] }
  0x79   : > { %6974 = vst [vmem:[#allocation2 + $0x48] sm:$0xff] %v6849_v62   ;;  %v7982_v7 = vld [vmem:[#allocation2 + $0x10] sm:$0xff]   ;;  %v7993_v8 = vld [vmem:[#allocation6 + $0x150] ss:$8 sps:$4 sm:$0xff]   ;;  %v424_v10 = vld [vmem:[%s8518_s21 + $0xa8] sm:$0xff] }
  0x7a   : > { %1169 = vmatpush1.bf16.msra.mxu0 %v7963_v23  ;;  %6975 = vst [vmem:[#allocation2 + $0x50] sm:$0xff] %v6854_v4   ;;  %v423_v9 = vld [vmem:[%s8518_s21 + $0xa0] sm:$0xff]  ;;  %v426_v13 = vld [vmem:[%s8518_s21 + $0xb8] sm:$0xff]  ;;  %v428_v15 = vld [vmem:[%s8518_s21 + $0xc8] sm:$0xff] }
  0x7b   : > { %1608 = vmatpush1.bf16.msra.mxu1 %v7964_v24  ;;  %1170 = vmatprep.subr.bf16.mxu0 %v7965_v25  ;;  %v6859_v12 = vpack.c.bf16 %v424_v10, %v423_v9  ;;  %v427_v14 = vld [vmem:[%s8518_s21 + $0xc0] sm:$0xff]  ;;  %v7983_v16 = vld [vmem:[#allocation2 + $0x18] sm:$0xff]   ;;  %v6864_v17 = vpack.c.bf16 %v426_v13, %v425_v11  ;;  %v429_v21 = vld [vmem:[%s8518_s21 + $0xd0] sm:$0xff] }
  0x7c   : > { %1609 = vmatprep.subr.bf16.mxu1 %v7967_v26  ;;  %v6869_v18 = vpack.c.bf16 %v428_v15, %v427_v14  ;;  %v8000_v19 = vld [vmem:[#allocation6 + $0x140] ss:$8 sps:$4 sm:$0xff]   ;;  %v8002_v20 = vld [vmem:[#allocation6 + $0x144] ss:$8 sps:$4 sm:$0xff]   ;;  %v430_v22 = vld [vmem:[%s8518_s21 + $0xd8] sm:$0xff] }
  0x7d   : > { %6976 = vst [vmem:[#allocation2 + $0x58] sm:$0xff] %v6859_v12   ;;  %6977 = vst [vmem:[#allocation2 + $0x60] sm:$0xff] %v6864_v17   ;;  %v6874_v23 = vpack.c.bf16 %v430_v22, %v429_v21  ;;  %v431_v24 = vld [vmem:[%s8518_s21 + $0xe0] sm:$0xff]  ;;  %v432_v25 = vld [vmem:[%s8518_s21 + $0xe8] sm:$0xff] }
  0x7e   : > { %1171 = vmatpush1.bf16.msra.mxu0 %v7969_v29  ;;  %6978 = vst [vmem:[#allocation2 + $0x68] sm:$0xff] %v6869_v18   ;;  %v433_v26 = vld [vmem:[%s8518_s21 + $0xf0] sm:$0xff]  ;;  %v6879_v27 = vpack.c.bf16 %v432_v25, %v431_v24  ;;  %v434_v28 = vld [vmem:[%s8518_s21 + $0xf8] sm:$0xff]  ;;  %v435_v29 = vld [vmem:[%s8518_s21 + $0x100] sm:$0xff] }
  0x7f   : > { %1610 = vmatpush1.bf16.msra.mxu1 %v7970_v30  ;;  %1172 = vmatprep.subr.bf16.mxu0 %v7971_v32  ;;  %v436_v30 = vld [vmem:[%s8518_s21 + $0x108] sm:$0xff]  ;;  %6979 = vst [vmem:[#allocation2 + $0x70] sm:$0xff] %v6874_v23   ;;  %v6884_v31 = vpack.c.bf16 %v434_v28, %v433_v26  ;;  %v8009_v34 = vld [vmem:[#allocation6 + $0x134] ss:$8 sps:$4 sm:$0xff]   ;;  %v439_v38 = vld [vmem:[%s8518_s21 + $0x120] sm:$0xff] }
  0x80   : > { %1611 = vmatprep.subr.bf16.mxu1 %v7973_v33  ;;  %v6889_v32 = vpack.c.bf16 %v436_v30, %v435_v29  ;;  %v8007_v33 = vld [vmem:[#allocation6 + $0x130] ss:$8 sps:$4 sm:$0xff]   ;;  %6980 = vst [vmem:[#allocation2 + $0x78] sm:$0xff] %v6879_v27   ;;  %v440_v39 = vld [vmem:[%s8518_s21 + $0x128] sm:$0xff]  ;;  %v7989_v54 = vld [vmem:[#allocation2 + $0x30] sm:$0xff]  }
  0x81   : > { %v437_v35 = vld [vmem:[%s8518_s21 + $0x110] sm:$0xff]  ;;  %v438_v36 = vld [vmem:[%s8518_s21 + $0x118] sm:$0xff]  ;;  %6981 = vst [vmem:[#allocation2 + $0x80] sm:$0xff] %v6884_v31   ;;  %v6899_v41 = vpack.c.bf16 %v440_v39, %v439_v38  ;;  %v444_v46 = vld [vmem:[%s8518_s21 + $0x148] sm:$0xff] }
  0x82   : > { %1173 = vmatpush1.bf16.msra.mxu0 %v7975_v40  ;;  %6982 = vst [vmem:[#allocation2 + $0x88] sm:$0xff] %v6889_v32   ;;  %v6894_v37 = vpack.c.bf16 %v438_v36, %v437_v35  ;;  %v441_v40 = vld [vmem:[%s8518_s21 + $0x130] sm:$0xff]  ;;  %v442_v42 = vld [vmem:[%s8518_s21 + $0x138] sm:$0xff]  ;;  %v8014_v52 = vld [vmem:[#allocation6 + $0x120] ss:$8 sps:$4 sm:$0xff]  }
  0x83   : > { %1612 = vmatpush1.bf16.msra.mxu1 %v7976_v45  ;;  %2303 = vmatprep.subr.bf16.mxu0 %v7981_v48  ;;  %6984 = vst [vmem:[#allocation2 + $0x98] sm:$0xff] %v6899_v41   ;;  %v6904_v43 = vpack.c.bf16 %v442_v42, %v441_v40  ;;  %v7984_v44 = vld [vmem:[#allocation2 + $0x20] sm:$0xff]   ;;  %v443_v45 = vld [vmem:[%s8518_s21 + $0x140] sm:$0xff]  ;;  %v7985_v47 = vld [vmem:[#allocation2 + $0x28] sm:$0xff]  }
  0x84   : > { %6983 = vst [vmem:[#allocation2 + $0x90] sm:$0xff] %v6894_v37   ;;  %v6909_v48 = vpack.c.bf16 %v444_v46, %v443_v45  ;;  %v445_v49 = vld [vmem:[%s8518_s21 + $0x150] sm:$0xff]  ;;  %v446_v50 = vld [vmem:[%s8518_s21 + $0x158] sm:$0xff]  ;;  %v8016_v53 = vld [vmem:[#allocation6 + $0x124] ss:$8 sps:$4 sm:$0xff]  }
  0x85   : > { %1191 = vmatmul.mubr.bf16.vlgmr.msra.gmra.mxu0 %v7977_v60  ;;  %6985 = vst [vmem:[#allocation2 + $0xa0] sm:$0xff] %v6904_v43   ;;  %v447_v55 = vld [vmem:[%s8518_s21 + $0x160] sm:$0xff]  ;;  %v448_v56 = vld [vmem:[%s8518_s21 + $0x168] sm:$0xff]  ;;  %v449_v59 = vld [vmem:[%s8518_s21 + $0x170] sm:$0xff] }
  0x86   : > { %1630 = vmatmul.mubr.bf16.vlgmr.msra.gmra.mxu1 %v7978_v51  ;;  %2304 = vmatpush1.bf16.msra.mxu0 %v7979_v63  ;;  %6986 = vst [vmem:[#allocation2 + $0xa8] sm:$0xff] %v6909_v48   ;;  %v6914_v51 = vpack.c.bf16 %v446_v50, %v445_v49  ;;  %v6919_v57 = vpack.c.bf16 %v448_v56, %v447_v55  ;;  %v7990_v58 = vld [vmem:[#allocation2 + $0x38] sm:$0xff]   ;;  %v7991_v62 = vld [vmem:[#allocation2 + $0x40] sm:$0xff]   ;;  %v451_v63 = vld [vmem:[%s8518_s21 + $0x180] sm:$0xff] }
  0x87   : > { %1200 = vmatprep.mubr.bf16.mxu0 %v10603_v0  ;;  %1639 = vmatprep.mubr.bf16.mxu1 %v10603_v0  ;;  %v7992_v3 = vld [vmem:[#allocation2 + $0x48] sm:$0xff]   ;;  %v453_v4 = vld [vmem:[%s8518_s21 + $0x190] sm:$0xff]  ;;  %v7996_v9 = vld [vmem:[#allocation2 + $0x50] sm:$0xff]  }
  0x88   : > { %2305 = vmatprep.subr.bf16.mxu0 %v7988_v1  ;;  %6987 = vst [vmem:[#allocation2 + $0xb0] sm:$0xff] %v6914_v51   ;;  %6988 = vst [vmem:[#allocation2 + $0xb8] sm:$0xff] %v6919_v57   ;;  %v452_v1 = vld [vmem:[%s8518_s21 + $0x188] sm:$0xff]  ;;  %v455_v10 = vld [vmem:[%s8518_s21 + $0x1a0] sm:$0xff] }
  0x89   : > { %v6929_v2 = vpack.c.bf16 %v452_v1, %v451_v63  ;;  %v456_v11 = vld [vmem:[%s8518_s21 + $0x1a8] sm:$0xff]  ;;  %v457_v14 = vld [vmem:[%s8518_s21 + $0x1b0] sm:$0xff]  ;;  %v458_v15 = vld [vmem:[%s8518_s21 + $0x1b8] sm:$0xff] }
  0x8a   : > { %2306 = vmatpush1.bf16.msra.mxu0 %v7986_v5  ;;  %v454_v5 = vld [vmem:[%s8518_s21 + $0x198] sm:$0xff]  ;;  %v6939_v12 = vpack.c.bf16 %v456_v11, %v455_v10  ;;  %v7997_v13 = vld [vmem:[#allocation2 + $0x58] sm:$0xff]   ;;  %v7998_v17 = vld [vmem:[#allocation2 + $0x60] sm:$0xff]  }
  0x8b   : > { %2307 = vmatprep.subr.bf16.mxu0 %v7995_v6  ;;  %6990 = vst [vmem:[#allocation2 + $0xc8] sm:$0xff] %v6929_v2   ;;  %v6934_v6 = vpack.c.bf16 %v454_v5, %v453_v4  ;;  %v459_v18 = vld [vmem:[%s8518_s21 + $0x1c0] sm:$0xff]  ;;  %v7999_v21 = vld [vmem:[#allocation2 + $0x68] sm:$0xff]   ;;  %v461_v22 = vld [vmem:[%s8518_s21 + $0x1d0] sm:$0xff] }
  0x8c   : > { %6992 = vst [vmem:[#allocation2 + $0xd8] sm:$0xff] %v6939_v12   ;;  %v462_v23 = vld [vmem:[%s8518_s21 + $0x1d8] sm:$0xff]  ;;  %v8028_v25 = vld [vmem:[#allocation6 + $0x100] ss:$8 sps:$4 sm:$0xff]   ;;  %v8030_v26 = vld [vmem:[#allocation6 + $0x104] ss:$8 sps:$4 sm:$0xff]  }
  0x8d   : > { %1201 = vmatmul.mubr.bf16.gmra.mxu0 %v7982_v7  ;;  %6991 = vst [vmem:[#allocation2 + $0xd0] sm:$0xff] %v6934_v6   ;;  %v6954_v24 = vpack.c.bf16 %v462_v23, %v461_v22  ;;  %v8003_v27 = vld [vmem:[#allocation2 + $0x70] sm:$0xff]   ;;  %v464_v29 = vld [vmem:[%s8518_s21 + $0x1e8] sm:$0xff]  ;;  %v465_v32 = vld [vmem:[%s8518_s21 + $0x1f0] sm:$0xff] }
  0x8e   : > { %1640 = vmatmul.mubr.bf16.gmra.mxu1 %v7977_v60  ;;  %1210 = vmatprep.mubr.bf16.mxu0 %v10603_v0  ;;  %v450_v60 = vld [vmem:[%s8518_s21 + $0x178] sm:$0xff]  ;;  %v463_v28 = vld [vmem:[%s8518_s21 + $0x1e0] sm:$0xff]  ;;  %v8004_v31 = vld [vmem:[#allocation2 + $0x78] sm:$0xff]  }
  0x8f   : > { %1649 = vmatprep.mubr.bf16.mxu1 %v10603_v0  ;;  %2308 = vmatpush1.bf16.msra.mxu0 %v7993_v8  ;;  %v6924_v61 = vpack.c.bf16 %v450_v60, %v449_v59  ;;  %v8023_v8 = vld [vmem:[#allocation6 + $0x114] ss:$8 sps:$4 sm:$0xff]   ;;  %6995 = vst [vmem:[#allocation2 + $0xf0] sm:$0xff] %v6954_v24   ;;  %v6959_v30 = vpack.c.bf16 %v464_v29, %v463_v28  ;;  %v8010_v37 = vld [vmem:[#allocation2 + $0x90] sm:$0xff]   ;;  %v8011_v38 = vld [vmem:[#allocation2 + $0x98] sm:$0xff]  }
  0x90   : > { %2309 = vmatprep.subr.bf16.mxu0 %v8002_v20  ;;  %v8005_v35 = vld [vmem:[#allocation2 + $0x80] sm:$0xff]   ;;  %v8006_v36 = vld [vmem:[#allocation2 + $0x88] sm:$0xff]   ;;  %v8017_v41 = vld [vmem:[#allocation2 + $0xb0] sm:$0xff]  }
  0x91   : > { %6989 = vst [vmem:[#allocation2 + $0xc0] sm:$0xff] %v6924_v61   ;;  %6996 = vst [vmem:[#allocation2 + $0xf8] sm:$0xff] %v6959_v30   ;;  %v8012_v39 = vld [vmem:[#allocation2 + $0xa0] sm:$0xff]   ;;  %v8013_v40 = vld [vmem:[#allocation2 + $0xa8] sm:$0xff]  }
  0x92   : > { %v8018_v42 = vld [vmem:[#allocation2 + $0xb8] sm:$0xff]  }
  0x93   : > { %2310 = vmatpush1.bf16.msra.mxu0 %v8000_v19  ;;  %v460_v19 = vld [vmem:[%s8518_s21 + $0x1c8] sm:$0xff] }
  0x94   : > { %2311 = vmatprep.subr.bf16.mxu0 %v8009_v34  ;;  %v6949_v20 = vpack.c.bf16 %v460_v19, %v459_v18 }
  0x95   : > { %1211 = vmatmul.mubr.bf16.gmra.mxu0 %v7983_v16 }
  0x96   : > { %1650 = vmatmul.mubr.bf16.gmra.mxu1 %v7982_v7  ;;  %1220 = vmatprep.mubr.bf16.mxu0 %v10603_v0  ;;  %v8021_v7 = vld [vmem:[#allocation6 + $0x110] ss:$8 sps:$4 sm:$0xff]   ;;  %6994 = vst [vmem:[#allocation2 + $0xe8] sm:$0xff] %v6949_v20  }
  0x97   : > { %1659 = vmatprep.mubr.bf16.mxu1 %v10603_v0  ;;  %2312 = vmatpush1.bf16.msra.mxu0 %v8007_v33  ;;  %v466_v33 = vld [vmem:[%s8518_s21 + $0x1f8] sm:$0xff] }
  0x98   : > { %2313 = vmatprep.subr.bf16.mxu0 %v8016_v53  ;;  %v6964_v34 = vpack.c.bf16 %v466_v33, %v465_v32  ;;  %v8019_v43 = vld [vmem:[#allocation2 + $0xc0] sm:$0xff]   ;;  %v8024_v53 = vld [vmem:[#allocation2 + $0xd0] sm:$0xff]  }
  0x9a   : > { %6997 = vst [vmem:[#allocation2 + $0x100] sm:$0xff] %v6964_v34  }
  0x9b   : > { %2314 = vmatpush1.bf16.msra.mxu0 %v8014_v52 }
  0x9c   : > { %2315 = vmatprep.subr.bf16.mxu0 %v8023_v8 }
  0x9d   : > { %1221 = vmatmul.mubr.bf16.gmra.mxu0 %v7984_v44  ;;  %v8027_v29 = vld [vmem:[#allocation2 + $0xe8] sm:$0xff]  }
  0x9e   : > { %1660 = vmatmul.mubr.bf16.gmra.mxu1 %v7983_v16  ;;  %1230 = vmatprep.mubr.bf16.mxu0 %v10603_v0  ;;  %v6944_v16 = vpack.c.bf16 %v458_v15, %v457_v14 }
  0x9f   : > { %1669 = vmatprep.mubr.bf16.mxu1 %v10603_v0  ;;  %2316 = vmatpush1.bf16.msra.mxu0 %v8021_v7 }
  0xa0   : > { %6993 = vst [vmem:[#allocation2 + $0xe0] sm:$0xff] %v6944_v16   ;;  %2317 = vmatprep.subr.bf16.mxu0 %v8030_v26 }
  0xa3   : > { %2318 = vmatpush1.bf16.msra.mxu0 %v8028_v25 }
  0xa5   : > { %1231 = vmatmul.mubr.bf16.gmra.mxu0 %v7985_v47 }
  0xa6   : > { %1670 = vmatmul.mubr.bf16.gmra.mxu1 %v7984_v44  ;;  %1240 = vmatprep.mubr.bf16.mxu0 %v10603_v0  ;;  %v8020_v44 = vld [vmem:[#allocation2 + $0xc8] sm:$0xff]  }
  0xa7   : > { %1679 = vmatprep.mubr.bf16.mxu1 %v10603_v0  ;;  %v8026_v16 = vld [vmem:[#allocation2 + $0xe0] sm:$0xff]  }
  0xad   : > { %1241 = vmatmul.mubr.bf16.gmra.mxu0 %v7989_v54 }
  0xae   : > { %1680 = vmatmul.mubr.bf16.gmra.mxu1 %v7985_v47  ;;  %1250 = vmatprep.mubr.bf16.mxu0 %v10603_v0 }
  0xaf   : > { %1689 = vmatprep.mubr.bf16.mxu1 %v10603_v0 }
  0xb5   : > { %1251 = vmatmul.mubr.bf16.gmra.mxu0 %v7990_v58 }
  0xb6   : > { %1690 = vmatmul.mubr.bf16.gmra.mxu1 %v7989_v54  ;;  %1260 = vmatprep.mubr.bf16.mxu0 %v10603_v0 }
  0xb7   : > { %1699 = vmatprep.mubr.bf16.mxu1 %v10603_v0 }
  0xbd   : > { %1261 = vmatmul.mubr.bf16.gmra.mxu0 %v7991_v62 }
  0xbe   : > { %1700 = vmatmul.mubr.bf16.gmra.mxu1 %v7990_v58  ;;  %1270 = vmatprep.mubr.bf16.mxu0 %v10603_v0 }
  0xbf   : > { %1709 = vmatprep.mubr.bf16.mxu1 %v10603_v0 }
  0xc5   : > { %1271 = vmatmul.mubr.bf16.gmra.mxu0 %v7992_v3 }
  0xc6   : > { %1710 = vmatmul.mubr.bf16.gmra.mxu1 %v7991_v62  ;;  %1280 = vmatprep.mubr.bf16.mxu0 %v10603_v0 }
  0xc7   : > { %1719 = vmatprep.mubr.bf16.mxu1 %v10603_v0 }
  0xcd   : > { %1281 = vmatmul.mubr.bf16.gmra.mxu0 %v7996_v9 }
  0xce   : > { %1720 = vmatmul.mubr.bf16.gmra.mxu1 %v7992_v3  ;;  %1290 = vmatprep.mubr.bf16.mxu0 %v10603_v0  ;;  %v8025_v3 = vld [vmem:[#allocation2 + $0xd8] sm:$0xff]  }
  0xcf   : > { %1729 = vmatprep.mubr.bf16.mxu1 %v10603_v0 }
  0xd5   : > { %1291 = vmatmul.mubr.bf16.gmra.mxu0 %v7997_v13 }
  0xd6   : > { %1730 = vmatmul.mubr.bf16.gmra.mxu1 %v7996_v9  ;;  %1300 = vmatprep.mubr.bf16.mxu0 %v10603_v0 }
  0xd7   : > { %1739 = vmatprep.mubr.bf16.mxu1 %v10603_v0 }
  0xdd   : > { %1301 = vmatmul.mubr.bf16.gmra.mxu0 %v7998_v17 }
  0xde   : > { %1740 = vmatmul.mubr.bf16.gmra.mxu1 %v7997_v13  ;;  %1310 = vmatprep.mubr.bf16.mxu0 %v10603_v0 }
  0xdf   : > { %1749 = vmatprep.mubr.bf16.mxu1 %v10603_v0 }
  0xe5   : > { %1311 = vmatmul.mubr.bf16.gmra.mxu0 %v7999_v21 }
  0xe6   : > { %1750 = vmatmul.mubr.bf16.gmra.mxu1 %v7998_v17  ;;  %1320 = vmatprep.mubr.bf16.mxu0 %v10603_v0 }
  0xe7   : > { %1759 = vmatprep.mubr.bf16.mxu1 %v10603_v0 }
  0xed   : > { %1321 = vmatmul.mubr.bf16.gmra.mxu0 %v8003_v27 }
  0xee   : > { %1760 = vmatmul.mubr.bf16.gmra.mxu1 %v7999_v21  ;;  %1330 = vmatprep.mubr.bf16.mxu0 %v10603_v0 }
  0xef   : > { %1769 = vmatprep.mubr.bf16.mxu1 %v10603_v0 }
  0xf5   : > { %1331 = vmatmul.mubr.bf16.gmra.mxu0 %v8004_v31 }
  0xf6   : > { %1770 = vmatmul.mubr.bf16.gmra.mxu1 %v8003_v27  ;;  %1340 = vmatprep.mubr.bf16.mxu0 %v10603_v0 }
  0xf7   : > { %1779 = vmatprep.mubr.bf16.mxu1 %v10603_v0 }
  0xfd   : > { %1341 = vmatmul.mubr.bf16.gmra.mxu0 %v8005_v35 }
  0xfe   : > { %1780 = vmatmul.mubr.bf16.gmra.mxu1 %v8004_v31  ;;  %1350 = vmatprep.mubr.bf16.mxu0 %v10603_v0 }
  0xff   : > { %1789 = vmatprep.mubr.bf16.mxu1 %v10603_v0 }
 0x105   : > { %1351 = vmatmul.mubr.bf16.gmra.mxu0 %v8006_v36 }
 0x106   : > { %1790 = vmatmul.mubr.bf16.gmra.mxu1 %v8005_v35  ;;  %1360 = vmatprep.mubr.bf16.mxu0 %v10603_v0 }
 0x107   : > { %1799 = vmatprep.mubr.bf16.mxu1 %v10603_v0 }
 0x10d   : > { %1361 = vmatmul.mubr.bf16.gmra.mxu0 %v8010_v37 }
 0x10e   : > { %1800 = vmatmul.mubr.bf16.gmra.mxu1 %v8006_v36  ;;  %1370 = vmatprep.mubr.bf16.mxu0 %v10603_v0 }
 0x10f   : > { %1809 = vmatprep.mubr.bf16.mxu1 %v10603_v0 }
 0x115   : > { %1371 = vmatmul.mubr.bf16.gmra.mxu0 %v8011_v38 }
 0x116   : > { %1810 = vmatmul.mubr.bf16.gmra.mxu1 %v8010_v37  ;;  %1380 = vmatprep.mubr.bf16.mxu0 %v10603_v0  ;;  %v8031_v37 = vld [vmem:[#allocation2 + $0xf0] sm:$0xff]  }
 0x117   : > { %1819 = vmatprep.mubr.bf16.mxu1 %v10603_v0 }
 0x11d   : > { %1381 = vmatmul.mubr.bf16.gmra.mxu0 %v8012_v39 }
 0x11e   : > { %1820 = vmatmul.mubr.bf16.gmra.mxu1 %v8011_v38  ;;  %1390 = vmatprep.mubr.bf16.mxu0 %v10603_v0 }
 0x11f   : > { %1829 = vmatprep.mubr.bf16.mxu1 %v10603_v0 }
 0x125   : > { %1391 = vmatmul.mubr.bf16.gmra.mxu0 %v8013_v40 }
 0x126   : > { %1830 = vmatmul.mubr.bf16.gmra.mxu1 %v8012_v39  ;;  %1400 = vmatprep.mubr.bf16.mxu0 %v10603_v0 }
 0x127   : > { %1839 = vmatprep.mubr.bf16.mxu1 %v10603_v0 }
 0x12d   : > { %1401 = vmatmul.mubr.bf16.gmra.mxu0 %v8017_v41 }
 0x12e   : > { %1840 = vmatmul.mubr.bf16.gmra.mxu1 %v8013_v40  ;;  %1410 = vmatprep.mubr.bf16.mxu0 %v10603_v0 }
 0x12f   : > { %1849 = vmatprep.mubr.bf16.mxu1 %v10603_v0 }
 0x135   : > { %1411 = vmatmul.mubr.bf16.gmra.mxu0 %v8018_v42 }
 0x136   : > { %1850 = vmatmul.mubr.bf16.gmra.mxu1 %v8017_v41  ;;  %1420 = vmatprep.mubr.bf16.mxu0 %v10603_v0 }
 0x137   : > { %1859 = vmatprep.mubr.bf16.mxu1 %v10603_v0 }
 0x13d   : > { %1421 = vmatmul.mubr.bf16.gmra.mxu0 %v8019_v43 }
 0x13e   : > { %1860 = vmatmul.mubr.bf16.gmra.mxu1 %v8018_v42  ;;  %1430 = vmatprep.mubr.bf16.mxu0 %v10603_v0  ;;  %v8032_v42 = vld [vmem:[#allocation2 + $0xf8] sm:$0xff]  }
 0x13f   : > { %1869 = vmatprep.mubr.bf16.mxu1 %v10603_v0 }
 0x145   : > { %v1192_v45 = vpop.f32.mrf.mxu0  ;;  %1431 = vmatmul.mubr.bf16.gmra.mxu0 %v8020_v44 }
 0x146   : > { %v1631_v46 = vpop.f32.mrf.mxu1  ;;  %1870 = vmatmul.mubr.bf16.gmra.mxu1 %v8019_v43  ;;  %1440 = vmatprep.mubr.bf16.mxu0 %v10603_v0 }
 0x147   : > { %v8650_v47 = vadd.f32 %v1631_v46, %v1192_v45  ;;  %1879 = vmatprep.mubr.bf16.mxu1 %v10603_v0  ;;  %v1194_v48 = vpop.f32.mrf.mxu0 }
 0x148   : > { %v1633_v49 = vpop.f32.mrf.mxu1 }
 0x149   : > { %v8654_v50 = vadd.f32 %v1633_v49, %v1194_v48  ;;  %v1196_v51 = vpop.f32.mrf.mxu0  ;;  %v8033_v48 = vld [vmem:[#allocation2 + $0x100] sm:$0xff]  }
 0x14a   : > { %v1635_v52 = vpop.f32.mrf.mxu1 }
 0x14b   : > { %v8656_v54 = vadd.f32 %v1635_v52, %v1196_v51  ;;  %v1198_v55 = vpop.f32.mrf.mxu0 }
 0x14c   : > { %v1637_v56 = vpop.f32.mrf.mxu1 }
 0x14d   : > { %v8658_v57 = vadd.f32 %v1637_v56, %v1198_v55  ;;  %v1202_v58 = vpop.f32.mrf.mxu0  ;;  %1441 = vmatmul.mubr.bf16.gmra.mxu0 %v8024_v53  ;;  %v8034_v56 = vld [vmem:[#allocation2 + $0x10] sm:$0xff]  }
 0x14e   : > { %v1641_v59 = vpop.f32.mrf.mxu1  ;;  %1880 = vmatmul.mubr.bf16.gmra.mxu1 %v8020_v44  ;;  %1450 = vmatprep.mubr.bf16.mxu0 %v10603_v0 }
 0x14f   : > { %v8660_v60 = vadd.f32 %v1641_v59, %v1202_v58  ;;  %1889 = vmatprep.mubr.bf16.mxu1 %v10603_v0  ;;  %v1204_v61 = vpop.f32.mrf.mxu0 }
 0x150   : > { %v1643_v62 = vpop.f32.mrf.mxu1 }
 0x151   : > { %v8664_v63 = vadd.f32 %v1643_v62, %v1204_v61  ;;  %v1206_v1 = vpop.f32.mrf.mxu0 }
 0x152   : > { %v1645_v2 = vpop.f32.mrf.mxu1 }
 0x153   : > { %v8666_v4 = vadd.f32 %v1645_v2, %v1206_v1  ;;  %v1208_v5 = vpop.f32.mrf.mxu0 }
 0x154   : > { %v1647_v6 = vpop.f32.mrf.mxu1 }
 0x155   : > { %v8668_v7 = vadd.f32 %v1647_v6, %v1208_v5  ;;  %v1212_v8 = vpop.f32.mrf.mxu0  ;;  %1451 = vmatmul.mubr.bf16.gmra.mxu0 %v8025_v3 }
 0x156   : > { %v1651_v9 = vpop.f32.mrf.mxu1  ;;  %1890 = vmatmul.mubr.bf16.gmra.mxu1 %v8024_v53  ;;  %1460 = vmatprep.mubr.bf16.mxu0 %v10603_v0 }
 0x157   : > { %v8670_v10 = vadd.f32 %v1651_v9, %v1212_v8  ;;  %1899 = vmatprep.mubr.bf16.mxu1 %v10603_v0  ;;  %v1214_v11 = vpop.f32.mrf.mxu0 }
 0x158   : > { %v1653_v12 = vpop.f32.mrf.mxu1 }
 0x159   : > { %v8674_v13 = vadd.f32 %v1653_v12, %v1214_v11  ;;  %v1216_v14 = vpop.f32.mrf.mxu0 }
 0x15a   : > { %v1655_v15 = vpop.f32.mrf.mxu1 }
 0x15b   : > { %v8676_v17 = vadd.f32 %v1655_v15, %v1216_v14  ;;  %v1218_v18 = vpop.f32.mrf.mxu0  ;;  %v8036_v14 = vld [vmem:[#allocation2 + $0x20] sm:$0xff]  }
 0x15c   : > { %v1657_v19 = vpop.f32.mrf.mxu1 }
 0x15d   : > { %v8678_v20 = vadd.f32 %v1657_v19, %v1218_v18  ;;  %v1222_v21 = vpop.f32.mrf.mxu0  ;;  %1461 = vmatmul.mubr.bf16.gmra.mxu0 %v8026_v16 }
 0x15e   : > { %v1661_v22 = vpop.f32.mrf.mxu1  ;;  %1900 = vmatmul.mubr.bf16.gmra.mxu1 %v8025_v3  ;;  %1470 = vmatprep.mubr.bf16.mxu0 %v10603_v0  ;;  %v8035_v3 = vld [vmem:[#allocation2 + $0x18] sm:$0xff]  }
 0x15f   : > { %v8680_v23 = vadd.f32 %v1661_v22, %v1222_v21  ;;  %1909 = vmatprep.mubr.bf16.mxu1 %v10603_v0  ;;  %v1224_v24 = vpop.f32.mrf.mxu0 }
 0x160   : > { %v1663_v25 = vpop.f32.mrf.mxu1 }
 0x161   : > { %v8684_v26 = vadd.f32 %v1663_v25, %v1224_v24  ;;  %v1226_v27 = vpop.f32.mrf.mxu0  ;;  %v8037_v24 = vld [vmem:[#allocation2 + $0x28] sm:$0xff]  }
 0x162   : > { %v1665_v28 = vpop.f32.mrf.mxu1 }
 0x163   : > { %v8686_v30 = vadd.f32 %v1665_v28, %v1226_v27  ;;  %v1228_v31 = vpop.f32.mrf.mxu0 }
 0x164   : > { %v1667_v32 = vpop.f32.mrf.mxu1 }
 0x165   : > { %v8688_v33 = vadd.f32 %v1667_v32, %v1228_v31  ;;  %v8690_v34 = vpop.f32.mrf.mxu0  ;;  %1471 = vmatmul.mubr.bf16.gmra.mxu0 %v8027_v29 }
 0x166   : > { %1910 = vmatmul.mubr.bf16.gmra.mxu1 %v8026_v16  ;;  %1480 = vmatprep.mubr.bf16.mxu0 %v10603_v0  ;;  %v8725_v53 = vpop.f32.mrf.mxu1 }
 0x167   : > { %1919 = vmatprep.mubr.bf16.mxu1 %v10603_v0  ;;  %v8694_v35 = vpop.f32.mrf.mxu0 }
 0x168   : > { %v8731_v59 = vpop.f32.mrf.mxu1 }
 0x169   : > { %v8696_v36 = vpop.f32.mrf.mxu0 }
 0x16a   : > { %v8738_v1 = vpop.f32.mrf.mxu1 }
 0x16b   : > { %v8698_v38 = vpop.f32.mrf.mxu0 }
 0x16c   : > { %v8744_v6 = vpop.f32.mrf.mxu1 }
 0x16d   : > { %v8700_v39 = vpop.f32.mrf.mxu0  ;;  %1481 = vmatmul.mubr.bf16.gmra.mxu0 %v8031_v37 }
 0x16e   : > { %1920 = vmatmul.mubr.bf16.gmra.mxu1 %v8027_v29  ;;  %1490 = vmatprep.mubr.bf16.mxu0 %v10603_v0  ;;  %v8751_v11 = vpop.f32.mrf.mxu1 }
 0x16f   : > { %1929 = vmatprep.mubr.bf16.mxu1 %v10603_v0  ;;  %v8704_v40 = vpop.f32.mrf.mxu0 }
 0x170   : > { %v8757_v16 = vpop.f32.mrf.mxu1 }
 0x171   : > { %v8706_v41 = vpop.f32.mrf.mxu0 }
 0x172   : > { %v8764_v21 = vpop.f32.mrf.mxu1 }
 0x173   : > { %v8708_v43 = vpop.f32.mrf.mxu0 }
 0x174   : > { %v8770_v27 = vpop.f32.mrf.mxu1 }
 0x175   : > { %v8710_v44 = vpop.f32.mrf.mxu0  ;;  %1491 = vmatmul.mubr.bf16.gmra.mxu0 %v8032_v42 }
 0x176   : > { %1930 = vmatmul.mubr.bf16.gmra.mxu1 %v8031_v37  ;;  %1500 = vmatprep.mubr.bf16.mxu0 %v10603_v0  ;;  %v8777_v31 = vpop.f32.mrf.mxu1  ;;  %v8038_v37 = vld [vmem:[#allocation2 + $0x30] sm:$0xff]  }
 0x177   : > { %1939 = vmatprep.mubr.bf16.mxu1 %v10603_v0  ;;  %v8714_v45 = vpop.f32.mrf.mxu0 }
 0x179   : > { %v8716_v46 = vpop.f32.mrf.mxu0 }
 0x17b   : > { %v8718_v49 = vpop.f32.mrf.mxu0 }
 0x17d   : > { %v8720_v51 = vpop.f32.mrf.mxu0  ;;  %1501 = vmatmul.mubr.bf16.gmra.mxu0 %v8033_v48  ;;  %v8783_v48 = vpop.f32.mrf.mxu1 }
 0x17e   : > { %1940 = vmatmul.mubr.bf16.gmra.mxu1 %v8032_v42  ;;  %2335 = vmatprep.mubr.bf16.mxu0 %v10603_v0 }
 0x17f   : > { %v8723_v52 = vpop.f32.mrf.mxu0 }
 0x181   : > { %v8727_v55 = vpop.f32.mrf.mxu0 }
 0x182   : > { %10648 = vst [vmem:[#allocation14_spill] sm:$0xff] %v8727_v55  ;;  %v8081_v55 = vld [vmem:[#allocation8 + $0x130] sm:$0xff]  }
 0x183   : > { %v8729_v58 = vpop.f32.mrf.mxu0 }
 0x184   : > { %10649 = vst [vmem:[#allocation15_spill] sm:$0xff] %v8729_v58 }
 0x185   : > { %v8733_v61 = vpop.f32.mrf.mxu0  ;;  %2336 = vmatmul.mubr.bf16.vlgmr.msra.gmra.mxu0 %v8034_v56 }
 0x186   : > { %10650 = vst [vmem:[#allocation16_spill] sm:$0xff] %v8733_v61  ;;  %2345 = vmatprep.mubr.bf16.mxu0 %v10603_v0  ;;  %v8076_v61 = vld [vmem:[#allocation8 + $0x98] sm:$0xff]  }
 0x187   : > { %v8736_v62 = vpop.f32.mrf.mxu0 }
 0x188   : > { %10651 = vst [vmem:[#allocation17_spill] sm:$0xff] %v8736_v62 }
 0x189   : > { %v8740_v2 = vpop.f32.mrf.mxu0 }
 0x18a   : > { %10652 = vst [vmem:[#allocation18_spill] sm:$0xff] %v8740_v2 }
 0x18b   : > { %v8742_v5 = vpop.f32.mrf.mxu0 }
 0x18c   : > { %10653 = vst [vmem:[#allocation19_spill] sm:$0xff] %v8742_v5 }
 0x18d   : > { %v8746_v8 = vpop.f32.mrf.mxu0  ;;  %2346 = vmatmul.mubr.bf16.gmra.mxu0 %v8035_v3 }
 0x18e   : > { %10654 = vst [vmem:[#allocation20_spill] sm:$0xff] %v8746_v8  ;;  %2355 = vmatprep.mubr.bf16.mxu0 %v10603_v0 }
 0x18f   : > { %v8749_v9 = vpop.f32.mrf.mxu0 }
 0x190   : > { %10655 = vst [vmem:[#allocation21_spill] sm:$0xff] %v8749_v9 }
 0x191   : > { %v8753_v12 = vpop.f32.mrf.mxu0 }
 0x192   : > { %10656 = vst [vmem:[#allocation22_spill] sm:$0xff] %v8753_v12 }
 0x193   : > { %v8755_v15 = vpop.f32.mrf.mxu0 }
 0x194   : > { %10657 = vst [vmem:[#allocation23_spill] sm:$0xff] %v8755_v15 }
 0x195   : > { %v8759_v18 = vpop.f32.mrf.mxu0  ;;  %2356 = vmatmul.mubr.bf16.gmra.mxu0 %v8036_v14  ;;  %v8790_v14 = vpop.f32.mrf.mxu1 }
 0x196   : > { %10658 = vst [vmem:[#allocation24_spill] sm:$0xff] %v8759_v18  ;;  %2365 = vmatprep.mubr.bf16.mxu0 %v10603_v0 }
 0x197   : > { %v8762_v19 = vpop.f32.mrf.mxu0 }
 0x198   : > { %10659 = vst [vmem:[#allocation25_spill] sm:$0xff] %v8762_v19 }
 0x199   : > { %v8766_v22 = vpop.f32.mrf.mxu0 }
 0x19a   : > { %10660 = vst [vmem:[#allocation26_spill] sm:$0xff] %v8766_v22 }
 0x19b   : > { %v8768_v25 = vpop.f32.mrf.mxu0 }
 0x19c   : > { %10661 = vst [vmem:[#allocation27_spill] sm:$0xff] %v8768_v25 }
 0x19d   : > { %v8772_v28 = vpop.f32.mrf.mxu0  ;;  %2366 = vmatmul.mubr.bf16.gmra.mxu0 %v8037_v24 }
 0x19e   : > { %10662 = vst [vmem:[#allocation28_spill] sm:$0xff] %v8772_v28  ;;  %2375 = vmatprep.mubr.bf16.mxu0 %v10603_v0 }
 0x19f   : > { %v8775_v29 = vpop.f32.mrf.mxu0 }
 0x1a0   : > { %10663 = vst [vmem:[#allocation29_spill] sm:$0xff] %v8775_v29  ;;  %v8039_v29 = vld [vmem:[#allocation2 + $0x38] sm:$0xff]  }
 0x1a1   : > { %v8779_v32 = vpop.f32.mrf.mxu0 }
 0x1a2   : > { %10664 = vst [vmem:[#allocation30_spill] sm:$0xff] %v8779_v32  ;;  %v8796_v32 = vpop.f32.mrf.mxu1 }
 0x1a3   : > { %v8781_v42 = vpop.f32.mrf.mxu0 }
 0x1a4   : > { %10665 = vst [vmem:[#allocation31_spill] sm:$0xff] %v8781_v42 }
 0x1a5   : > { %v8785_v56 = vpop.f32.mrf.mxu0  ;;  %2376 = vmatmul.mubr.bf16.gmra.mxu0 %v8038_v37  ;;  %v8803_v37 = vpop.f32.mrf.mxu1 }
 0x1a6   : > { %10666 = vst [vmem:[#allocation32_spill] sm:$0xff] %v8785_v56  ;;  %2385 = vmatprep.mubr.bf16.mxu0 %v10603_v0 }
 0x1a7   : > { %v8788_v3 = vpop.f32.mrf.mxu0 }
 0x1a8   : > { %10667 = vst [vmem:[#allocation33_spill] sm:$0xff] %v8788_v3  ;;  %v8040_v3 = vld [vmem:[#allocation2 + $0x40] sm:$0xff]  }
 0x1a9   : > { %v8792_v24 = vpop.f32.mrf.mxu0 }
 0x1aa   : > { %10668 = vst [vmem:[#allocation34_spill] sm:$0xff] %v8792_v24  ;;  %v8809_v24 = vpop.f32.mrf.mxu1 }
 0x1ab   : > { %v8794_v25 = vpop.f32.mrf.mxu0 }
 0x1ac   : > { %10669 = vst [vmem:[#allocation35_spill] sm:$0xff] %v8794_v25 }
 0x1ad   : > { %v8798_v28 = vpop.f32.mrf.mxu0  ;;  %2386 = vmatmul.mubr.bf16.gmra.mxu0 %v8039_v29  ;;  %v8816_v29 = vpop.f32.mrf.mxu1 }
 0x1ae   : > { %10670 = vst [vmem:[#allocation36_spill] sm:$0xff] %v8798_v28  ;;  %2395 = vmatprep.mubr.bf16.mxu0 %v10603_v0  ;;  %10676 = vst [vmem:[#allocation42_spill] sm:$0xff] %v8816_v29  ;;  %v8079_v29 = vld [vmem:[#allocation8 + $0x170] sm:$0xff]  }
 0x1af   : > { %v8801_v56 = vpop.f32.mrf.mxu0 }
 0x1b0   : > { %10671 = vst [vmem:[#allocation37_spill] sm:$0xff] %v8801_v56  ;;  %v8041_v56 = vld [vmem:[#allocation2 + $0x48] sm:$0xff]  }
 0x1b1   : > { %v8805_v42 = vpop.f32.mrf.mxu0 }
 0x1b2   : > { %10672 = vst [vmem:[#allocation38_spill] sm:$0xff] %v8805_v42  ;;  %v8822_v42 = vpop.f32.mrf.mxu1 }
 0x1b3   : > { %v8807_v22 = vpop.f32.mrf.mxu0  ;;  %10679 = vst [vmem:[#allocation45_spill] sm:$0xff] %v8822_v42 }
 0x1b4   : > { %10673 = vst [vmem:[#allocation39_spill] sm:$0xff] %v8807_v22 }
 0x1b5   : > { %v8811_v19 = vpop.f32.mrf.mxu0  ;;  %2396 = vmatmul.mubr.bf16.gmra.mxu0 %v8040_v3  ;;  %v8829_v3 = vpop.f32.mrf.mxu1 }
 0x1b6   : > { %10674 = vst [vmem:[#allocation40_spill] sm:$0xff] %v8811_v19  ;;  %2405 = vmatprep.mubr.bf16.mxu0 %v10603_v0  ;;  %10682 = vst [vmem:[#allocation48_spill] sm:$0xff] %v8829_v3  ;;  %v8059_v3 = vld [vmem:[#allocation2 + $0xd8] sm:$0xff]  }
 0x1b7   : > { %v8814_v25 = vpop.f32.mrf.mxu0 }
 0x1b8   : > { %10675 = vst [vmem:[#allocation41_spill] sm:$0xff] %v8814_v25  ;;  %v8042_v25 = vld [vmem:[#allocation2 + $0x50] sm:$0xff]  }
 0x1b9   : > { %v8818_v28 = vpop.f32.mrf.mxu0 }
 0x1ba   : > { %10677 = vst [vmem:[#allocation43_spill] sm:$0xff] %v8818_v28  ;;  %v8835_v28 = vpop.f32.mrf.mxu1 }
 0x1bb   : > { %v8820_v18 = vpop.f32.mrf.mxu0  ;;  %10685 = vst [vmem:[#allocation51_spill] sm:$0xff] %v8835_v28  ;;  %v8058_v28 = vld [vmem:[#allocation2 + $0xd0] sm:$0xff]  }
 0x1bc   : > { %10678 = vst [vmem:[#allocation44_spill] sm:$0xff] %v8820_v18 }
 0x1bd   : > { %v8824_v15 = vpop.f32.mrf.mxu0  ;;  %2406 = vmatmul.mubr.bf16.gmra.mxu0 %v8041_v56  ;;  %v8842_v56 = vpop.f32.mrf.mxu1 }
 0x1be   : > { %10680 = vst [vmem:[#allocation46_spill] sm:$0xff] %v8824_v15  ;;  %2415 = vmatprep.mubr.bf16.mxu0 %v10603_v0  ;;  %10688 = vst [vmem:[#allocation54_spill] sm:$0xff] %v8842_v56 }
 0x1bf   : > { %v8827_v19 = vpop.f32.mrf.mxu0 }
 0x1c0   : > { %10681 = vst [vmem:[#allocation47_spill] sm:$0xff] %v8827_v19  ;;  %v8043_v19 = vld [vmem:[#allocation2 + $0x58] sm:$0xff]  }
 0x1c1   : > { %v8831_v22 = vpop.f32.mrf.mxu0 }
 0x1c2   : > { %10683 = vst [vmem:[#allocation49_spill] sm:$0xff] %v8831_v22  ;;  %v8848_v22 = vpop.f32.mrf.mxu1 }
 0x1c3   : > { %v8833_v12 = vpop.f32.mrf.mxu0  ;;  %10691 = vst [vmem:[#allocation57_spill] sm:$0xff] %v8848_v22 }
 0x1c4   : > { %10684 = vst [vmem:[#allocation50_spill] sm:$0xff] %v8833_v12 }
 0x1c5   : > { %v8837_v9 = vpop.f32.mrf.mxu0  ;;  %2416 = vmatmul.mubr.bf16.gmra.mxu0 %v8042_v25  ;;  %v8855_v25 = vpop.f32.mrf.mxu1 }
 0x1c6   : > { %10686 = vst [vmem:[#allocation52_spill] sm:$0xff] %v8837_v9  ;;  %2425 = vmatprep.mubr.bf16.mxu0 %v10603_v0  ;;  %10694 = vst [vmem:[#allocation60_spill] sm:$0xff] %v8855_v25  ;;  %v8045_v25 = vld [vmem:[#allocation2 + $0x68] sm:$0xff]  }
 0x1c7   : > { %v8840_v18 = vpop.f32.mrf.mxu0 }
 0x1c8   : > { %10687 = vst [vmem:[#allocation53_spill] sm:$0xff] %v8840_v18  ;;  %v8044_v18 = vld [vmem:[#allocation2 + $0x60] sm:$0xff]  }
 0x1c9   : > { %v8844_v15 = vpop.f32.mrf.mxu0 }
 0x1ca   : > { %10689 = vst [vmem:[#allocation55_spill] sm:$0xff] %v8844_v15  ;;  %v8861_v15 = vpop.f32.mrf.mxu1 }
 0x1cb   : > { %v8846_v5 = vpop.f32.mrf.mxu0  ;;  %10697 = vst [vmem:[#allocation63_spill] sm:$0xff] %v8861_v15 }
 0x1cc   : > { %10690 = vst [vmem:[#allocation56_spill] sm:$0xff] %v8846_v5  ;;  %v8060_v5 = vld [vmem:[#allocation8 + $0xf8] sm:$0xff]  }
 0x1cd   : > { %v8850_v8 = vpop.f32.mrf.mxu0  ;;  %2426 = vmatmul.mubr.bf16.gmra.mxu0 %v8043_v19  ;;  %v8868_v19 = vpop.f32.mrf.mxu1  ;;  %7030 = vmatprep.subr.bf16.mxu1 %v8060_v5 }
 0x1ce   : > { %10692 = vst [vmem:[#allocation58_spill] sm:$0xff] %v8850_v8  ;;  %2435 = vmatprep.mubr.bf16.mxu0 %v10603_v0  ;;  %10700 = vst [vmem:[#allocation66_spill] sm:$0xff] %v8868_v19  ;;  %v8046_v19 = vld [vmem:[#allocation2 + $0x70] sm:$0xff]  }
 0x1cf   : > { %v8853_v9 = vpop.f32.mrf.mxu0 }
 0x1d0   : > { %10693 = vst [vmem:[#allocation59_spill] sm:$0xff] %v8853_v9  ;;  %v8061_v9 = vld [vmem:[#allocation8 + $0xb8] sm:$0xff]  }
 0x1d1   : > { %v8857_v12 = vpop.f32.mrf.mxu0  ;;  %7031 = vmatpush3.bf16.msra.mxu1 %v8061_v9 }
 0x1d2   : > { %10695 = vst [vmem:[#allocation61_spill] sm:$0xff] %v8857_v12 }
 0x1d3   : > { %v8859_v56 = vpop.f32.mrf.mxu0 }
 0x1d4   : > { %10696 = vst [vmem:[#allocation62_spill] sm:$0xff] %v8859_v56  ;;  %v8874_v56 = vpop.f32.mrf.mxu1 }
 0x1d5   : > { %v8863_v2 = vpop.f32.mrf.mxu0  ;;  %2436 = vmatmul.mubr.bf16.gmra.mxu0 %v8044_v18  ;;  %10703 = vst [vmem:[#allocation69_spill] sm:$0xff] %v8874_v56 }
 0x1d6   : > { %10698 = vst [vmem:[#allocation64_spill] sm:$0xff] %v8863_v2  ;;  %2445 = vmatprep.mubr.bf16.mxu0 %v10603_v0 }
 0x1d7   : > { %v8866_v8 = vpop.f32.mrf.mxu0 }
 0x1d8   : > { %10699 = vst [vmem:[#allocation65_spill] sm:$0xff] %v8866_v8  ;;  %v8881_v8 = vpop.f32.mrf.mxu1 }
 0x1d9   : > { %v8870_v22 = vpop.f32.mrf.mxu0  ;;  %10706 = vst [vmem:[#allocation72_spill] sm:$0xff] %v8881_v8 }
 0x1da   : > { %10701 = vst [vmem:[#allocation67_spill] sm:$0xff] %v8870_v22  ;;  %v8887_v5 = vpop.f32.mrf.mxu1 }
 0x1db   : > { %v8872_v12 = vpop.f32.mrf.mxu0  ;;  %10709 = vst [vmem:[#allocation75_spill] sm:$0xff] %v8887_v5 }
 0x1dc   : > { %10702 = vst [vmem:[#allocation68_spill] sm:$0xff] %v8872_v12 }
 0x1dd   : > { %v8876_v15 = vpop.f32.mrf.mxu0  ;;  %2446 = vmatmul.mubr.bf16.gmra.mxu0 %v8045_v25  ;;  %v8894_v25 = vpop.f32.mrf.mxu1 }
 0x1de   : > { %10704 = vst [vmem:[#allocation70_spill] sm:$0xff] %v8876_v15  ;;  %2455 = vmatprep.mubr.bf16.mxu0 %v10603_v0  ;;  %10712 = vst [vmem:[#allocation78_spill] sm:$0xff] %v8894_v25 }
 0x1df   : > { %v8879_v18 = vpop.f32.mrf.mxu0 }
 0x1e0   : > { %10705 = vst [vmem:[#allocation71_spill] sm:$0xff] %v8879_v18  ;;  %v8047_v18 = vld [vmem:[#allocation2 + $0x78] sm:$0xff]  }
 0x1e1   : > { %v8883_v2 = vpop.f32.mrf.mxu0 }
 0x1e2   : > { %10707 = vst [vmem:[#allocation73_spill] sm:$0xff] %v8883_v2  ;;  %v8900_v2 = vpop.f32.mrf.mxu1 }
 0x1e3   : > { %v8885_v22 = vpop.f32.mrf.mxu0  ;;  %10715 = vst [vmem:[#allocation81_spill] sm:$0xff] %v8900_v2 }
 0x1e4   : > { %10708 = vst [vmem:[#allocation74_spill] sm:$0xff] %v8885_v22 }
 0x1e5   : > { %v8889_v12 = vpop.f32.mrf.mxu0  ;;  %2456 = vmatmul.mubr.bf16.gmra.mxu0 %v8046_v19  ;;  %v8907_v19 = vpop.f32.mrf.mxu1 }
 0x1e6   : > { %10710 = vst [vmem:[#allocation76_spill] sm:$0xff] %v8889_v12  ;;  %2465 = vmatprep.mubr.bf16.mxu0 %v10603_v0  ;;  %10718 = vst [vmem:[#allocation84_spill] sm:$0xff] %v8907_v19  ;;  %v8049_v19 = vld [vmem:[#allocation2 + $0x88] sm:$0xff]  }
 0x1e7   : > { %v8892_v9 = vpop.f32.mrf.mxu0 }
 0x1e8   : > { %10711 = vst [vmem:[#allocation77_spill] sm:$0xff] %v8892_v9  ;;  %v8048_v9 = vld [vmem:[#allocation2 + $0x80] sm:$0xff]  }
 0x1e9   : > { %v8896_v15 = vpop.f32.mrf.mxu0 }
 0x1ea   : > { %10713 = vst [vmem:[#allocation79_spill] sm:$0xff] %v8896_v15  ;;  %v8913_v15 = vpop.f32.mrf.mxu1 }
 0x1eb   : > { %v8898_v8 = vpop.f32.mrf.mxu0  ;;  %10721 = vst [vmem:[#allocation87_spill] sm:$0xff] %v8913_v15 }
 0x1ec   : > { %10714 = vst [vmem:[#allocation80_spill] sm:$0xff] %v8898_v8  ;;  %v8066_v8 = vld [vmem:[#allocation8 + $0xf0] sm:$0xff]  }
 0x1ed   : > { %v8902_v56 = vpop.f32.mrf.mxu0  ;;  %2466 = vmatmul.mubr.bf16.gmra.mxu0 %v8047_v18  ;;  %v8920_v18 = vpop.f32.mrf.mxu1  ;;  %7032 = vmatprep.subr.bf16.mxu1 %v8066_v8 }
 0x1ee   : > { %10716 = vst [vmem:[#allocation82_spill] sm:$0xff] %v8902_v56  ;;  %2475 = vmatprep.mubr.bf16.mxu0 %v10603_v0  ;;  %10724 = vst [vmem:[#allocation90_spill] sm:$0xff] %v8920_v18  ;;  %v8050_v18 = vld [vmem:[#allocation2 + $0x90] sm:$0xff]  }
 0x1ef   : > { %v8905_v12 = vpop.f32.mrf.mxu0 }
 0x1f0   : > { %10717 = vst [vmem:[#allocation83_spill] sm:$0xff] %v8905_v12  ;;  %v8067_v12 = vld [vmem:[#allocation8 + $0xb0] sm:$0xff]  }
 0x1f1   : > { %v8909_v22 = vpop.f32.mrf.mxu0  ;;  %7033 = vmatpush3.bf16.msra.mxu1 %v8067_v12 }
 0x1f2   : > { %10719 = vst [vmem:[#allocation85_spill] sm:$0xff] %v8909_v22 }
 0x1f3   : > { %v8911_v25 = vpop.f32.mrf.mxu0 }
 0x1f4   : > { %10720 = vst [vmem:[#allocation86_spill] sm:$0xff] %v8911_v25  ;;  %v8926_v25 = vpop.f32.mrf.mxu1 }
 0x1f5   : > { %v8915_v5 = vpop.f32.mrf.mxu0  ;;  %2476 = vmatmul.mubr.bf16.gmra.mxu0 %v8048_v9  ;;  %10727 = vst [vmem:[#allocation93_spill] sm:$0xff] %v8926_v25 }
 0x1f6   : > { %10722 = vst [vmem:[#allocation88_spill] sm:$0xff] %v8915_v5  ;;  %2485 = vmatprep.mubr.bf16.mxu0 %v10603_v0 }
 0x1f7   : > { %v8918_v56 = vpop.f32.mrf.mxu0 }
 0x1f8   : > { %10723 = vst [vmem:[#allocation89_spill] sm:$0xff] %v8918_v56  ;;  %v8933_v56 = vpop.f32.mrf.mxu1 }
 0x1f9   : > { %v8922_v2 = vpop.f32.mrf.mxu0  ;;  %10730 = vst [vmem:[#allocation96_spill] sm:$0xff] %v8933_v56 }
 0x1fa   : > { %10725 = vst [vmem:[#allocation91_spill] sm:$0xff] %v8922_v2  ;;  %v8939_v8 = vpop.f32.mrf.mxu1 }
 0x1fb   : > { %v8924_v22 = vpop.f32.mrf.mxu0  ;;  %10733 = vst [vmem:[#allocation99_spill] sm:$0xff] %v8939_v8 }
 0x1fc   : > { %10726 = vst [vmem:[#allocation92_spill] sm:$0xff] %v8924_v22 }
 0x1fd   : > { %v8928_v15 = vpop.f32.mrf.mxu0  ;;  %2486 = vmatmul.mubr.bf16.gmra.mxu0 %v8049_v19  ;;  %v8946_v19 = vpop.f32.mrf.mxu1 }
 0x1fe   : > { %10728 = vst [vmem:[#allocation94_spill] sm:$0xff] %v8928_v15  ;;  %2495 = vmatprep.mubr.bf16.mxu0 %v10603_v0  ;;  %10736 = vst [vmem:[#allocation102_spill] sm:$0xff] %v8946_v19 }
 0x1ff   : > { %v8931_v9 = vpop.f32.mrf.mxu0 }
 0x200   : > { %10729 = vst [vmem:[#allocation95_spill] sm:$0xff] %v8931_v9  ;;  %v8051_v9 = vld [vmem:[#allocation2 + $0x98] sm:$0xff]  }
 0x201   : > { %v8935_v5 = vpop.f32.mrf.mxu0 }
 0x202   : > { %10731 = vst [vmem:[#allocation97_spill] sm:$0xff] %v8935_v5  ;;  %v8952_v5 = vpop.f32.mrf.mxu1 }
 0x203   : > { %v8937_v2 = vpop.f32.mrf.mxu0  ;;  %10739 = vst [vmem:[#allocation105_spill] sm:$0xff] %v8952_v5 }
 0x204   : > { %10732 = vst [vmem:[#allocation98_spill] sm:$0xff] %v8937_v2 }
 0x205   : > { %v8941_v22 = vpop.f32.mrf.mxu0  ;;  %2496 = vmatmul.mubr.bf16.gmra.mxu0 %v8050_v18  ;;  %v8959_v18 = vpop.f32.mrf.mxu1 }
 0x206   : > { %10734 = vst [vmem:[#allocation100_spill] sm:$0xff] %v8941_v22  ;;  %2505 = vmatprep.mubr.bf16.mxu0 %v10603_v0  ;;  %10742 = vst [vmem:[#allocation108_spill] sm:$0xff] %v8959_v18  ;;  %v8053_v18 = vld [vmem:[#allocation2 + $0xa8] sm:$0xff]  }
 0x207   : > { %v8944_v12 = vpop.f32.mrf.mxu0 }
 0x208   : > { %10735 = vst [vmem:[#allocation101_spill] sm:$0xff] %v8944_v12  ;;  %v8052_v12 = vld [vmem:[#allocation2 + $0xa0] sm:$0xff]  }
 0x209   : > { %v8948_v15 = vpop.f32.mrf.mxu0 }
 0x20a   : > { %10737 = vst [vmem:[#allocation103_spill] sm:$0xff] %v8948_v15  ;;  %v8965_v15 = vpop.f32.mrf.mxu1 }
 0x20b   : > { %v8950_v56 = vpop.f32.mrf.mxu0  ;;  %10745 = vst [vmem:[#allocation111_spill] sm:$0xff] %v8965_v15 }
 0x20c   : > { %10738 = vst [vmem:[#allocation104_spill] sm:$0xff] %v8950_v56  ;;  %v8070_v56 = vld [vmem:[#allocation8 + $0xe8] sm:$0xff]  }
 0x20d   : > { %v8954_v25 = vpop.f32.mrf.mxu0  ;;  %2506 = vmatmul.mubr.bf16.gmra.mxu0 %v8051_v9  ;;  %v8972_v9 = vpop.f32.mrf.mxu1  ;;  %7034 = vmatprep.subr.bf16.mxu1 %v8070_v56 }
 0x20e   : > { %10740 = vst [vmem:[#allocation106_spill] sm:$0xff] %v8954_v25  ;;  %2515 = vmatprep.mubr.bf16.mxu0 %v10603_v0  ;;  %10748 = vst [vmem:[#allocation114_spill] sm:$0xff] %v8972_v9  ;;  %v8054_v9 = vld [vmem:[#allocation2 + $0xb0] sm:$0xff]  }
 0x20f   : > { %v8957_v22 = vpop.f32.mrf.mxu0 }
 0x210   : > { %10741 = vst [vmem:[#allocation107_spill] sm:$0xff] %v8957_v22  ;;  %v8071_v22 = vld [vmem:[#allocation8 + $0xa8] sm:$0xff]  }
 0x211   : > { %v8961_v2 = vpop.f32.mrf.mxu0  ;;  %7035 = vmatpush3.bf16.msra.mxu1 %v8071_v22 }
 0x212   : > { %10743 = vst [vmem:[#allocation109_spill] sm:$0xff] %v8961_v2 }
 0x213   : > { %v8963_v19 = vpop.f32.mrf.mxu0 }
 0x214   : > { %10744 = vst [vmem:[#allocation110_spill] sm:$0xff] %v8963_v19  ;;  %v8978_v19 = vpop.f32.mrf.mxu1 }
 0x215   : > { %v8967_v8 = vpop.f32.mrf.mxu0  ;;  %2516 = vmatmul.mubr.bf16.gmra.mxu0 %v8052_v12  ;;  %10751 = vst [vmem:[#allocation117_spill] sm:$0xff] %v8978_v19 }
 0x216   : > { %10746 = vst [vmem:[#allocation112_spill] sm:$0xff] %v8967_v8  ;;  %2525 = vmatprep.mubr.bf16.mxu0 %v10603_v0 }
 0x217   : > { %v8970_v25 = vpop.f32.mrf.mxu0 }
 0x218   : > { %10747 = vst [vmem:[#allocation113_spill] sm:$0xff] %v8970_v25  ;;  %v8985_v25 = vpop.f32.mrf.mxu1 }
 0x219   : > { %v8974_v5 = vpop.f32.mrf.mxu0  ;;  %10754 = vst [vmem:[#allocation120_spill] sm:$0xff] %v8985_v25 }
 0x21a   : > { %10749 = vst [vmem:[#allocation115_spill] sm:$0xff] %v8974_v5  ;;  %v8991_v56 = vpop.f32.mrf.mxu1 }
 0x21b   : > { %v8976_v2 = vpop.f32.mrf.mxu0  ;;  %10757 = vst [vmem:[#allocation123_spill] sm:$0xff] %v8991_v56 }
 0x21c   : > { %10750 = vst [vmem:[#allocation116_spill] sm:$0xff] %v8976_v2 }
 0x21d   : > { %v8980_v15 = vpop.f32.mrf.mxu0  ;;  %2526 = vmatmul.mubr.bf16.gmra.mxu0 %v8053_v18  ;;  %v8998_v18 = vpop.f32.mrf.mxu1 }
 0x21e   : > { %10752 = vst [vmem:[#allocation118_spill] sm:$0xff] %v8980_v15  ;;  %2535 = vmatprep.mubr.bf16.mxu0 %v10603_v0  ;;  %10760 = vst [vmem:[#allocation126_spill] sm:$0xff] %v8998_v18 }
 0x21f   : > { %v8983_v12 = vpop.f32.mrf.mxu0 }
 0x220   : > { %10753 = vst [vmem:[#allocation119_spill] sm:$0xff] %v8983_v12  ;;  %v8055_v12 = vld [vmem:[#allocation2 + $0xb8] sm:$0xff]  }
 0x221   : > { %v8987_v8 = vpop.f32.mrf.mxu0 }
 0x222   : > { %10755 = vst [vmem:[#allocation121_spill] sm:$0xff] %v8987_v8  ;;  %v9004_v8 = vpop.f32.mrf.mxu1 }
 0x223   : > { %v8989_v5 = vpop.f32.mrf.mxu0  ;;  %10763 = vst [vmem:[#allocation129_spill] sm:$0xff] %v9004_v8 }
 0x224   : > { %10756 = vst [vmem:[#allocation122_spill] sm:$0xff] %v8989_v5 }
 0x225   : > { %v8993_v2 = vpop.f32.mrf.mxu0  ;;  %2536 = vmatmul.mubr.bf16.gmra.mxu0 %v8054_v9  ;;  %v9011_v9 = vpop.f32.mrf.mxu1 }
 0x226   : > { %10758 = vst [vmem:[#allocation124_spill] sm:$0xff] %v8993_v2  ;;  %2545 = vmatprep.mubr.bf16.mxu0 %v10603_v0  ;;  %10766 = vst [vmem:[#allocation132_spill] sm:$0xff] %v9011_v9  ;;  %v8057_v9 = vld [vmem:[#allocation2 + $0xc8] sm:$0xff]  }
 0x227   : > { %v8996_v22 = vpop.f32.mrf.mxu0 }
 0x228   : > { %10759 = vst [vmem:[#allocation125_spill] sm:$0xff] %v8996_v22  ;;  %v8056_v22 = vld [vmem:[#allocation2 + $0xc0] sm:$0xff]  }
 0x229   : > { %v9000_v15 = vpop.f32.mrf.mxu0 }
 0x22a   : > { %10761 = vst [vmem:[#allocation127_spill] sm:$0xff] %v9000_v15  ;;  %v9017_v15 = vpop.f32.mrf.mxu1 }
 0x22b   : > { %v9002_v25 = vpop.f32.mrf.mxu0  ;;  %10769 = vst [vmem:[#allocation135_spill] sm:$0xff] %v9017_v15 }
 0x22c   : > { %10762 = vst [vmem:[#allocation128_spill] sm:$0xff] %v9002_v25  ;;  %v8072_v25 = vld [vmem:[#allocation8 + $0xe0] sm:$0xff]  }
 0x22d   : > { %v9006_v19 = vpop.f32.mrf.mxu0  ;;  %2546 = vmatmul.mubr.bf16.gmra.mxu0 %v8055_v12  ;;  %v9024_v12 = vpop.f32.mrf.mxu1  ;;  %7036 = vmatprep.subr.bf16.mxu1 %v8072_v25 }
 0x22e   : > { %10764 = vst [vmem:[#allocation130_spill] sm:$0xff] %v9006_v19  ;;  %2555 = vmatprep.mubr.bf16.mxu0 %v10603_v0  ;;  %10772 = vst [vmem:[#allocation138_spill] sm:$0xff] %v9024_v12 }
 0x22f   : > { %v9009_v2 = vpop.f32.mrf.mxu0 }
 0x230   : > { %10765 = vst [vmem:[#allocation131_spill] sm:$0xff] %v9009_v2  ;;  %v8073_v2 = vld [vmem:[#allocation8 + $0xa0] sm:$0xff]  }
 0x231   : > { %v9013_v5 = vpop.f32.mrf.mxu0  ;;  %7037 = vmatpush3.bf16.msra.mxu1 %v8073_v2 }
 0x232   : > { %10767 = vst [vmem:[#allocation133_spill] sm:$0xff] %v9013_v5 }
 0x233   : > { %v9015_v18 = vpop.f32.mrf.mxu0 }
 0x234   : > { %10768 = vst [vmem:[#allocation134_spill] sm:$0xff] %v9015_v18  ;;  %v9030_v18 = vpop.f32.mrf.mxu1 }
 0x235   : > { %v9019_v56 = vpop.f32.mrf.mxu0  ;;  %2556 = vmatmul.mubr.bf16.gmra.mxu0 %v8056_v22  ;;  %10775 = vst [vmem:[#allocation141_spill] sm:$0xff] %v9030_v18  ;;  %v2786_v22 = vlaneseq }
 0x236   : > { %10770 = vst [vmem:[#allocation136_spill] sm:$0xff] %v9019_v56  ;;  %2565 = vmatprep.mubr.bf16.mxu0 %v10603_v0  ;;  %v9037_v56 = vpop.f32.mrf.mxu1 }
 0x237   : > { %v9022_v19 = vpop.f32.mrf.mxu0  ;;  %10778 = vst [vmem:[#allocation144_spill] sm:$0xff] %v9037_v56 }
 0x238   : > { %10771 = vst [vmem:[#allocation137_spill] sm:$0xff] %v9022_v19 }
 0x239   : > { %v9026_v8 = vpop.f32.mrf.mxu0 }
 0x23a   : > { %10773 = vst [vmem:[#allocation139_spill] sm:$0xff] %v9026_v8  ;;  %v2787_v8 = vshrl.u32 %v2786_v22, 7  ;;  %v8075_v22 = vld [vmem:[#allocation8 + $0x178] sm:$0xff]  }
 0x23b   : > { %v9028_v5 = vpop.f32.mrf.mxu0  ;;  %7254 = vmatprep.subr.bf16.mxu0 %v8075_v22 }
 0x23c   : > { %10774 = vst [vmem:[#allocation140_spill] sm:$0xff] %v9028_v5  ;;  %v9043_v5 = vpop.f32.mrf.mxu1  ;;  %v2788_v18 = vsub.s32 0, %v2787_v8 }
 0x23d   : > { %v9032_v15 = vpop.f32.mrf.mxu0  ;;  %2566 = vmatmul.mubr.bf16.gmra.mxu0 %v8057_v9  ;;  %10781 = vst [vmem:[#allocation147_spill] sm:$0xff] %v9043_v5  ;;  %v2784_v9 = vld [vmem:[%s10588_s2] sm:$0x3] }
 0x23e   : > { %10776 = vst [vmem:[#allocation142_spill] sm:$0xff] %v9032_v15  ;;  %2575 = vmatprep.mubr.bf16.mxu0 %v10603_v0  ;;  %v2792_v15 = vsub.s32 1, %v2787_v8  ;;  %v9049_v56 = vpop.f32.mrf.mxu1 }
 0x23f   : > { %v9035_v19 = vpop.f32.mrf.mxu0  ;;  %10782 = vst [vmem:[#allocation148_spill] sm:$0xff] %v9049_v56  ;;  %v8078_v56 = vld [vmem:[#allocation8 + $0xd0] sm:$0xff]  }
 0x240   : > { %10777 = vst [vmem:[#allocation143_spill] sm:$0xff] %v9035_v19  ;;  %v9055_v58 = vrot.slane %v2784_v9, %v2792_v15  ;;  %v9057_v8 = vpop.f32.mrf.mxu1 }
 0x241   : > { %v9039_v12 = vpop.f32.mrf.mxu0  ;;  %10783 = vst [vmem:[#allocation149_spill] sm:$0xff] %v9057_v8  ;;  %v8085_v8 = vld [vmem:[#allocation8 + $0x128] sm:$0xff]  }
 0x242   : > { %10779 = vst [vmem:[#allocation145_spill] sm:$0xff] %v9039_v12  ;;  %v8074_v12 = vld [vmem:[#allocation8 + $0xd8] sm:$0xff]  }
 0x243   : > { %v9041_v25 = vpop.f32.mrf.mxu0  ;;  %7038 = vmatprep.subr.bf16.mxu1 %v8074_v12 }
 0x244   : > { %10780 = vst [vmem:[#allocation146_spill] sm:$0xff] %v9041_v25  ;;  %v9052_v25 = vrot.slane %v2784_v9, %v2788_v18  ;;  %7039 = vmatpush3.bf16.msra.mxu1 %v8076_v61  ;;  %v9065_v9 = vpop.f32.mrf.mxu1 }
 0x245   : > { %v2337_v2 = vpop.f32.mrf.mxu0  ;;  %2576 = vmatmul.mubr.bf16.gmra.mxu0 %v8058_v28  ;;  %v8077_v28 = vld [vmem:[#allocation8 + $0x138] sm:$0xff]   ;;  %7040 = vmatprep.subr.bf16.mxu1 %v8078_v56  ;;  %10785 = vst [vmem:[#allocation150_spill] sm:$0xff] %v9065_v9  ;;  %v8084_v56 = vld [vmem:[#allocation8 + $0x88] sm:$0xff]  }
 0x246   : > { %2585 = vmatprep.mubr.bf16.mxu0 %v10603_v0  ;;  %v2656_v62 = vadd.f32 %v2337_v2, %v8650_v47  ;;  %7255 = vmatpush3.bf16.msra.mxu0 %v8077_v28  ;;  %v8080_v2 = vld [vmem:[#allocation8 + $0x90] sm:$0xff]  }
 0x247   : > { %v2339_v19 = vpop.f32.mrf.mxu0  ;;  %7256 = vmatprep.subr.bf16.mxu0 %v8079_v29 }
 0x248   : > { %v2657_v42 = vadd.f32 %v2339_v19, %v8654_v50  ;;  %v2796_v47 = vadd.f32 %v9052_v25, %v2656_v62  ;;  %v10784_v50 = vmov 0   ;;  %7041 = vmatpush3.bf16.msra.mxu1 %v8080_v2 }
 0x249   : > { %v2341_v5 = vpop.f32.mrf.mxu0 }
 0x24a   : > { %v2658_v12 = vadd.f32 %v2341_v5, %v8656_v54  ;;  %v2797_v61 = vadd.f32 %v9055_v58, %v2657_v42  ;;  %7257 = vmatpush3.bf16.msra.mxu0 %v8081_v55  ;;  %v8082_v54 = vld [vmem:[#allocation8 + $0xc8] sm:$0xff]  }
 0x24b   : > { %v2343_v0 = vpop.f32.mrf.mxu0  ;;  %v8083_v5 = vld [vmem:[#allocation8 + $0x168] sm:$0xff]   ;;  %7042 = vmatprep.subr.bf16.mxu1 %v8082_v54  ;;  %v8088_v54 = vld [vmem:[#allocation8 + $0x80] sm:$0xff]  }
 0x24c   : > { %v2659_v15 = vadd.f32 %v2343_v0, %v8658_v57  ;;  %v2798_v42 = vadd.f32 %v9052_v25, %v2658_v12  ;;  %7258 = vmatprep.subr.bf16.mxu0 %v8083_v5  ;;  %v2925_v2 = vmax.f32 %v2797_v61, 0.0  ;;  %7043 = vmatpush3.bf16.msra.mxu1 %v8084_v56  ;;  %v8089_v61 = vld [vmem:[#allocation8 + $0x120] sm:$0xff]  }
 0x24d   : > { %v2347_v18 = vpop.f32.mrf.mxu0  ;;  %2586 = vmatmul.mubr.bf16.gmra.mxu0 %v8059_v3 }
 0x24e   : > { %v2660_v22 = vadd.f32 %v2347_v18, %v8660_v60  ;;  %2595 = vmatprep.mubr.bf16.mxu0 %v10784_v50  ;;  %v2924_v60 = vmax.f32 %v2796_v47, 0.0  ;;  %v8062_v18 = vld [vmem:[#allocation2 + $0xe0] sm:$0xff]   ;;  %7259 = vmatpush3.bf16.msra.mxu0 %v8085_v8  ;;  %v2926_v5 = vmax.f32 %v2798_v42, 0.0 }
 0x24f   : > { %v2349_v19 = vpop.f32.mrf.mxu0 }
 0x250   : > { %v2800_v62 = vadd.f32 %v9052_v25, %v2660_v22  ;;  %v2661_v3 = vadd.f32 %v2349_v19, %v8664_v63  ;;  %v2799_v63 = vadd.f32 %v9055_v58, %v2659_v15  ;;  %v9073_v22 = vpop.f32.mrf.mxu1 }
 0x251   : > { %v2351_v28 = vpop.f32.mrf.mxu0 }
 0x252   : > { %v2928_v0 = vmax.f32 %v2800_v62, 0.0  ;;  %v2801_v57 = vadd.f32 %v9055_v58, %v2661_v3  ;;  %v2662_v29 = vadd.f32 %v2351_v28, %v8666_v4  ;;  %v8086_v62 = vld [vmem:[#allocation8 + $0xc0] sm:$0xff]   ;;  %v2927_v8 = vmax.f32 %v2799_v63, 0.0 }
 0x253   : > { %v2353_v55 = vpop.f32.mrf.mxu0  ;;  %v8087_v3 = vld [vmem:[#allocation8 + $0x160] sm:$0xff]   ;;  %7044 = vmatprep.subr.bf16.mxu1 %v8086_v62 }
 0x254   : > { %v2929_v47 = vmax.f32 %v2801_v57, 0.0  ;;  %v2802_v19 = vadd.f32 %v9052_v25, %v2662_v29  ;;  %v2663_v9 = vadd.f32 %v2353_v55, %v8668_v7  ;;  %v9077_v12 = vmax.f32 %v2924_v60, %v2928_v0  ;;  %7260 = vmatprep.subr.bf16.mxu0 %v8087_v3  ;;  %7045 = vmatpush3.bf16.msra.mxu1 %v8088_v54  ;;  %v9083_v7 = vpop.f32.mrf.mxu1  ;;  %v8090_v0 = vld [vmem:[#allocation8 + $0x158] sm:$0xff]   ;;  %v8092_v3 = vld [vmem:[#allocation8 + $0x150] sm:$0xff]  }
 0x255   : > { %v2357_v4 = vpop.f32.mrf.mxu0  ;;  %2596 = vmatmul.mubr.bf16.gmra.mxu0 %v8062_v18  ;;  %v8091_v55 = vld [vmem:[#allocation8 + $0x118] sm:$0xff]  }
 0x256   : > { %v2930_v15 = vmax.f32 %v2802_v19, 0.0  ;;  %v2803_v28 = vadd.f32 %v9055_v58, %v2663_v9  ;;  %v9080_v56 = vmax.f32 %v2925_v2, %v2929_v47  ;;  %2605 = vmatprep.mubr.bf16.mxu0 %v10784_v50  ;;  %7261 = vmatpush3.bf16.msra.mxu0 %v8089_v61  ;;  %v2664_v42 = vadd.f32 %v2357_v4, %v8670_v10  ;;  %v8063_v2 = vld [vmem:[#allocation2 + $0xe8] sm:$0xff]   ;;  %v9094_v62 = vpop.f32.mrf.mxu1  ;;  %v8093_v61 = vld [vmem:[#allocation8 + $0x110] sm:$0xff]  }
 0x257   : > { %v2359_v57 = vpop.f32.mrf.mxu0  ;;  %7262 = vmatprep.subr.bf16.mxu0 %v8090_v0 }
 0x258   : > { %v9085_v60 = vmax.f32 %v2926_v5, %v2930_v15  ;;  %v2931_v18 = vmax.f32 %v2803_v28, 0.0  ;;  %v7729_v9 = vpack.i.bf16 %v9080_v56, %v9077_v12  ;;  %v2665_v19 = vadd.f32 %v2359_v57, %v8674_v13 }
 0x259   : > { %v2361_v29 = vpop.f32.mrf.mxu0  ;;  %v2804_v4 = vadd.f32 %v9052_v25, %v2664_v42 }
 0x25a   : > { %v9090_v47 = vmax.f32 %v2927_v8, %v2931_v18  ;;  %7730 = vrot.lane.b32.xlu0 %v7729_v9, %s8337_s15  ;;  %7263 = vmatpush3.bf16.msra.mxu0 %v8091_v55  ;;  %v2666_v5 = vadd.f32 %v2361_v29, %v8676_v17  ;;  %v2805_v15 = vadd.f32 %v9055_v58, %v2665_v19  ;;  %v9105_v8 = vpop.f32.mrf.mxu1  ;;  %v8094_v17 = vld [vmem:[#allocation8 + $0x148] sm:$0xff]   ;;  %v8064_v29 = vld [vmem:[#allocation2 + $0xf0] sm:$0xff]  }
 0x25b   : > { %v2363_v63 = vpop.f32.mrf.mxu0  ;;  %7264 = vmatprep.subr.bf16.mxu0 %v8092_v3  ;;  %v2932_v42 = vmax.f32 %v2804_v4, 0.0  ;;  %v8095_v9 = vld [vmem:[#allocation8 + $0x108] sm:$0xff]  }
 0x25c   : > { %v7734_v10 = vpack.i.bf16 %v9090_v47, %v9085_v60  ;;  %v2667_v28 = vadd.f32 %v2363_v63, %v8678_v20  ;;  %v2933_v63 = vmax.f32 %v2805_v15, 0.0 }
 0x25d   : > { %v2367_v54 = vpop.f32.mrf.mxu0  ;;  %2606 = vmatmul.mubr.bf16.gmra.mxu0 %v8063_v2  ;;  %v2806_v2 = vadd.f32 %v9052_v25, %v2666_v5  ;;  %v8096_v5 = vld [vmem:[#allocation8 + $0x140] sm:$0xff]  }
 0x25e   : > { %v2668_v13 = vadd.f32 %v2367_v54, %v8680_v23  ;;  %2615 = vmatprep.mubr.bf16.mxu0 %v10784_v50  ;;  %7735 = vrot.lane.b32.xlu0 %v7734_v10, %s8337_s15  ;;  %v2807_v10 = vadd.f32 %v9055_v58, %v2667_v28  ;;  %v9113_v54 = vpop.f32.mrf.mxu1 }
 0x25f   : > { %v2369_v57 = vpop.f32.mrf.mxu0  ;;  %7265 = vmatpush3.bf16.msra.mxu0 %v8093_v61 }
 0x260   : > { %v2808_v18 = vadd.f32 %v9052_v25, %v2668_v13  ;;  %v2669_v0 = vadd.f32 %v2369_v57, %v8684_v26  ;;  %7266 = vmatprep.subr.bf16.mxu0 %v8094_v17  ;;  %v1672_v17 = vadd.f32 %v8725_v53, %v8690_v34 }
 0x261   : > { %v2371_v23 = vpop.f32.mrf.mxu0 }
 0x262   : > { %v2936_v55 = vmax.f32 %v2808_v18, 0.0  ;;  %v2809_v20 = vadd.f32 %v9055_v58, %v2669_v0  ;;  %v2670_v19 = vadd.f32 %v2371_v23, %v8686_v30  ;;  %v8097_v18 = vld [vmem:[#allocation8 + $0x100] sm:$0xff]   ;;  %v2934_v30 = vmax.f32 %v2806_v2, 0.0 }
 0x263   : > { %v2373_v3 = vpop.f32.mrf.mxu0  ;;  %7267 = vmatpush3.bf16.msra.mxu0 %v8095_v9  ;;  %v2935_v23 = vmax.f32 %v2807_v10, 0.0  ;;  %v1674_v2 = vadd.f32 %v8731_v59, %v8694_v35  ;;  %v1676_v10 = vadd.f32 %v8738_v1, %v8696_v36  ;;  %v1678_v59 = vadd.f32 %v8744_v6, %v8698_v38 }
 0x264   : > { %v2937_v26 = vmax.f32 %v2809_v20, 0.0  ;;  %v2810_v4 = vadd.f32 %v9052_v25, %v2670_v19  ;;  %v2671_v61 = vadd.f32 %v2373_v3, %v8688_v33  ;;  %v9117_v13 = vmax.f32 %v2932_v42, %v2936_v55  ;;  %7268 = vmatprep.subr.bf16.mxu0 %v8096_v5  ;;  %v9125_v42 = vpop.f32.mrf.mxu1 }
 0x265   : > { %v2377_v57 = vpop.f32.mrf.mxu0  ;;  %2616 = vmatmul.mubr.bf16.gmra.mxu0 %v8064_v29  ;;  %v1686_v38 = vadd.f32 %v8764_v21, %v8706_v41 }
 0x266   : > { %v2938_v0 = vmax.f32 %v2810_v4, 0.0  ;;  %v2811_v15 = vadd.f32 %v9055_v58, %v2671_v61  ;;  %v9120_v28 = vmax.f32 %v2933_v63, %v2937_v26  ;;  %2625 = vmatprep.mubr.bf16.mxu0 %v10784_v50  ;;  %v2672_v55 = vadd.f32 %v2377_v57, %v1672_v17  ;;  %v8065_v63 = vld [vmem:[#allocation2 + $0xf8] sm:$0xff]   ;;  %v9140_v4 = vpop.f32.mrf.mxu1  ;;  %v8068_v17 = vld [vmem:[#allocation2 + $0x100] sm:$0xff]  }
 0x267   : > { %v2379_v33 = vpop.f32.mrf.mxu0  ;;  %7269 = vmatpush3.bf16.msra.mxu0 %v8097_v18  ;;  %v1682_v26 = vadd.f32 %v8751_v11, %v8700_v39  ;;  %v1684_v57 = vadd.f32 %v8757_v16, %v8704_v40  ;;  %v1688_v40 = vadd.f32 %v8770_v27, %v8708_v43 }
 0x268   : > { %v9127_v9 = vmax.f32 %v2934_v30, %v2938_v0  ;;  %v2939_v29 = vmax.f32 %v2811_v15, 0.0  ;;  %v7739_v19 = vpack.i.bf16 %v9120_v28, %v9117_v13  ;;  %v2673_v34 = vadd.f32 %v2379_v33, %v1674_v2  ;;  %v9154_v6 = vpop.f32.mrf.mxu1 }
 0x269   : > { %v2381_v20 = vpop.f32.mrf.mxu0  ;;  %v2812_v61 = vadd.f32 %v9052_v25, %v2672_v55 }
 0x26a   : > { %v9133_v3 = vmax.f32 %v2935_v23, %v2939_v29  ;;  %7740 = vrot.lane.b32.xlu1 %v7739_v19, %s8337_s15  ;;  %v2674_v18 = vadd.f32 %v2381_v20, %v1676_v10  ;;  %v2813_v39 = vadd.f32 %v9055_v58, %v2673_v34  ;;  %v9162_v20 = vpop.f32.mrf.mxu1 }
 0x26b   : > { %v2383_v53 = vpop.f32.mrf.mxu0  ;;  %v2940_v16 = vmax.f32 %v2812_v61, 0.0 }
 0x26c   : > { %v7744_v35 = vpack.i.bf16 %v9133_v3, %v9127_v9  ;;  %v2675_v1 = vadd.f32 %v2383_v53, %v1678_v59  ;;  %v2814_v33 = vadd.f32 %v9052_v25, %v2674_v18  ;;  %v2941_v55 = vmax.f32 %v2813_v39, 0.0 }
 0x26d   : > { %v2387_v5 = vpop.f32.mrf.mxu0  ;;  %2626 = vmatmul.mubr.bf16.gmra.mxu0 %v8065_v63  ;;  %v1692_v59 = vadd.f32 %v8777_v31, %v8710_v44  ;;  %v1694_v39 = vadd.f32 %v8783_v48, %v8714_v45  ;;  %v1696_v31 = vadd.f32 %v8790_v14, %v8716_v46  ;;  %v1698_v48 = vadd.f32 %v8796_v32, %v8718_v49 }
 0x26e   : > { %v2676_v36 = vadd.f32 %v2387_v5, %v1682_v26  ;;  %2635 = vmatprep.mubr.bf16.mxu0 %v10784_v50  ;;  %7745 = vrot.lane.b32.xlu1 %v7744_v35, %s8337_s15  ;;  %v2815_v41 = vadd.f32 %v9055_v58, %v2675_v1  ;;  %v2942_v53 = vmax.f32 %v2814_v33, 0.0  ;;  %v9173_v5 = vpop.f32.mrf.mxu1 }
 0x26f   : > { %v2389_v11 = vpop.f32.mrf.mxu0 }
 0x270   : > { %v2816_v30 = vadd.f32 %v9052_v25, %v2676_v36  ;;  %v2677_v0 = vadd.f32 %v2389_v11, %v1684_v57  ;;  %v2943_v57 = vmax.f32 %v2815_v41, 0.0 }
 0x271   : > { %v2391_v15 = vpop.f32.mrf.mxu0 }
 0x272   : > { %v2944_v23 = vmax.f32 %v2816_v30, 0.0  ;;  %v2817_v29 = vadd.f32 %v9055_v58, %v2677_v0  ;;  %v2678_v2 = vadd.f32 %v2391_v15, %v1686_v38  ;;  %v8069_v30 = vld [vmem:[#allocation2 + $0x108] sm:$0xff]   ;;  %v9188_v15 = vpop.f32.mrf.mxu1 }
 0x273   : > { %v2393_v21 = vpop.f32.mrf.mxu0 }
 0x274   : > { %v9164_v19 = vmax.f32 %v2940_v16, %v2944_v23  ;;  %v2945_v63 = vmax.f32 %v2817_v29, 0.0  ;;  %v2818_v43 = vadd.f32 %v9052_v25, %v2678_v2  ;;  %v2679_v27 = vadd.f32 %v2393_v21, %v1688_v40  ;;  %v10786_v2 = vld [vmem:[#allocation14_spill] sm:$0xff]  ;;  %v9201_v21 = vpop.f32.mrf.mxu1 }
 0x275   : > { %v2397_v34 = vpop.f32.mrf.mxu0  ;;  %2636 = vmatmul.mubr.bf16.gmra.mxu0 %v8068_v17  ;;  %v1702_v16 = vadd.f32 %v8803_v37, %v8720_v51  ;;  %v1704_v23 = vadd.f32 %v8809_v24, %v8723_v52 }
 0x276   : > { %v9167_v10 = vmax.f32 %v2941_v55, %v2945_v63  ;;  %v2946_v26 = vmax.f32 %v2818_v43, 0.0  ;;  %v2819_v35 = vadd.f32 %v9055_v58, %v2679_v27  ;;  %2645 = vmatprep.mubr.bf16.mxu0 %v10784_v50  ;;  %v2680_v1 = vadd.f32 %v2397_v34, %v1692_v59  ;;  %v10787_v55 = vld [vmem:[#allocation42_spill] sm:$0xff]  ;;  %v10788_v63 = vld [vmem:[#allocation15_spill] sm:$0xff]  ;;  %v10789_v43 = vld [vmem:[#allocation45_spill] sm:$0xff] }
 0x277   : > { %v2399_v61 = vpop.f32.mrf.mxu0  ;;  %v1706_v41 = vadd.f32 %v10787_v55, %v10786_v2  ;;  %v1708_v27 = vadd.f32 %v10789_v43, %v10788_v63 }
 0x278   : > { %v9175_v18 = vmax.f32 %v2942_v53, %v2946_v26  ;;  %v2947_v36 = vmax.f32 %v2819_v35, 0.0  ;;  %v7749_v38 = vpack.i.bf16 %v9167_v10, %v9164_v19  ;;  %v2681_v40 = vadd.f32 %v2399_v61, %v1694_v39 }
 0x279   : > { %v2401_v11 = vpop.f32.mrf.mxu0  ;;  %v2820_v17 = vadd.f32 %v9052_v25, %v2680_v1 }
 0x27a   : > { %v9181_v0 = vmax.f32 %v2943_v57, %v2947_v36  ;;  %7750 = vrot.lane.b32.xlu0 %v7749_v38, %s8337_s15  ;;  %v2682_v29 = vadd.f32 %v2401_v11, %v1696_v31  ;;  %v2821_v51 = vadd.f32 %v9055_v58, %v2681_v40  ;;  %v9209_v36 = vpop.f32.mrf.mxu1 }
 0x27b   : > { %v2403_v44 = vpop.f32.mrf.mxu0  ;;  %v2948_v52 = vmax.f32 %v2820_v17, 0.0 }
 0x27c   : > { %v7754_v45 = vpack.i.bf16 %v9181_v0, %v9175_v18  ;;  %v2683_v14 = vadd.f32 %v2403_v44, %v1698_v48  ;;  %v2822_v34 = vadd.f32 %v9052_v25, %v2682_v29  ;;  %v2949_v59 = vmax.f32 %v2821_v51, 0.0  ;;  %v10793_v48 = vld [vmem:[#allocation48_spill] sm:$0xff] }
 0x27d   : > { %v2407_v33 = vpop.f32.mrf.mxu0  ;;  %2646 = vmatmul.mubr.bf16.gmra.mxu0 %v8069_v30 }
 0x27e   : > { %v2684_v46 = vadd.f32 %v2407_v33, %v1702_v16  ;;  %7755 = vrot.lane.b32.xlu1 %v7754_v45, %s8337_s15  ;;  %v2823_v61 = vadd.f32 %v9055_v58, %v2683_v14  ;;  %v2950_v40 = vmax.f32 %v2822_v34, 0.0  ;;  %v10792_v45 = vld [vmem:[#allocation16_spill] sm:$0xff]  ;;  %v10795_v14 = vld [vmem:[#allocation17_spill] sm:$0xff] }
 0x27f   : > { %v2409_v37 = vpop.f32.mrf.mxu0  ;;  %v1712_v17 = vadd.f32 %v10793_v48, %v10792_v45  ;;  %v10800_v34 = vld [vmem:[#allocation20_spill] sm:$0xff] }
 0x280   : > { %v2824_v49 = vadd.f32 %v9052_v25, %v2684_v46  ;;  %v2685_v32 = vadd.f32 %v2409_v37, %v1704_v23  ;;  %v9219_v23 = vpop.f32.mrf.mxu1  ;;  %v2951_v29 = vmax.f32 %v2823_v61, 0.0  ;;  %v10796_v37 = vld [vmem:[#allocation51_spill] sm:$0xff] }
 0x281   : > { %v2411_v24 = vpop.f32.mrf.mxu0  ;;  %v1714_v2 = vadd.f32 %v10796_v37, %v10795_v14  ;;  %v10802_v61 = vld [vmem:[#allocation19_spill] sm:$0xff] }
 0x282   : > { %v2952_v53 = vmax.f32 %v2824_v49, 0.0  ;;  %v2825_v26 = vadd.f32 %v9055_v58, %v2685_v32  ;;  %v2686_v35 = vadd.f32 %v2411_v24, %v1706_v41 }
 0x283   : > { %v2413_v57 = vpop.f32.mrf.mxu0 }
 0x284   : > { %v9211_v39 = vmax.f32 %v2948_v52, %v2952_v53  ;;  %v2953_v1 = vmax.f32 %v2825_v26, 0.0  ;;  %v2826_v11 = vadd.f32 %v9052_v25, %v2686_v35  ;;  %v2687_v38 = vadd.f32 %v2413_v57, %v1708_v27  ;;  %v10798_v27 = vld [vmem:[#allocation18_spill] sm:$0xff]  ;;  %v10801_v53 = vld [vmem:[#allocation60_spill] sm:$0xff]  ;;  %v9234_v35 = vpop.f32.mrf.mxu1  ;;  %v10803_v57 = vld [vmem:[#allocation57_spill] sm:$0xff] }
 0x285   : > { %v2417_v30 = vpop.f32.mrf.mxu0  ;;  %v10799_v52 = vld [vmem:[#allocation54_spill] sm:$0xff]  ;;  %v1722_v26 = vadd.f32 %v10801_v53, %v10800_v34 }
 0x286   : > { %10790 = vst [vmem:[#allocation14_spill] sm:$0xff] %v9211_v39  ;;  %v9214_v44 = vmax.f32 %v2949_v59, %v2953_v1  ;;  %v2954_v31 = vmax.f32 %v2826_v11, 0.0  ;;  %v2827_v16 = vadd.f32 %v9055_v58, %v2687_v38  ;;  %v2688_v55 = vadd.f32 %v2417_v30, %v1712_v17  ;;  %v10804_v30 = vld [vmem:[#allocation21_spill] sm:$0xff]  ;;  %v9247_v37 = vpop.f32.mrf.mxu1 }
 0x287   : > { %v2419_v33 = vpop.f32.mrf.mxu0  ;;  %v1716_v24 = vadd.f32 %v10799_v52, %v10798_v27  ;;  %v1718_v1 = vadd.f32 %v10803_v57, %v10802_v61  ;;  %v10809_v27 = vld [vmem:[#allocation69_spill] sm:$0xff] }
 0x288   : > { %10791 = vst [vmem:[#allocation42_spill] sm:$0xff] %v9214_v44  ;;  %v9221_v46 = vmax.f32 %v2950_v40, %v2954_v31  ;;  %v2955_v51 = vmax.f32 %v2827_v16, 0.0  ;;  %v7759_v49 = vpack.i.bf16 %v9214_v44, %v9211_v39  ;;  %v2689_v63 = vadd.f32 %v2419_v33, %v1714_v2  ;;  %v10805_v40 = vld [vmem:[#allocation63_spill] sm:$0xff]  ;;  %v9255_v57 = vpop.f32.mrf.mxu1  ;;  %v10849_v44 = vld [vmem:[#allocation117_spill] sm:$0xff] }
 0x289   : > { %v2421_v41 = vpop.f32.mrf.mxu0  ;;  %v2828_v11 = vadd.f32 %v9052_v25, %v2688_v55  ;;  %v1724_v31 = vadd.f32 %v10805_v40, %v10804_v30 }
 0x28a   : > { %10794 = vst [vmem:[#allocation15_spill] sm:$0xff] %v9221_v46  ;;  %v9227_v32 = vmax.f32 %v2951_v29, %v2955_v51  ;;  %7760 = vrot.lane.b32.xlu0 %v7759_v49, %s8337_s15  ;;  %v2690_v16 = vadd.f32 %v2421_v41, %v1716_v24  ;;  %v2829_v48 = vadd.f32 %v9055_v58, %v2689_v63  ;;  %v10806_v29 = vld [vmem:[#allocation22_spill] sm:$0xff]  ;;  %v10808_v49 = vld [vmem:[#allocation23_spill] sm:$0xff] }
 0x28b   : > { %v2423_v43 = vpop.f32.mrf.mxu0  ;;  %v10807_v51 = vld [vmem:[#allocation66_spill] sm:$0xff]  ;;  %v1728_v52 = vadd.f32 %v10809_v27, %v10808_v49  ;;  %v2956_v34 = vmax.f32 %v2828_v11, 0.0  ;;  %v10815_v27 = vld [vmem:[#allocation25_spill] sm:$0xff] }
 0x28c   : > { %10797 = vst [vmem:[#allocation45_spill] sm:$0xff] %v9227_v32  ;;  %v7764_v59 = vpack.i.bf16 %v9227_v32, %v9221_v46  ;;  %v2691_v17 = vadd.f32 %v2423_v43, %v1718_v1  ;;  %v1726_v14 = vadd.f32 %v10807_v51, %v10806_v29  ;;  %v2830_v24 = vadd.f32 %v9052_v25, %v2690_v16  ;;  %v10812_v29 = vld [vmem:[#allocation24_spill] sm:$0xff]  ;;  %v10847_v32 = vld [vmem:[#allocation114_spill] sm:$0xff] }
 0x28d   : > { %v2427_v38 = vpop.f32.mrf.mxu0 }
 0x28e   : > { %v2692_v45 = vadd.f32 %v2427_v38, %v1722_v26  ;;  %7765 = vrot.lane.b32.xlu1 %v7764_v59, %s8337_s15  ;;  %v2957_v26 = vmax.f32 %v2829_v48, 0.0  ;;  %v2831_v59 = vadd.f32 %v9055_v58, %v2691_v17  ;;  %v10813_v48 = vld [vmem:[#allocation72_spill] sm:$0xff] }
 0x28f   : > { %v2429_v33 = vpop.f32.mrf.mxu0  ;;  %v1732_v51 = vadd.f32 %v10813_v48, %v10812_v29  ;;  %v10823_v29 = vld [vmem:[#allocation81_spill] sm:$0xff] }
 0x290   : > { %v2832_v2 = vadd.f32 %v9052_v25, %v2692_v45  ;;  %v2693_v55 = vadd.f32 %v2429_v33, %v1724_v31  ;;  %v2958_v31 = vmax.f32 %v2830_v24, 0.0 }
 0x291   : > { %v2431_v41 = vpop.f32.mrf.mxu0 }
 0x292   : > { %v2960_v53 = vmax.f32 %v2832_v2, 0.0  ;;  %v2833_v63 = vadd.f32 %v9055_v58, %v2693_v55  ;;  %v2694_v43 = vadd.f32 %v2431_v41, %v1726_v14  ;;  %v9265_v14 = vpop.f32.mrf.mxu1  ;;  %v2959_v2 = vmax.f32 %v2831_v59, 0.0 }
 0x293   : > { %v2433_v61 = vpop.f32.mrf.mxu0 }
 0x294   : > { %v9257_v1 = vmax.f32 %v2956_v34, %v2960_v53  ;;  %v2961_v38 = vmax.f32 %v2833_v63, 0.0  ;;  %v2834_v30 = vadd.f32 %v9052_v25, %v2694_v43  ;;  %v2695_v40 = vadd.f32 %v2433_v61, %v1728_v52  ;;  %v10816_v34 = vld [vmem:[#allocation75_spill] sm:$0xff]  ;;  %v10818_v61 = vld [vmem:[#allocation26_spill] sm:$0xff] }
 0x295   : > { %v2437_v11 = vpop.f32.mrf.mxu0  ;;  %v1734_v52 = vadd.f32 %v10816_v34, %v10815_v27 }
 0x296   : > { %10810 = vst [vmem:[#allocation16_spill] sm:$0xff] %v9257_v1  ;;  %v9260_v45 = vmax.f32 %v2957_v26, %v2961_v38  ;;  %v2962_v16 = vmax.f32 %v2834_v30, 0.0  ;;  %v2835_v33 = vadd.f32 %v9055_v58, %v2695_v40  ;;  %v2696_v41 = vadd.f32 %v2437_v11, %v1732_v51  ;;  %v10819_v38 = vld [vmem:[#allocation78_spill] sm:$0xff]  ;;  %v10820_v30 = vld [vmem:[#allocation28_spill] sm:$0xff] }
 0x297   : > { %v2439_v17 = vpop.f32.mrf.mxu0  ;;  %v1736_v59 = vadd.f32 %v10819_v38, %v10818_v61  ;;  %v10821_v40 = vld [vmem:[#allocation84_spill] sm:$0xff] }
 0x298   : > { %10811 = vst [vmem:[#allocation48_spill] sm:$0xff] %v9260_v45  ;;  %v9267_v55 = vmax.f32 %v2958_v31, %v2962_v16  ;;  %v2963_v49 = vmax.f32 %v2835_v33, 0.0  ;;  %v7769_v53 = vpack.i.bf16 %v9260_v45, %v9257_v1  ;;  %v2697_v43 = vadd.f32 %v2439_v17, %v1734_v52  ;;  %v9280_v16 = vpop.f32.mrf.mxu1  ;;  %v10822_v33 = vld [vmem:[#allocation27_spill] sm:$0xff]  ;;  %v10829_v45 = vld [vmem:[#allocation93_spill] sm:$0xff] }
 0x299   : > { %v2441_v24 = vpop.f32.mrf.mxu0  ;;  %v1742_v31 = vadd.f32 %v10821_v40, %v10820_v30  ;;  %v1738_v48 = vadd.f32 %v10823_v29, %v10822_v33  ;;  %v2836_v51 = vadd.f32 %v9052_v25, %v2696_v41  ;;  %v10826_v30 = vld [vmem:[#allocation30_spill] sm:$0xff]  ;;  %v10828_v29 = vld [vmem:[#allocation31_spill] sm:$0xff] }
 0x29a   : > { %10814 = vst [vmem:[#allocation17_spill] sm:$0xff] %v9267_v55  ;;  %v9273_v63 = vmax.f32 %v2959_v2, %v2963_v49  ;;  %7770 = vrot.lane.b32.xlu0 %v7769_v53, %s8337_s15  ;;  %v10824_v2 = vld [vmem:[#allocation29_spill] sm:$0xff]  ;;  %v10825_v49 = vld [vmem:[#allocation87_spill] sm:$0xff]  ;;  %v2698_v34 = vadd.f32 %v2441_v24, %v1736_v59  ;;  %v2837_v53 = vadd.f32 %v9055_v58, %v2697_v43  ;;  %v10827_v40 = vld [vmem:[#allocation90_spill] sm:$0xff] }
 0x29b   : > { %v2443_v26 = vpop.f32.mrf.mxu0  ;;  %v1744_v27 = vadd.f32 %v10825_v49, %v10824_v2  ;;  %v1746_v50 = vadd.f32 %v10827_v40, %v10826_v30  ;;  %v1748_v1 = vadd.f32 %v10829_v45, %v10828_v29  ;;  %v2964_v2 = vmax.f32 %v2836_v51, 0.0 }
 0x29c   : > { %10817 = vst [vmem:[#allocation51_spill] sm:$0xff] %v9273_v63  ;;  %v7774_v11 = vpack.i.bf16 %v9273_v63, %v9267_v55  ;;  %v2699_v61 = vadd.f32 %v2443_v26, %v1738_v48  ;;  %v9293_v63 = vpop.f32.mrf.mxu1  ;;  %v2838_v59 = vadd.f32 %v9052_v25, %v2698_v34 }
 0x29d   : > { %v2447_v17 = vpop.f32.mrf.mxu0 }
 0x29e   : > { %v2700_v52 = vadd.f32 %v2447_v17, %v1742_v31  ;;  %7775 = vrot.lane.b32.xlu1 %v7774_v11, %s8337_s15  ;;  %v2965_v11 = vmax.f32 %v2837_v53, 0.0  ;;  %v2839_v48 = vadd.f32 %v9055_v58, %v2699_v61  ;;  %v9301_v49 = vpop.f32.mrf.mxu1  ;;  %v10833_v53 = vld [vmem:[#allocation96_spill] sm:$0xff] }
 0x29f   : > { %v2449_v38 = vpop.f32.mrf.mxu0 }
 0x2a0   : > { %v2840_v33 = vadd.f32 %v9052_v25, %v2700_v52  ;;  %v2701_v41 = vadd.f32 %v2449_v38, %v1744_v27  ;;  %v2966_v38 = vmax.f32 %v2838_v59, 0.0  ;;  %v9311_v29 = vpop.f32.mrf.mxu1 }
 0x2a1   : > { %v2451_v24 = vpop.f32.mrf.mxu0 }
 0x2a2   : > { %v2968_v31 = vmax.f32 %v2840_v33, 0.0  ;;  %v2841_v43 = vadd.f32 %v9055_v58, %v2701_v41  ;;  %v2702_v26 = vadd.f32 %v2451_v24, %v1746_v50  ;;  %v10832_v50 = vld [vmem:[#allocation32_spill] sm:$0xff]  ;;  %v2967_v24 = vmax.f32 %v2839_v48, 0.0  ;;  %v9326_v55 = vpop.f32.mrf.mxu1 }
 0x2a3   : > { %v2453_v17 = vpop.f32.mrf.mxu0  ;;  %v1752_v41 = vadd.f32 %v10833_v53, %v10832_v50  ;;  %v10838_v50 = vld [vmem:[#allocation34_spill] sm:$0xff] }
 0x2a4   : > { %v9303_v30 = vmax.f32 %v2964_v2, %v2968_v31  ;;  %v2969_v27 = vmax.f32 %v2841_v43, 0.0  ;;  %v2842_v52 = vadd.f32 %v9052_v25, %v2702_v26  ;;  %v2703_v45 = vadd.f32 %v2453_v17, %v1748_v1  ;;  %v10835_v43 = vld [vmem:[#allocation33_spill] sm:$0xff]  ;;  %v10836_v26 = vld [vmem:[#allocation99_spill] sm:$0xff]  ;;  %v10839_v53 = vld [vmem:[#allocation102_spill] sm:$0xff] }
 0x2a5   : > { %v2457_v51 = vpop.f32.mrf.mxu0  ;;  %v1754_v1 = vadd.f32 %v10836_v26, %v10835_v43  ;;  %v1756_v48 = vadd.f32 %v10839_v53, %v10838_v50  ;;  %v10843_v43 = vld [vmem:[#allocation105_spill] sm:$0xff] }
 0x2a6   : > { %10830 = vst [vmem:[#allocation18_spill] sm:$0xff] %v9303_v30  ;;  %v9306_v40 = vmax.f32 %v2965_v11, %v2969_v27  ;;  %v2970_v34 = vmax.f32 %v2842_v52, 0.0  ;;  %v2843_v33 = vadd.f32 %v9055_v58, %v2703_v45  ;;  %v2704_v17 = vadd.f32 %v2457_v51, %v1752_v41  ;;  %v10842_v41 = vld [vmem:[#allocation35_spill] sm:$0xff] }
 0x2a7   : > { %v2459_v61 = vpop.f32.mrf.mxu0  ;;  %v1758_v26 = vadd.f32 %v10843_v43, %v10842_v41  ;;  %v10848_v43 = vld [vmem:[#allocation39_spill] sm:$0xff] }
 0x2a8   : > { %10831 = vst [vmem:[#allocation54_spill] sm:$0xff] %v9306_v40  ;;  %v9313_v2 = vmax.f32 %v2966_v38, %v2970_v34  ;;  %v2971_v31 = vmax.f32 %v2843_v33, 0.0  ;;  %v7779_v11 = vpack.i.bf16 %v9306_v40, %v9303_v30  ;;  %v2705_v52 = vadd.f32 %v2459_v61, %v1754_v1  ;;  %v10840_v38 = vld [vmem:[#allocation36_spill] sm:$0xff]  ;;  %v10845_v1 = vld [vmem:[#allocation111_spill] sm:$0xff] }
 0x2a9   : > { %v2461_v59 = vpop.f32.mrf.mxu0  ;;  %v10841_v34 = vld [vmem:[#allocation108_spill] sm:$0xff]  ;;  %v1768_v39 = vadd.f32 %v10849_v44, %v10848_v43 }
 0x2aa   : > { %10834 = vst [vmem:[#allocation20_spill] sm:$0xff] %v9313_v2  ;;  %v9319_v27 = vmax.f32 %v2967_v24, %v2971_v31  ;;  %7780 = vrot.lane.b32.xlu0 %v7779_v11, %s8337_s15  ;;  %v1762_v33 = vadd.f32 %v10841_v34, %v10840_v38  ;;  %v2844_v24 = vadd.f32 %v9052_v25, %v2704_v17  ;;  %v10844_v31 = vld [vmem:[#allocation37_spill] sm:$0xff]  ;;  %v10846_v34 = vld [vmem:[#allocation38_spill] sm:$0xff] }
 0x2ab   : > { %v2463_v45 = vpop.f32.mrf.mxu0  ;;  %v1764_v11 = vadd.f32 %v10845_v1, %v10844_v31  ;;  %v2706_v40 = vadd.f32 %v2461_v59, %v1756_v48  ;;  %v2845_v50 = vadd.f32 %v9055_v58, %v2705_v52 }
 0x2ac   : > { %10837 = vst [vmem:[#allocation60_spill] sm:$0xff] %v9319_v27  ;;  %v7784_v51 = vpack.i.bf16 %v9319_v27, %v9313_v2  ;;  %v2707_v53 = vadd.f32 %v2463_v45, %v1758_v26  ;;  %v1766_v27 = vadd.f32 %v10847_v32, %v10846_v34  ;;  %v9339_v2 = vpop.f32.mrf.mxu1  ;;  %v2972_v31 = vmax.f32 %v2844_v24, 0.0 }
 0x2ad   : > { %v2467_v61 = vpop.f32.mrf.mxu0  ;;  %v2846_v48 = vadd.f32 %v9052_v25, %v2706_v40 }
 0x2ae   : > { %v2708_v30 = vadd.f32 %v2467_v61, %v1762_v33  ;;  %7785 = vrot.lane.b32.xlu1 %v7784_v51, %s8337_s15  ;;  %v2973_v51 = vmax.f32 %v2845_v50, 0.0  ;;  %v2847_v26 = vadd.f32 %v9055_v58, %v2707_v53  ;;  %v9347_v61 = vpop.f32.mrf.mxu1  ;;  %v10854_v50 = vld [vmem:[#allocation120_spill] sm:$0xff] }
 0x2af   : > { %v2469_v38 = vpop.f32.mrf.mxu0  ;;  %10850 = vst [vmem:[#allocation19_spill] sm:$0xff] %v9347_v61 }
 0x2b0   : > { %v2848_v41 = vadd.f32 %v9052_v25, %v2708_v30  ;;  %v2709_v17 = vadd.f32 %v2469_v38, %v1764_v11  ;;  %v2974_v38 = vmax.f32 %v2846_v48, 0.0  ;;  %v9357_v43 = vpop.f32.mrf.mxu1 }
 0x2b1   : > { %v2471_v59 = vpop.f32.mrf.mxu0  ;;  %10855 = vst [vmem:[#allocation63_spill] sm:$0xff] %v9357_v43  ;;  %v10872_v43 = vld [vmem:[#allocation141_spill] sm:$0xff] }
 0x2b2   : > { %v2976_v33 = vmax.f32 %v2848_v41, 0.0  ;;  %v2849_v52 = vadd.f32 %v9055_v58, %v2709_v17  ;;  %v2710_v45 = vadd.f32 %v2471_v59, %v1766_v27  ;;  %v10853_v27 = vld [vmem:[#allocation40_spill] sm:$0xff]  ;;  %v2975_v59 = vmax.f32 %v2847_v26, 0.0  ;;  %v9372_v46 = vpop.f32.mrf.mxu1 }
 0x2b3   : > { %v2473_v32 = vpop.f32.mrf.mxu0  ;;  %v1772_v17 = vadd.f32 %v10854_v50, %v10853_v27  ;;  %v10860_v27 = vld [vmem:[#allocation43_spill] sm:$0xff]  ;;  %v10861_v50 = vld [vmem:[#allocation126_spill] sm:$0xff]  ;;  %10864 = vst [vmem:[#allocation23_spill] sm:$0xff] %v9372_v46 }
 0x2b4   : > { %v9349_v1 = vmax.f32 %v2972_v31, %v2976_v33  ;;  %v2977_v30 = vmax.f32 %v2849_v52, 0.0  ;;  %v2850_v11 = vadd.f32 %v9052_v25, %v2710_v45  ;;  %v2711_v44 = vadd.f32 %v2473_v32, %v1768_v39  ;;  %v10857_v52 = vld [vmem:[#allocation41_spill] sm:$0xff]  ;;  %v10858_v45 = vld [vmem:[#allocation123_spill] sm:$0xff]  ;;  %v10870_v46 = vld [vmem:[#allocation138_spill] sm:$0xff] }
 0x2b5   : > { %v2477_v24 = vpop.f32.mrf.mxu0  ;;  %v1774_v39 = vadd.f32 %v10858_v45, %v10857_v52  ;;  %v1776_v26 = vadd.f32 %v10861_v50, %v10860_v27  ;;  %v10866_v52 = vld [vmem:[#allocation129_spill] sm:$0xff] }
 0x2b6   : > { %10851 = vst [vmem:[#allocation57_spill] sm:$0xff] %v9349_v1  ;;  %v9352_v34 = vmax.f32 %v2973_v51, %v2977_v30  ;;  %v2978_v40 = vmax.f32 %v2850_v11, 0.0  ;;  %v2851_v41 = vadd.f32 %v9055_v58, %v2711_v44  ;;  %v2712_v32 = vadd.f32 %v2477_v24, %v1772_v17  ;;  %v10865_v17 = vld [vmem:[#allocation44_spill] sm:$0xff] }
 0x2b7   : > { %v2479_v53 = vpop.f32.mrf.mxu0  ;;  %v1778_v45 = vadd.f32 %v10866_v52, %v10865_v17  ;;  %v10871_v52 = vld [vmem:[#allocation50_spill] sm:$0xff] }
 0x2b8   : > { %10852 = vst [vmem:[#allocation21_spill] sm:$0xff] %v9352_v34  ;;  %v9359_v31 = vmax.f32 %v2974_v38, %v2978_v40  ;;  %v2979_v33 = vmax.f32 %v2851_v41, 0.0  ;;  %v7789_v51 = vpack.i.bf16 %v9352_v34, %v9349_v1  ;;  %v2713_v11 = vadd.f32 %v2479_v53, %v1774_v39  ;;  %v10862_v38 = vld [vmem:[#allocation46_spill] sm:$0xff]  ;;  %v10863_v40 = vld [vmem:[#allocation132_spill] sm:$0xff]  ;;  %v10868_v39 = vld [vmem:[#allocation135_spill] sm:$0xff] }
 0x2b9   : > { %v2481_v48 = vpop.f32.mrf.mxu0  ;;  %v1782_v41 = vadd.f32 %v10863_v40, %v10862_v38  ;;  %v10869_v40 = vld [vmem:[#allocation49_spill] sm:$0xff]  ;;  %v1788_v61 = vadd.f32 %v10872_v43, %v10871_v52  ;;  %v10879_v52 = vld [vmem:[#allocation147_spill] sm:$0xff] }
 0x2ba   : > { %10856 = vst [vmem:[#allocation22_spill] sm:$0xff] %v9359_v31  ;;  %v9365_v30 = vmax.f32 %v2975_v59, %v2979_v33  ;;  %7790 = vrot.lane.b32.xlu0 %v7789_v51, %s8337_s15  ;;  %v2852_v59 = vadd.f32 %v9052_v25, %v2712_v32  ;;  %v10867_v33 = vld [vmem:[#allocation47_spill] sm:$0xff]  ;;  %v2714_v34 = vadd.f32 %v2481_v48, %v1776_v26 }
 0x2bb   : > { %v2483_v44 = vpop.f32.mrf.mxu0  ;;  %v1784_v51 = vadd.f32 %v10868_v39, %v10867_v33  ;;  %v2853_v27 = vadd.f32 %v9055_v58, %v2713_v11 }
 0x2bc   : > { %10859 = vst [vmem:[#allocation66_spill] sm:$0xff] %v9365_v30  ;;  %v7794_v24 = vpack.i.bf16 %v9365_v30, %v9359_v31  ;;  %v2715_v50 = vadd.f32 %v2483_v44, %v1778_v45  ;;  %v1786_v30 = vadd.f32 %v10870_v46, %v10869_v40  ;;  %v9385_v31 = vpop.f32.mrf.mxu1  ;;  %v2980_v33 = vmax.f32 %v2852_v59, 0.0 }
 0x2bd   : > { %v2487_v53 = vpop.f32.mrf.mxu0  ;;  %v2854_v26 = vadd.f32 %v9052_v25, %v2714_v34 }
 0x2be   : > { %v2716_v1 = vadd.f32 %v2487_v53, %v1782_v41  ;;  %7795 = vrot.lane.b32.xlu1 %v7794_v24, %s8337_s15  ;;  %v2981_v24 = vmax.f32 %v2853_v27, 0.0  ;;  %v2855_v45 = vadd.f32 %v9055_v58, %v2715_v50  ;;  %v9393_v53 = vpop.f32.mrf.mxu1  ;;  %v10877_v27 = vld [vmem:[#allocation144_spill] sm:$0xff]  ;;  %v10878_v50 = vld [vmem:[#allocation53_spill] sm:$0xff] }
 0x2bf   : > { %v2489_v38 = vpop.f32.mrf.mxu0  ;;  %10873 = vst [vmem:[#allocation69_spill] sm:$0xff] %v9393_v53 }
 0x2c0   : > { %v2856_v17 = vadd.f32 %v9052_v25, %v2716_v1  ;;  %v2717_v32 = vadd.f32 %v2489_v38, %v1784_v51  ;;  %v2982_v38 = vmax.f32 %v2854_v26, 0.0 }
 0x2c1   : > { %v2491_v48 = vpop.f32.mrf.mxu0 }
 0x2c2   : > { %v2984_v41 = vmax.f32 %v2856_v17, 0.0  ;;  %v2857_v11 = vadd.f32 %v9055_v58, %v2717_v32  ;;  %v2718_v44 = vadd.f32 %v2491_v48, %v1786_v30  ;;  %v10876_v30 = vld [vmem:[#allocation52_spill] sm:$0xff]  ;;  %v1794_v48 = vadd.f32 %v10879_v52, %v10878_v50  ;;  %v10885_v52 = vld [vmem:[#allocation149_spill] sm:$0xff] }
 0x2c3   : > { %v2493_v46 = vpop.f32.mrf.mxu0  ;;  %v1792_v32 = vadd.f32 %v10877_v27, %v10876_v30  ;;  %v10884_v50 = vld [vmem:[#allocation56_spill] sm:$0xff] }
 0x2c4   : > { %v9395_v39 = vmax.f32 %v2980_v33, %v2984_v41  ;;  %v2985_v1 = vmax.f32 %v2857_v11, 0.0  ;;  %v2858_v51 = vadd.f32 %v9052_v25, %v2718_v44  ;;  %v2719_v43 = vadd.f32 %v2493_v46, %v1788_v61  ;;  %v9405_v33 = vpop.f32.mrf.mxu1 }
 0x2c5   : > { %v2497_v59 = vpop.f32.mrf.mxu0  ;;  %v2983_v41 = vmax.f32 %v2855_v45, 0.0  ;;  %v1798_v45 = vadd.f32 %v10885_v52, %v10884_v50 }
 0x2c6   : > { %10874 = vst [vmem:[#allocation24_spill] sm:$0xff] %v9395_v39  ;;  %v9398_v40 = vmax.f32 %v2981_v24, %v2985_v1  ;;  %v2986_v34 = vmax.f32 %v2858_v51, 0.0  ;;  %v2859_v17 = vadd.f32 %v9055_v58, %v2719_v43  ;;  %v2720_v44 = vadd.f32 %v2497_v59, %v1792_v32  ;;  %v10882_v51 = vld [vmem:[#allocation55_spill] sm:$0xff]  ;;  %v10883_v43 = vld [vmem:[#allocation148_spill] sm:$0xff]  ;;  %v9420_v59 = vpop.f32.mrf.mxu1 }
 0x2c7   : > { %v2499_v53 = vpop.f32.mrf.mxu0  ;;  %v1796_v30 = vadd.f32 %v10883_v43, %v10882_v51  ;;  %10888 = vst [vmem:[#allocation26_spill] sm:$0xff] %v9420_v59  ;;  %v10889_v51 = vld [vmem:[#allocation59_spill] sm:$0xff] }
 0x2c8   : > { %10875 = vst [vmem:[#allocation72_spill] sm:$0xff] %v9398_v40  ;;  %v9407_v11 = vmax.f32 %v2982_v38, %v2986_v34  ;;  %v2987_v61 = vmax.f32 %v2859_v17, 0.0  ;;  %v2721_v26 = vadd.f32 %v2499_v53, %v1794_v48  ;;  %v7799_v46 = vpack.i.bf16 %v9398_v40, %v9395_v39  ;;  %v10886_v38 = vld [vmem:[#allocation58_spill] sm:$0xff] }
 0x2c9   : > { %v2501_v24 = vpop.f32.mrf.mxu0  ;;  %v10887_v34 = vld [vmem:[#allocation150_spill] sm:$0xff]  ;;  %v2860_v32 = vadd.f32 %v9052_v25, %v2720_v44  ;;  %v1804_v43 = vadd.f32 %v9073_v22, %v10889_v51 }
 0x2ca   : > { %10880 = vst [vmem:[#allocation25_spill] sm:$0xff] %v9407_v11  ;;  %v9411_v1 = vmax.f32 %v2983_v41, %v2987_v61  ;;  %7800 = vrot.lane.b32.xlu0 %v7799_v46, %s8337_s15  ;;  %v1802_v17 = vadd.f32 %v10887_v34, %v10886_v38  ;;  %v2861_v48 = vadd.f32 %v9055_v58, %v2721_v26  ;;  %v10890_v38 = vld [vmem:[#allocation61_spill] sm:$0xff]  ;;  %v10891_v44 = vld [vmem:[#allocation62_spill] sm:$0xff] }
 0x2cb   : > { %v2503_v27 = vpop.f32.mrf.mxu0  ;;  %v2722_v41 = vadd.f32 %v2501_v24, %v1796_v30  ;;  %v1806_v34 = vadd.f32 %v9083_v7, %v10890_v38  ;;  %v1808_v26 = vadd.f32 %v9094_v62, %v10891_v44  ;;  %v9433_v24 = vpop.f32.mrf.mxu1  ;;  %v2988_v51 = vmax.f32 %v2860_v32, 0.0 }
 0x2cc   : > { %10881 = vst [vmem:[#allocation75_spill] sm:$0xff] %v9411_v1  ;;  %v7804_v53 = vpack.i.bf16 %v9411_v1, %v9407_v11  ;;  %v7731_v61 = vpop.permute.xlu0 %7730  ;;  %v2723_v40 = vadd.f32 %v2503_v27, %v1798_v45  ;;  %10892 = vst [vmem:[#allocation78_spill] sm:$0xff] %v9433_v24 }
 0x2cd   : > { %v2507_v46 = vpop.f32.mrf.mxu0  ;;  %v7733_v50 = vunpack.i.h.bf16 %v7731_v61  ;;  %v7732_v52 = vunpack.i.l.bf16 %v7731_v61  ;;  %v2989_v61 = vmax.f32 %v2861_v48, 0.0  ;;  %v9443_v32 = vpop.f32.mrf.mxu1 }
 0x2ce   : > { %7805 = vrot.lane.b32.xlu1 %v7804_v53, %s8337_s15  ;;  %v2724_v1 = vadd.f32 %v2507_v46, %v1802_v17  ;;  %v2862_v53 = vadd.f32 %v9052_v25, %v2722_v41  ;;  %v2863_v38 = vadd.f32 %v9055_v58, %v2723_v40 }
 0x2cf   : > { %v2509_v11 = vpop.f32.mrf.mxu0  ;;  %v3309_v30 = vsel %vm3308_vm0, %v7732_v52, %v7733_v50  ;;  %v3437_v39 = vsel %vm3308_vm0, %v7733_v50, %v7732_v52 }
 0x2d0   : > { %v2725_v22 = vadd.f32 %v2509_v11, %v1804_v43  ;;  %v2864_v59 = vadd.f32 %v9052_v25, %v2724_v1  ;;  %v7736_v7 = vpop.permute.xlu0 %7735  ;;  %v3469_v44 = vmax.f32 %v9077_v12, %v3309_v30  ;;  %v3470_v11 = vmax.f32 %v9080_v56, %v3437_v39  ;;  %v10893_v30 = vld [vmem:[#allocation64_spill] sm:$0xff] }
 0x2d1   : > { %v2511_v27 = vpop.f32.mrf.mxu0  ;;  %v7738_v17 = vunpack.i.h.bf16 %v7736_v7  ;;  %v7737_v46 = vunpack.i.l.bf16 %v7736_v7  ;;  %v1812_v56 = vadd.f32 %v9105_v8, %v10893_v30  ;;  %v2990_v39 = vmax.f32 %v2862_v53, 0.0 }
 0x2d2   : > { %v2865_v45 = vadd.f32 %v9055_v58, %v2725_v22  ;;  %v2726_v62 = vadd.f32 %v2511_v27, %v1806_v34  ;;  %v2992_v24 = vmax.f32 %v2864_v59, 0.0  ;;  %v8098_v59 = vld [vmem:[#allocation8 + $0x78] sm:$0xff]  }
 0x2d3   : > { %v2513_v50 = vpop.f32.mrf.mxu0  ;;  %v3310_v1 = vsel %vm3308_vm0, %v7737_v46, %v7738_v17  ;;  %v3438_v41 = vsel %vm3308_vm0, %v7738_v17, %v7737_v46  ;;  %7142 = vmatprep.subr.bf16.mxu1 %v8098_v59 }
 0x2d4   : > { %v2993_v48 = vmax.f32 %v2865_v45, 0.0  ;;  %v2866_v43 = vadd.f32 %v9052_v25, %v2726_v62  ;;  %v9448_v52 = vmax.f32 %v2988_v51, %v2992_v24  ;;  %v3471_v34 = vmax.f32 %v9085_v60, %v3310_v1  ;;  %v10894_v45 = vld [vmem:[#allocation65_spill] sm:$0xff]  ;;  %v9463_v51 = vpop.f32.mrf.mxu1 }
 0x2d5   : > { %v2727_v40 = vadd.f32 %v2513_v50, %v1808_v26  ;;  %v2517_v22 = vpop.f32.mrf.mxu0  ;;  %v3472_v12 = vmax.f32 %v9090_v47, %v3438_v41  ;;  %v1814_v17 = vadd.f32 %v9113_v54, %v10894_v45  ;;  %v8099_v47 = vld [vmem:[#allocation8 + $0x38] sm:$0xff]  }
 0x2d6   : > { %v9454_v7 = vmax.f32 %v2989_v61, %v2993_v48  ;;  %v2994_v27 = vmax.f32 %v2866_v43, 0.0  ;;  %v9458_v46 = vpack.c.bf16 %v3471_v34, %v3469_v44  ;;  %v2991_v61 = vmax.f32 %v2863_v38, 0.0  ;;  %v10896_v43 = vld [vmem:[#allocation68_spill] sm:$0xff]  ;;  %v10897_v34 = vld [vmem:[#allocation70_spill] sm:$0xff] }
 0x2d7   : > { %v2867_v24 = vadd.f32 %v9055_v58, %v2727_v40  ;;  %v2519_v60 = vpop.f32.mrf.mxu0  ;;  %v9461_v26 = vpack.c.bf16 %v3472_v12, %v3470_v11  ;;  %v2728_v50 = vadd.f32 %v2517_v22, %v1812_v56  ;;  %v10895_v11 = vld [vmem:[#allocation67_spill] sm:$0xff]  ;;  %v1818_v38 = vadd.f32 %v9140_v4, %v10896_v43  ;;  %v9480_v22 = vpop.f32.mrf.mxu1 }
 0x2d8   : > { %v9465_v62 = vmax.f32 %v2990_v39, %v2994_v27  ;;  %v7809_v8 = vpack.i.bf16 %v9454_v7, %v9448_v52  ;;  %v2729_v54 = vadd.f32 %v2519_v60, %v1814_v17  ;;  %v1816_v48 = vadd.f32 %v9125_v42, %v10895_v11  ;;  %v10898_v27 = vld [vmem:[#allocation71_spill] sm:$0xff]  ;;  %v10900_v60 = vld [vmem:[#allocation74_spill] sm:$0xff] }
 0x2d9   : > { %v2995_v53 = vmax.f32 %v2867_v24, 0.0  ;;  %4148 = vmatprep.mubr.bf16.mxu1 %v9461_v26  ;;  %v2521_v44 = vpop.f32.mrf.mxu0  ;;  %v1822_v40 = vadd.f32 %v9154_v6, %v10897_v34  ;;  %v2868_v12 = vadd.f32 %v9052_v25, %v2728_v50  ;;  %v1824_v45 = vadd.f32 %v9162_v20, %v10898_v27  ;;  %v10899_v24 = vld [vmem:[#allocation73_spill] sm:$0xff]  ;;  %v10901_v50 = vld [vmem:[#allocation76_spill] sm:$0xff] }
 0x2da   : > { %4149 = vmatmul.mubr.bf16.vlgmr.msra.gmra.mxu1 %v9458_v46  ;;  %7810 = vrot.lane.b32.xlu0 %v7809_v8, %s8337_s15  ;;  %v2869_v59 = vadd.f32 %v9055_v58, %v2729_v54  ;;  %v2730_v30 = vadd.f32 %v2521_v44, %v1816_v48  ;;  %v1826_v6 = vadd.f32 %v9173_v5, %v10899_v24  ;;  %v9495_v44 = vpop.f32.mrf.mxu1 }
 0x2db   : > { %v2523_v1 = vpop.f32.mrf.mxu0  ;;  %v9474_v41 = vmax.f32 %v2991_v61, %v2995_v53  ;;  %7143 = vmatpush3.bf16.msra.mxu1 %v8099_v47  ;;  %v1828_v47 = vadd.f32 %v9188_v15, %v10900_v60  ;;  %v1832_v54 = vadd.f32 %v9201_v21, %v10901_v50  ;;  %v2996_v43 = vmax.f32 %v2868_v12, 0.0  ;;  %v8100_v50 = vld [vmem:[#allocation8 + $0x70] sm:$0xff]  }
 0x2dc   : > { %v7741_v56 = vpop.permute.xlu1 %7740  ;;  %v2731_v8 = vadd.f32 %v2523_v1, %v1818_v38  ;;  %v2997_v5 = vmax.f32 %v2869_v59, 0.0  ;;  %v2870_v34 = vadd.f32 %v9052_v25, %v2730_v30  ;;  %v9505_v59 = vpop.f32.mrf.mxu1  ;;  %7144 = vmatprep.subr.bf16.mxu1 %v8100_v50  ;;  %v10908_v50 = vld [vmem:[#allocation83_spill] sm:$0xff] }
 0x2dd   : > { %v2527_v39 = vpop.f32.mrf.mxu0  ;;  %v7814_v42 = vpack.i.bf16 %v9474_v41, %v9465_v62  ;;  %v7743_v17 = vunpack.i.h.bf16 %v7741_v56  ;;  %v7742_v4 = vunpack.i.l.bf16 %v7741_v56 }
 0x2de   : > { %v2732_v61 = vadd.f32 %v2527_v39, %v1822_v40 }
 0x2df   : > { %7815 = vrot.lane.b32.xlu1 %v7814_v42, %s8337_s15  ;;  %v2529_v53 = vpop.f32.mrf.mxu0  ;;  %v3311_v20 = vsel %vm3308_vm0, %v7742_v4, %v7743_v17  ;;  %v3439_v11 = vsel %vm3308_vm0, %v7743_v17, %v7742_v4  ;;  %v2871_v42 = vadd.f32 %v9055_v58, %v2731_v8 }
 0x2e0   : > { %v2733_v48 = vadd.f32 %v2529_v53, %v1824_v45  ;;  %v2872_v15 = vadd.f32 %v9052_v25, %v2732_v61  ;;  %v7746_v1 = vpop.permute.xlu1 %7745  ;;  %v3473_v27 = vmax.f32 %v9117_v13, %v3311_v20  ;;  %v3474_v12 = vmax.f32 %v9120_v28, %v3439_v11  ;;  %v8101_v20 = vld [vmem:[#allocation8 + $0x30] sm:$0xff]   ;;  %v10902_v28 = vld [vmem:[#allocation77_spill] sm:$0xff] }
 0x2e1   : > { %v2531_v38 = vpop.f32.mrf.mxu0  ;;  %v7748_v56 = vunpack.i.h.bf16 %v7746_v1  ;;  %v7747_v39 = vunpack.i.l.bf16 %v7746_v1  ;;  %v1834_v11 = vadd.f32 %v9209_v36, %v10902_v28  ;;  %7145 = vmatpush3.bf16.msra.mxu1 %v8101_v20  ;;  %v1844_v20 = vadd.f32 %v9255_v57, %v10908_v50  ;;  %v10909_v28 = vld [vmem:[#allocation85_spill] sm:$0xff] }
 0x2e2   : > { %v2873_v40 = vadd.f32 %v9055_v58, %v2733_v48  ;;  %v2734_v21 = vadd.f32 %v2531_v38, %v1826_v6  ;;  %v3000_v24 = vmax.f32 %v2872_v15, 0.0  ;;  %v2998_v48 = vmax.f32 %v2870_v34, 0.0 }
 0x2e3   : > { %v2533_v17 = vpop.f32.mrf.mxu0  ;;  %v3312_v45 = vsel %vm3308_vm0, %v7747_v39, %v7748_v56  ;;  %v3440_v4 = vsel %vm3308_vm0, %v7748_v56, %v7747_v39 }
 0x2e4   : > { %v3001_v30 = vmax.f32 %v2873_v40, 0.0  ;;  %v2874_v60 = vadd.f32 %v9052_v25, %v2734_v21  ;;  %v9510_v61 = vmax.f32 %v2996_v43, %v3000_v24  ;;  %v3475_v6 = vmax.f32 %v9127_v9, %v3312_v45  ;;  %v9523_v9 = vpop.f32.mrf.mxu1  ;;  %v10906_v45 = vld [vmem:[#allocation80_spill] sm:$0xff] }
 0x2e5   : > { %v2735_v8 = vadd.f32 %v2533_v17, %v1828_v47  ;;  %v2537_v53 = vpop.f32.mrf.mxu0  ;;  %v3476_v13 = vmax.f32 %v9133_v3, %v3440_v4  ;;  %v1838_v4 = vadd.f32 %v9234_v35, %v10906_v45 }
 0x2e6   : > { %v9516_v15 = vmax.f32 %v2997_v5, %v3001_v30  ;;  %v3002_v1 = vmax.f32 %v2874_v60, 0.0  ;;  %v9521_v56 = vpack.c.bf16 %v3475_v6, %v3473_v27  ;;  %v2736_v47 = vadd.f32 %v2537_v53, %v1832_v54  ;;  %v10905_v27 = vld [vmem:[#allocation79_spill] sm:$0xff]  ;;  %v10907_v60 = vld [vmem:[#allocation82_spill] sm:$0xff] }
 0x2e7   : > { %v2875_v38 = vadd.f32 %v9055_v58, %v2735_v8  ;;  %v2539_v40 = vpop.f32.mrf.mxu0  ;;  %v9519_v43 = vpack.c.bf16 %v3476_v13, %v3474_v12  ;;  %v2999_v5 = vmax.f32 %v2871_v42, 0.0  ;;  %v1836_v24 = vadd.f32 %v9219_v23, %v10905_v27  ;;  %v9538_v12 = vpop.f32.mrf.mxu1 }
 0x2e8   : > { %10904 = vst [vmem:[#allocation84_spill] sm:$0xff] %v9521_v56  ;;  %v9525_v3 = vmax.f32 %v2998_v48, %v3002_v1  ;;  %v2737_v39 = vadd.f32 %v2539_v40, %v1834_v11  ;;  %v7819_v36 = vpack.i.bf16 %v9516_v15, %v9510_v61  ;;  %v2876_v42 = vadd.f32 %v9052_v25, %v2736_v47  ;;  %v10911_v40 = vld [vmem:[#allocation88_spill] sm:$0xff] }
 0x2e9   : > { %10903 = vst [vmem:[#allocation28_spill] sm:$0xff] %v9519_v43  ;;  %v3003_v34 = vmax.f32 %v2875_v38, 0.0  ;;  %4156 = vmatprep.mubr.bf16.mxu1 %v9519_v43  ;;  %4897 = vmatprep.mubr.bf16.mxu0 %v9519_v43  ;;  %v2541_v21 = vpop.f32.mrf.mxu0  ;;  %v1842_v6 = vadd.f32 %v9247_v37, %v10907_v60  ;;  %v1846_v11 = vadd.f32 %v9265_v14, %v10909_v28  ;;  %v10910_v38 = vld [vmem:[#allocation86_spill] sm:$0xff]  ;;  %v9559_v57 = vpop.f32.mrf.mxu1 }
 0x2ea   : > { %4157 = vmatmul.mubr.bf16.gmra.mxu1 %v9521_v56  ;;  %4898 = vmatmul.mubr.bf16.vlgmr.msra.gmra.mxu0 %v9521_v56  ;;  %v2877_v30 = vadd.f32 %v9055_v58, %v2737_v39  ;;  %v2738_v8 = vadd.f32 %v2541_v21, %v1836_v24  ;;  %v1848_v35 = vadd.f32 %v9280_v16, %v10910_v38  ;;  %v3004_v21 = vmax.f32 %v2876_v42, 0.0  ;;  %v10946_v56 = vld [vmem:[#allocation51_spill] sm:$0xff] }
 0x2eb   : > { %7820 = vrot.lane.b32.xlu0 %v7819_v36, %s8337_s15  ;;  %v2543_v54 = vpop.f32.mrf.mxu0  ;;  %v9536_v17 = vmax.f32 %v2999_v5, %v3003_v34  ;;  %v1852_v37 = vadd.f32 %v9293_v63, %v10911_v40  ;;  %v10912_v5 = vld [vmem:[#allocation89_spill] sm:$0xff]  ;;  %v9569_v50 = vpop.f32.mrf.mxu1 }
 0x2ec   : > { %v7751_v53 = vpop.permute.xlu0 %7750  ;;  %v2739_v47 = vadd.f32 %v2543_v54, %v1838_v4  ;;  %v1854_v34 = vadd.f32 %v9301_v49, %v10912_v5  ;;  %v3005_v14 = vmax.f32 %v2877_v30, 0.0  ;;  %v2878_v45 = vadd.f32 %v9052_v25, %v2738_v8 }
 0x2ed   : > { %v2547_v23 = vpop.f32.mrf.mxu0  ;;  %v7824_v13 = vpack.i.bf16 %v9536_v17, %v9525_v3  ;;  %v7753_v48 = vunpack.i.h.bf16 %v7751_v53  ;;  %v7752_v1 = vunpack.i.l.bf16 %v7751_v53 }
 0x2ee   : > { %v2740_v39 = vadd.f32 %v2547_v23, %v1842_v6  ;;  %v2879_v23 = vadd.f32 %v9055_v58, %v2739_v47 }
 0x2ef   : > { %7825 = vrot.lane.b32.xlu1 %v7824_v13, %s8337_s15  ;;  %v2549_v36 = vpop.f32.mrf.mxu0  ;;  %v3313_v4 = vsel %vm3308_vm0, %v7752_v1, %v7753_v48  ;;  %v3441_v6 = vsel %vm3308_vm0, %v7753_v48, %v7752_v1  ;;  %v8102_v48 = vld [vmem:[#allocation8 + $0x68] sm:$0xff]  }
 0x2f0   : > { %v2741_v27 = vadd.f32 %v2549_v36, %v1844_v20  ;;  %v7756_v24 = vpop.permute.xlu1 %7755  ;;  %v2880_v16 = vadd.f32 %v9052_v25, %v2740_v39  ;;  %v8103_v1 = vld [vmem:[#allocation8 + $0x28] sm:$0xff]   ;;  %v3478_v36 = vmax.f32 %v9167_v10, %v3441_v6  ;;  %7146 = vmatprep.subr.bf16.mxu1 %v8102_v48 }
 0x2f1   : > { %v7758_v60 = vunpack.i.h.bf16 %v7756_v24  ;;  %v7757_v63 = vunpack.i.l.bf16 %v7756_v24  ;;  %v2551_v54 = vpop.f32.mrf.mxu0  ;;  %7147 = vmatpush3.bf16.msra.mxu1 %v8103_v1  ;;  %v10918_v48 = vld [vmem:[#allocation95_spill] sm:$0xff] }
 0x2f2   : > { %v2881_v53 = vadd.f32 %v9055_v58, %v2741_v27  ;;  %v2742_v49 = vadd.f32 %v2551_v54, %v1846_v11  ;;  %v3008_v42 = vmax.f32 %v2880_v16, 0.0  ;;  %v3477_v11 = vmax.f32 %v9164_v19, %v3313_v4  ;;  %v9585_v19 = vpop.f32.mrf.mxu1  ;;  %v10919_v1 = vld [vmem:[#allocation19_spill] sm:$0xff] }
 0x2f3   : > { %v3314_v30 = vsel %vm3308_vm0, %v7757_v63, %v7758_v60  ;;  %v3442_v13 = vsel %vm3308_vm0, %v7758_v60, %v7757_v63  ;;  %v2553_v8 = vpop.f32.mrf.mxu0  ;;  %v3006_v27 = vmax.f32 %v2878_v45, 0.0  ;;  %v3007_v60 = vmax.f32 %v2879_v23, 0.0 }
 0x2f4   : > { %v3009_v20 = vmax.f32 %v2881_v53, 0.0  ;;  %v3479_v28 = vmax.f32 %v9175_v18, %v3314_v30  ;;  %v2882_v38 = vadd.f32 %v9052_v25, %v2742_v49  ;;  %v2743_v40 = vadd.f32 %v2553_v8, %v1848_v35  ;;  %v10915_v53 = vld [vmem:[#allocation91_spill] sm:$0xff] }
 0x2f5   : > { %v9574_v39 = vmax.f32 %v3004_v21, %v3008_v42  ;;  %v2557_v47 = vpop.f32.mrf.mxu0  ;;  %v3480_v5 = vmax.f32 %v9181_v0, %v3442_v13  ;;  %v1856_v49 = vadd.f32 %v9311_v29, %v10915_v53  ;;  %v10916_v13 = vld [vmem:[#allocation92_spill] sm:$0xff] }
 0x2f6   : > { %v9578_v24 = vmax.f32 %v3005_v14, %v3009_v20  ;;  %v3010_v16 = vmax.f32 %v2882_v38, 0.0  ;;  %v2883_v18 = vadd.f32 %v9055_v58, %v2743_v40  ;;  %v9583_v54 = vpack.c.bf16 %v3479_v28, %v3477_v11  ;;  %v10917_v20 = vld [vmem:[#allocation94_spill] sm:$0xff] }
 0x2f7   : > { %v2559_v35 = vpop.f32.mrf.mxu0  ;;  %v9581_v63 = vpack.c.bf16 %v3480_v5, %v3478_v36  ;;  %v2744_v0 = vadd.f32 %v2557_v47, %v1852_v37  ;;  %v1858_v8 = vadd.f32 %v9326_v55, %v10916_v13  ;;  %v1862_v28 = vadd.f32 %v9339_v2, %v10917_v20  ;;  %v10920_v47 = vld [vmem:[#allocation97_spill] sm:$0xff]  ;;  %v10921_v36 = vld [vmem:[#allocation63_spill] sm:$0xff]  ;;  %v10924_v55 = vld [vmem:[#allocation100_spill] sm:$0xff] }
 0x2f8   : > { %10914 = vst [vmem:[#allocation81_spill] sm:$0xff] %v9583_v54  ;;  %v9587_v21 = vmax.f32 %v3006_v27, %v3010_v16  ;;  %v3011_v10 = vmax.f32 %v2883_v18, 0.0  ;;  %v2745_v45 = vadd.f32 %v2559_v35, %v1854_v34  ;;  %v7829_v4 = vpack.i.bf16 %v9578_v24, %v9574_v39  ;;  %v9600_v34 = vpop.f32.mrf.mxu1  ;;  %v10922_v18 = vld [vmem:[#allocation98_spill] sm:$0xff] }
 0x2f9   : > { %10913 = vst [vmem:[#allocation27_spill] sm:$0xff] %v9581_v63  ;;  %4164 = vmatprep.mubr.bf16.mxu1 %v9581_v63  ;;  %4905 = vmatprep.mubr.bf16.mxu0 %v9581_v63  ;;  %v2561_v14 = vpop.f32.mrf.mxu0  ;;  %v2884_v23 = vadd.f32 %v9052_v25, %v2744_v0  ;;  %v1864_v11 = vadd.f32 %v10919_v1, %v10918_v48 }
 0x2fa   : > { %4165 = vmatmul.mubr.bf16.gmra.mxu1 %v9583_v54  ;;  %4906 = vmatmul.mubr.bf16.gmra.mxu0 %v9583_v54  ;;  %v9595_v6 = vmax.f32 %v3007_v60, %v3011_v10  ;;  %v2885_v42 = vadd.f32 %v9055_v58, %v2745_v45  ;;  %v2746_v38 = vadd.f32 %v2561_v14, %v1856_v49  ;;  %v10923_v60 = vld [vmem:[#allocation23_spill] sm:$0xff]  ;;  %v10925_v14 = vld [vmem:[#allocation101_spill] sm:$0xff]  ;;  %v9621_v49 = vpop.f32.mrf.mxu1 }
 0x2fb   : > { %7830 = vrot.lane.b32.xlu0 %v7829_v4, %s8337_s15  ;;  %v2563_v37 = vpop.f32.mrf.mxu0  ;;  %v1866_v5 = vadd.f32 %v10921_v36, %v10920_v47  ;;  %v1868_v35 = vadd.f32 %v10923_v60, %v10922_v18  ;;  %v1872_v10 = vadd.f32 %v9385_v31, %v10924_v55  ;;  %v10926_v4 = vld [vmem:[#allocation69_spill] sm:$0xff]  ;;  %v3012_v13 = vmax.f32 %v2884_v23, 0.0 }
 0x2fc   : > { %v7834_v30 = vpack.i.bf16 %v9595_v6, %v9587_v21  ;;  %v7761_v29 = vpop.permute.xlu0 %7760  ;;  %v2747_v2 = vadd.f32 %v2563_v37, %v1858_v8  ;;  %v1874_v53 = vadd.f32 %v10926_v4, %v10925_v14  ;;  %v3013_v20 = vmax.f32 %v2885_v42, 0.0  ;;  %v9631_v60 = vpop.f32.mrf.mxu1  ;;  %v10930_v54 = vld [vmem:[#allocation45_spill] sm:$0xff] }
 0x2fd   : > { %v2567_v40 = vpop.f32.mrf.mxu0  ;;  %v7763_v27 = vunpack.i.h.bf16 %v7761_v29  ;;  %v7762_v16 = vunpack.i.l.bf16 %v7761_v29 }
 0x2fe   : > { %7835 = vrot.lane.b32.xlu1 %v7834_v30, %s8337_s15  ;;  %v2748_v0 = vadd.f32 %v2567_v40, %v1862_v28  ;;  %v2886_v30 = vadd.f32 %v9052_v25, %v2746_v38  ;;  %v2887_v40 = vadd.f32 %v9055_v58, %v2747_v2 }
 0x2ff   : > { %v2569_v45 = vpop.f32.mrf.mxu0  ;;  %v3315_v31 = vsel %vm3308_vm0, %v7762_v16, %v7763_v27  ;;  %v3443_v37 = vsel %vm3308_vm0, %v7763_v27, %v7762_v16  ;;  %v8104_v27 = vld [vmem:[#allocation8 + $0x60] sm:$0xff]  }
 0x300   : > { %v2749_v48 = vadd.f32 %v2569_v45, %v1864_v11  ;;  %v7766_v29 = vpop.permute.xlu1 %7765  ;;  %v2888_v1 = vadd.f32 %v9052_v25, %v2748_v0  ;;  %v10927_v0 = vld [vmem:[#allocation15_spill] sm:$0xff]  ;;  %v8105_v16 = vld [vmem:[#allocation8 + $0x20] sm:$0xff]   ;;  %7148 = vmatprep.subr.bf16.mxu1 %v8104_v27  ;;  %v10934_v27 = vld [vmem:[#allocation104_spill] sm:$0xff] }
 0x301   : > { %v7768_v47 = vunpack.i.h.bf16 %v7766_v29  ;;  %v7767_v36 = vunpack.i.l.bf16 %v7766_v29  ;;  %v2571_v18 = vpop.f32.mrf.mxu0  ;;  %7149 = vmatpush3.bf16.msra.mxu1 %v8105_v16  ;;  %v10935_v16 = vld [vmem:[#allocation26_spill] sm:$0xff] }
 0x302   : > { %v2889_v8 = vadd.f32 %v9055_v58, %v2749_v48  ;;  %v2750_v28 = vadd.f32 %v2571_v18, %v1866_v5  ;;  %v3016_v23 = vmax.f32 %v2888_v1, 0.0  ;;  %v10928_v48 = vld [vmem:[#allocation14_spill] sm:$0xff] }
 0x303   : > { %v3316_v42 = vsel %vm3308_vm0, %v7767_v36, %v7768_v47  ;;  %v3444_v11 = vsel %vm3308_vm0, %v7768_v47, %v7767_v36  ;;  %v2573_v38 = vpop.f32.mrf.mxu0  ;;  %v3481_v5 = vmax.f32 %v10928_v48, %v3315_v31  ;;  %v10929_v1 = vld [vmem:[#allocation42_spill] sm:$0xff]  ;;  %v3014_v36 = vmax.f32 %v2886_v30, 0.0 }
 0x304   : > { %v3017_v55 = vmax.f32 %v2889_v8, 0.0  ;;  %v3483_v45 = vmax.f32 %v10927_v0, %v3316_v42  ;;  %v2890_v14 = vadd.f32 %v9052_v25, %v2750_v28  ;;  %v2751_v4 = vadd.f32 %v2573_v38, %v1868_v35 }
 0x305   : > { %v9636_v29 = vmax.f32 %v3012_v13, %v3016_v23  ;;  %v2577_v2 = vpop.f32.mrf.mxu0  ;;  %v3482_v18 = vmax.f32 %v10929_v1, %v3443_v37  ;;  %v3484_v47 = vmax.f32 %v10930_v54, %v3444_v11  ;;  %v3015_v28 = vmax.f32 %v2887_v40, 0.0  ;;  %v9647_v13 = vpop.f32.mrf.mxu1  ;;  %v10933_v11 = vld [vmem:[#allocation103_spill] sm:$0xff] }
 0x306   : > { %v9640_v63 = vmax.f32 %v3013_v20, %v3017_v55  ;;  %v3018_v8 = vmax.f32 %v2890_v14, 0.0  ;;  %v2891_v42 = vadd.f32 %v9055_v58, %v2751_v4  ;;  %v9645_v0 = vpack.c.bf16 %v3483_v45, %v3481_v5  ;;  %v10936_v5 = vld [vmem:[#allocation106_spill] sm:$0xff] }
 0x307   : > { %v2579_v35 = vpop.f32.mrf.mxu0  ;;  %v9643_v38 = vpack.c.bf16 %v3484_v47, %v3482_v18  ;;  %v2752_v54 = vadd.f32 %v2577_v2, %v1872_v10  ;;  %v1876_v55 = vadd.f32 %v9405_v33, %v10933_v11  ;;  %v1878_v48 = vadd.f32 %v10935_v16, %v10934_v27  ;;  %v10937_v2 = vld [vmem:[#allocation78_spill] sm:$0xff]  ;;  %v10942_v16 = vld [vmem:[#allocation113_spill] sm:$0xff] }
 0x308   : > { %10932 = vst [vmem:[#allocation87_spill] sm:$0xff] %v9645_v0  ;;  %v9649_v31 = vmax.f32 %v3014_v36, %v3018_v8  ;;  %v3019_v37 = vmax.f32 %v2891_v42, 0.0  ;;  %v2753_v30 = vadd.f32 %v2579_v35, %v1874_v53  ;;  %v7839_v40 = vpack.i.bf16 %v9640_v63, %v9636_v29  ;;  %v9662_v53 = vpop.f32.mrf.mxu1  ;;  %v10938_v36 = vld [vmem:[#allocation107_spill] sm:$0xff]  ;;  %v10939_v42 = vld [vmem:[#allocation109_spill] sm:$0xff] }
 0x309   : > { %10931 = vst [vmem:[#allocation29_spill] sm:$0xff] %v9643_v38  ;;  %4172 = vmatprep.mubr.bf16.mxu1 %v9643_v38  ;;  %4913 = vmatprep.mubr.bf16.mxu0 %v9643_v38  ;;  %v2581_v20 = vpop.f32.mrf.mxu0  ;;  %v2892_v45 = vadd.f32 %v9052_v25, %v2752_v54  ;;  %v1882_v1 = vadd.f32 %v10937_v2, %v10936_v5  ;;  %v10940_v54 = vld [vmem:[#allocation110_spill] sm:$0xff] }
 0x30a   : > { %v9655_v23 = vmax.f32 %v3015_v28, %v3019_v37  ;;  %4173 = vmatmul.mubr.bf16.gmra.mxu1 %v9645_v0  ;;  %4914 = vmatmul.mubr.bf16.gmra.mxu0 %v9645_v0  ;;  %v2893_v14 = vadd.f32 %v9055_v58, %v2753_v30  ;;  %v2754_v18 = vadd.f32 %v2581_v20, %v1876_v55 }
 0x30b   : > { %7840 = vrot.lane.b32.xlu0 %v7839_v40, %s8337_s15  ;;  %v2583_v10 = vpop.f32.mrf.mxu0  ;;  %v1884_v8 = vadd.f32 %v9443_v32, %v10938_v36  ;;  %v1886_v28 = vadd.f32 %v9463_v51, %v10939_v42  ;;  %v1888_v30 = vadd.f32 %v9480_v22, %v10940_v54  ;;  %v10941_v40 = vld [vmem:[#allocation112_spill] sm:$0xff]  ;;  %v1894_v5 = vadd.f32 %v9505_v59, %v10942_v16  ;;  %v9683_v32 = vpop.f32.mrf.mxu1 }
 0x30c   : > { %v7844_v4 = vpack.i.bf16 %v9655_v23, %v9649_v31  ;;  %v7771_v33 = vpop.permute.xlu0 %7770  ;;  %v1892_v11 = vadd.f32 %v9495_v44, %v10941_v40  ;;  %v2755_v27 = vadd.f32 %v2583_v10, %v1878_v48  ;;  %v3020_v2 = vmax.f32 %v2892_v45, 0.0 }
 0x30d   : > { %v2587_v47 = vpop.f32.mrf.mxu0  ;;  %v7773_v35 = vunpack.i.h.bf16 %v7771_v33  ;;  %v7772_v37 = vunpack.i.l.bf16 %v7771_v33  ;;  %v3021_v51 = vmax.f32 %v2893_v14, 0.0 }
 0x30e   : > { %7845 = vrot.lane.b32.xlu1 %v7844_v4, %s8337_s15  ;;  %v2756_v20 = vadd.f32 %v2587_v47, %v1882_v1  ;;  %v2894_v4 = vadd.f32 %v9052_v25, %v2754_v18  ;;  %v2895_v1 = vadd.f32 %v9055_v58, %v2755_v27 }
 0x30f   : > { %v2589_v55 = vpop.f32.mrf.mxu0  ;;  %v3317_v44 = vsel %vm3308_vm0, %v7772_v37, %v7773_v35  ;;  %v3445_v10 = vsel %vm3308_vm0, %v7773_v35, %v7772_v37  ;;  %v8106_v35 = vld [vmem:[#allocation8 + $0x58] sm:$0xff]  }
 0x310   : > { %v2757_v36 = vadd.f32 %v2589_v55, %v1884_v8  ;;  %v7776_v33 = vpop.permute.xlu1 %7775  ;;  %v2896_v42 = vadd.f32 %v9052_v25, %v2756_v20  ;;  %v9693_v8 = vpop.f32.mrf.mxu1  ;;  %v10943_v20 = vld [vmem:[#allocation17_spill] sm:$0xff]  ;;  %7150 = vmatprep.subr.bf16.mxu1 %v8106_v35 }
 0x311   : > { %v7778_v22 = vunpack.i.h.bf16 %v7776_v33  ;;  %v7777_v54 = vunpack.i.l.bf16 %v7776_v33  ;;  %v2591_v0 = vpop.f32.mrf.mxu0  ;;  %v8107_v37 = vld [vmem:[#allocation8 + $0x18] sm:$0xff]  }
 0x312   : > { %v2897_v48 = vadd.f32 %v9055_v58, %v2757_v36  ;;  %v2758_v59 = vadd.f32 %v2591_v0, %v1886_v28  ;;  %v3024_v45 = vmax.f32 %v2896_v42, 0.0  ;;  %v10944_v36 = vld [vmem:[#allocation16_spill] sm:$0xff]  ;;  %7151 = vmatpush3.bf16.msra.mxu1 %v8107_v37  ;;  %v10951_v37 = vld [vmem:[#allocation118_spill] sm:$0xff] }
 0x313   : > { %v3318_v14 = vsel %vm3308_vm0, %v7777_v54, %v7778_v22  ;;  %v3446_v47 = vsel %vm3308_vm0, %v7778_v22, %v7777_v54  ;;  %v2593_v18 = vpop.f32.mrf.mxu0  ;;  %v3485_v0 = vmax.f32 %v10944_v36, %v3317_v44  ;;  %v10945_v42 = vld [vmem:[#allocation48_spill] sm:$0xff]  ;;  %v3022_v54 = vmax.f32 %v2894_v4, 0.0 }
 0x314   : > { %v3025_v40 = vmax.f32 %v2897_v48, 0.0  ;;  %v3487_v55 = vmax.f32 %v10943_v20, %v3318_v14  ;;  %v2898_v16 = vadd.f32 %v9052_v25, %v2758_v59  ;;  %v2759_v33 = vadd.f32 %v2593_v18, %v1888_v30 }
 0x315   : > { %v9698_v28 = vmax.f32 %v3020_v2, %v3024_v45  ;;  %v2597_v27 = vpop.f32.mrf.mxu0  ;;  %v3486_v38 = vmax.f32 %v10945_v42, %v3445_v10  ;;  %v3488_v22 = vmax.f32 %v10946_v56, %v3446_v47  ;;  %v3023_v59 = vmax.f32 %v2895_v1, 0.0  ;;  %v9709_v2 = vpop.f32.mrf.mxu1  ;;  %v10949_v45 = vld [vmem:[#allocation115_spill] sm:$0xff] }
 0x316   : > { %v9702_v43 = vmax.f32 %v3021_v51, %v3025_v40  ;;  %v3026_v48 = vmax.f32 %v2898_v16, 0.0  ;;  %v2899_v14 = vadd.f32 %v9055_v58, %v2759_v33  ;;  %v9707_v20 = vpack.c.bf16 %v3487_v55, %v3485_v0  ;;  %v10950_v33 = vld [vmem:[#allocation116_spill] sm:$0xff]  ;;  %v10952_v42 = vld [vmem:[#allocation119_spill] sm:$0xff] }
 0x317   : > { %v2599_v30 = vpop.f32.mrf.mxu0  ;;  %v9705_v18 = vpack.c.bf16 %v3488_v22, %v3486_v38  ;;  %v2760_v56 = vadd.f32 %v2597_v27, %v1892_v11  ;;  %v1896_v47 = vadd.f32 %v9523_v9, %v10949_v45  ;;  %v1898_v35 = vadd.f32 %v9538_v12, %v10950_v33  ;;  %v10955_v12 = vld [vmem:[#allocation124_spill] sm:$0xff] }
 0x318   : > { %10948 = vst [vmem:[#allocation90_spill] sm:$0xff] %v9707_v20  ;;  %v9711_v44 = vmax.f32 %v3022_v54, %v3026_v48  ;;  %v3027_v10 = vmax.f32 %v2899_v14, 0.0  ;;  %v2761_v4 = vadd.f32 %v2599_v30, %v1894_v5  ;;  %v7849_v1 = vpack.i.bf16 %v9702_v43, %v9698_v28  ;;  %v9724_v5 = vpop.f32.mrf.mxu1  ;;  %v10953_v54 = vld [vmem:[#allocation121_spill] sm:$0xff]  ;;  %v10954_v30 = vld [vmem:[#allocation122_spill] sm:$0xff] }
 0x319   : > { %10947 = vst [vmem:[#allocation30_spill] sm:$0xff] %v9705_v18  ;;  %4180 = vmatprep.mubr.bf16.mxu1 %v9705_v18  ;;  %4921 = vmatprep.mubr.bf16.mxu0 %v9705_v18  ;;  %v2601_v51 = vpop.f32.mrf.mxu0  ;;  %v2900_v40 = vadd.f32 %v9052_v25, %v2760_v56  ;;  %v1902_v36 = vadd.f32 %v9559_v57, %v10951_v37 }
 0x31a   : > { %v9717_v38 = vmax.f32 %v3023_v59, %v3027_v10  ;;  %4181 = vmatmul.mubr.bf16.gmra.mxu1 %v9707_v20  ;;  %4922 = vmatmul.mubr.bf16.gmra.mxu0 %v9707_v20  ;;  %v2901_v55 = vadd.f32 %v9055_v58, %v2761_v4  ;;  %v2762_v0 = vadd.f32 %v2601_v51, %v1896_v47  ;;  %v10960_v20 = vld [vmem:[#allocation60_spill] sm:$0xff] }
 0x31b   : > { %7850 = vrot.lane.b32.xlu0 %v7849_v1, %s8337_s15  ;;  %v2603_v11 = vpop.f32.mrf.mxu0  ;;  %v1904_v22 = vadd.f32 %v9569_v50, %v10952_v42  ;;  %v1906_v48 = vadd.f32 %v9585_v19, %v10953_v54  ;;  %v1908_v10 = vadd.f32 %v9600_v34, %v10954_v30  ;;  %v1912_v56 = vadd.f32 %v9621_v49, %v10955_v12  ;;  %v10956_v1 = vld [vmem:[#allocation125_spill] sm:$0xff]  ;;  %v9745_v50 = vpop.f32.mrf.mxu1  ;;  %v10957_v12 = vld [vmem:[#allocation20_spill] sm:$0xff] }
 0x31c   : > { %v7854_v16 = vpack.i.bf16 %v9717_v38, %v9711_v44  ;;  %v7781_v9 = vpop.permute.xlu0 %7780  ;;  %v2763_v57 = vadd.f32 %v2603_v11, %v1898_v35  ;;  %v1914_v45 = vadd.f32 %v9631_v60, %v10956_v1  ;;  %v3028_v47 = vmax.f32 %v2900_v40, 0.0 }
 0x31d   : > { %v2607_v27 = vpop.f32.mrf.mxu0  ;;  %v7783_v14 = vunpack.i.h.bf16 %v7781_v9  ;;  %v7782_v59 = vunpack.i.l.bf16 %v7781_v9  ;;  %v3029_v19 = vmax.f32 %v2901_v55, 0.0 }
 0x31e   : > { %7855 = vrot.lane.b32.xlu1 %v7854_v16, %s8337_s15  ;;  %v2764_v4 = vadd.f32 %v2607_v27, %v1902_v36  ;;  %v2902_v16 = vadd.f32 %v9052_v25, %v2762_v0  ;;  %v2903_v36 = vadd.f32 %v9055_v58, %v2763_v57 }
 0x31f   : > { %v2609_v51 = vpop.f32.mrf.mxu0  ;;  %v3319_v49 = vsel %vm3308_vm0, %v7782_v59, %v7783_v14  ;;  %v3447_v11 = vsel %vm3308_vm0, %v7783_v14, %v7782_v59  ;;  %v8109_v14 = vld [vmem:[#allocation8 + $0x10] sm:$0xff]   ;;  %v10958_v59 = vld [vmem:[#allocation18_spill] sm:$0xff] }
 0x320   : > { %v2765_v33 = vadd.f32 %v2609_v51, %v1904_v22  ;;  %v7786_v37 = vpop.permute.xlu1 %7785  ;;  %v2904_v9 = vadd.f32 %v9052_v25, %v2764_v4  ;;  %v1933_v22 = vpop.f32.mrf.mxu1 }
 0x321   : > { %v7788_v34 = vunpack.i.h.bf16 %v7786_v37  ;;  %v7787_v42 = vunpack.i.l.bf16 %v7786_v37  ;;  %v2611_v54 = vpop.f32.mrf.mxu0  ;;  %v8108_v37 = vld [vmem:[#allocation8 + $0x50] sm:$0xff]  }
 0x322   : > { %v2905_v35 = vadd.f32 %v9055_v58, %v2765_v33  ;;  %v2766_v60 = vadd.f32 %v2611_v54, %v1906_v48  ;;  %v3032_v40 = vmax.f32 %v2904_v9, 0.0  ;;  %v3489_v33 = vmax.f32 %v10958_v59, %v3319_v49  ;;  %v10959_v9 = vld [vmem:[#allocation54_spill] sm:$0xff]  ;;  %7152 = vmatprep.subr.bf16.mxu1 %v8108_v37 }
 0x323   : > { %v3320_v55 = vsel %vm3308_vm0, %v7787_v42, %v7788_v34  ;;  %v3448_v27 = vsel %vm3308_vm0, %v7788_v34, %v7787_v42  ;;  %v2613_v0 = vpop.f32.mrf.mxu0  ;;  %v3490_v54 = vmax.f32 %v10959_v9, %v3447_v11  ;;  %v3030_v34 = vmax.f32 %v2902_v16, 0.0  ;;  %7153 = vmatpush3.bf16.msra.mxu1 %v8109_v14  ;;  %v10965_v14 = vld [vmem:[#allocation130_spill] sm:$0xff]  ;;  %v10966_v9 = vld [vmem:[#allocation131_spill] sm:$0xff] }
 0x324   : > { %v3033_v30 = vmax.f32 %v2905_v35, 0.0  ;;  %v3491_v4 = vmax.f32 %v10957_v12, %v3320_v55  ;;  %v2906_v51 = vadd.f32 %v9052_v25, %v2766_v60  ;;  %v2767_v1 = vadd.f32 %v2613_v0, %v1908_v10 }
 0x325   : > { %v9758_v48 = vmax.f32 %v3028_v47, %v3032_v40  ;;  %v2617_v57 = vpop.f32.mrf.mxu0  ;;  %v3492_v18 = vmax.f32 %v10960_v20, %v3448_v27  ;;  %v3031_v60 = vmax.f32 %v2903_v36, 0.0  ;;  %v9769_v47 = vpop.f32.mrf.mxu1  ;;  %v10963_v40 = vld [vmem:[#allocation127_spill] sm:$0xff]  ;;  %v1922_v59 = vadd.f32 %v9683_v32, %v10965_v14 }
 0x326   : > { %v9762_v42 = vmax.f32 %v3029_v19, %v3033_v30  ;;  %v3034_v35 = vmax.f32 %v2906_v51, 0.0  ;;  %v2907_v55 = vadd.f32 %v9055_v58, %v2767_v1  ;;  %v9767_v12 = vpack.c.bf16 %v3491_v4, %v3489_v33  ;;  %v10964_v1 = vld [vmem:[#allocation128_spill] sm:$0xff] }
 0x327   : > { %v2619_v10 = vpop.f32.mrf.mxu0  ;;  %v9765_v0 = vpack.c.bf16 %v3492_v18, %v3490_v54  ;;  %v2768_v20 = vadd.f32 %v2617_v57, %v1912_v56  ;;  %v1916_v27 = vadd.f32 %v9647_v13, %v10963_v40  ;;  %v1918_v37 = vadd.f32 %v9662_v53, %v10964_v1  ;;  %v10969_v53 = vld [vmem:[#allocation136_spill] sm:$0xff] }
 0x328   : > { %10962 = vst [vmem:[#allocation93_spill] sm:$0xff] %v9767_v12  ;;  %v9771_v49 = vmax.f32 %v3030_v34, %v3034_v35  ;;  %v3035_v11 = vmax.f32 %v2907_v55, 0.0  ;;  %v2769_v16 = vadd.f32 %v2619_v10, %v1914_v45  ;;  %v7859_v36 = vpack.i.bf16 %v9762_v42, %v9758_v48  ;;  %v9784_v45 = vpop.f32.mrf.mxu1  ;;  %v10967_v34 = vld [vmem:[#allocation133_spill] sm:$0xff]  ;;  %v10968_v10 = vld [vmem:[#allocation134_spill] sm:$0xff] }
 0x329   : > { %10961 = vst [vmem:[#allocation31_spill] sm:$0xff] %v9765_v0  ;;  %4188 = vmatprep.mubr.bf16.mxu1 %v9765_v0  ;;  %4929 = vmatprep.mubr.bf16.mxu0 %v9765_v0  ;;  %v2621_v19 = vpop.f32.mrf.mxu0  ;;  %v2908_v30 = vadd.f32 %v9052_v25, %v2768_v20  ;;  %v1924_v54 = vadd.f32 %v9693_v8, %v10966_v9  ;;  %v8111_v0 = vld [vmem:[#allocation8 + $0x8] sm:$0xff]  }
 0x32a   : > { %v9777_v18 = vmax.f32 %v3031_v60, %v3035_v11  ;;  %4189 = vmatmul.mubr.bf16.gmra.mxu1 %v9767_v12  ;;  %4930 = vmatmul.mubr.bf16.gmra.mxu0 %v9767_v12  ;;  %v2909_v4 = vadd.f32 %v9055_v58, %v2769_v16  ;;  %v2770_v33 = vadd.f32 %v2621_v19, %v1916_v27  ;;  %v1941_v27 = vpop.f32.mrf.mxu1  ;;  %v8110_v12 = vld [vmem:[#allocation8 + $0x48] sm:$0xff]  }
 0x32b   : > { %7860 = vrot.lane.b32.xlu0 %v7859_v36, %s8337_s15  ;;  %v2623_v56 = vpop.f32.mrf.mxu0  ;;  %v1926_v35 = vadd.f32 %v9709_v2, %v10967_v34  ;;  %v1928_v11 = vadd.f32 %v9724_v5, %v10968_v10  ;;  %v1932_v20 = vadd.f32 %v9745_v50, %v10969_v53  ;;  %v10970_v36 = vld [vmem:[#allocation137_spill] sm:$0xff]  ;;  %v3036_v8 = vmax.f32 %v2908_v30, 0.0  ;;  %v10971_v53 = vld [vmem:[#allocation22_spill] sm:$0xff]  ;;  %7154 = vmatprep.subr.bf16.mxu1 %v8110_v12  ;;  %v10975_v12 = vld [vmem:[#allocation139_spill] sm:$0xff] }
 0x32c   : > { %v7864_v51 = vpack.i.bf16 %v9777_v18, %v9771_v49  ;;  %v7791_v13 = vpop.permute.xlu0 %7790  ;;  %v2771_v32 = vadd.f32 %v2623_v56, %v1918_v37  ;;  %v1934_v40 = vadd.f32 %v1933_v22, %v10970_v36  ;;  %v3037_v1 = vmax.f32 %v2909_v4, 0.0  ;;  %7155 = vmatpush3.bf16.msra.mxu1 %v8111_v0 }
 0x32d   : > { %v2627_v57 = vpop.f32.mrf.mxu0  ;;  %v7793_v55 = vunpack.i.h.bf16 %v7791_v13  ;;  %v7792_v60 = vunpack.i.l.bf16 %v7791_v13  ;;  %v2910_v13 = vadd.f32 %v9052_v25, %v2770_v33 }
 0x32e   : > { %7865 = vrot.lane.b32.xlu1 %v7864_v51, %s8337_s15  ;;  %v2772_v16 = vadd.f32 %v2627_v57, %v1922_v59  ;;  %v2911_v22 = vadd.f32 %v9055_v58, %v2771_v32  ;;  %v1943_v57 = vpop.f32.mrf.mxu1 }
 0x32f   : > { %v2629_v19 = vpop.f32.mrf.mxu0  ;;  %v3321_v10 = vsel %vm3308_vm0, %v7792_v60, %v7793_v55  ;;  %v3449_v50 = vsel %vm3308_vm0, %v7793_v55, %v7792_v60 }
 0x330   : > { %v2773_v14 = vadd.f32 %v2629_v19, %v1924_v54  ;;  %v7796_v2 = vpop.permute.xlu1 %7795  ;;  %v2912_v51 = vadd.f32 %v9052_v25, %v2772_v16 }
 0x331   : > { %v7798_v9 = vunpack.i.h.bf16 %v7796_v2  ;;  %v7797_v34 = vunpack.i.l.bf16 %v7796_v2  ;;  %v2631_v5 = vpop.f32.mrf.mxu0  ;;  %v10972_v2 = vld [vmem:[#allocation57_spill] sm:$0xff] }
 0x332   : > { %v2913_v56 = vadd.f32 %v9055_v58, %v2773_v14  ;;  %v2774_v37 = vadd.f32 %v2631_v5, %v1926_v35  ;;  %v3040_v30 = vmax.f32 %v2912_v51, 0.0  ;;  %v3493_v55 = vmax.f32 %v10972_v2, %v3321_v10  ;;  %v10973_v14 = vld [vmem:[#allocation21_spill] sm:$0xff]  ;;  %v10974_v51 = vld [vmem:[#allocation66_spill] sm:$0xff] }
 0x333   : > { %v3322_v4 = vsel %vm3308_vm0, %v7797_v34, %v7798_v9  ;;  %v3450_v59 = vsel %vm3308_vm0, %v7798_v9, %v7797_v34  ;;  %v2633_v33 = vpop.f32.mrf.mxu0  ;;  %v3494_v32 = vmax.f32 %v10973_v14, %v3449_v50  ;;  %v3038_v9 = vmax.f32 %v2910_v13, 0.0 }
 0x334   : > { %v3041_v54 = vmax.f32 %v2913_v56, 0.0  ;;  %v3495_v16 = vmax.f32 %v10971_v53, %v3322_v4  ;;  %v2914_v19 = vadd.f32 %v9052_v25, %v2774_v37  ;;  %v2775_v36 = vadd.f32 %v2633_v33, %v1928_v11 }
 0x335   : > { %v9815_v60 = vmax.f32 %v3036_v8, %v3040_v30  ;;  %v2637_v35 = vpop.f32.mrf.mxu0  ;;  %v3496_v5 = vmax.f32 %v10974_v51, %v3450_v59  ;;  %v3039_v53 = vmax.f32 %v2911_v22, 0.0  ;;  %v1945_v8 = vpop.f32.mrf.mxu1 }
 0x336   : > { %v9819_v34 = vmax.f32 %v3037_v1, %v3041_v54  ;;  %v3042_v56 = vmax.f32 %v2914_v19, 0.0  ;;  %v2915_v4 = vadd.f32 %v9055_v58, %v2775_v36  ;;  %v9824_v10 = vpack.c.bf16 %v3495_v16, %v3493_v55  ;;  %v10977_v55 = vld [vmem:[#allocation142_spill] sm:$0xff] }
 0x337   : > { %v2639_v37 = vpop.f32.mrf.mxu0  ;;  %v9822_v11 = vpack.c.bf16 %v3496_v5, %v3494_v32  ;;  %v2776_v59 = vadd.f32 %v2637_v35, %v1932_v20  ;;  %v1936_v54 = vadd.f32 %v9769_v47, %v10975_v12  ;;  %v10976_v20 = vld [vmem:[#allocation140_spill] sm:$0xff]  ;;  %v1947_v16 = vpop.f32.mrf.mxu1  ;;  %v1942_v35 = vadd.f32 %v1941_v27, %v10977_v55  ;;  %v10978_v47 = vld [vmem:[#allocation143_spill] sm:$0xff] }
 0x338   : > { %v9826_v30 = vmax.f32 %v3038_v9, %v3042_v56  ;;  %v3043_v50 = vmax.f32 %v2915_v4, 0.0  ;;  %v2777_v33 = vadd.f32 %v2639_v37, %v1934_v40  ;;  %v7869_v13 = vpack.i.bf16 %v9819_v34, %v9815_v60  ;;  %v10980_v37 = vld [vmem:[#allocation146_spill] sm:$0xff] }
 0x339   : > { %4196 = vmatprep.mubr.bf16.mxu1 %v9822_v11  ;;  %4937 = vmatprep.mubr.bf16.mxu0 %v9822_v11  ;;  %v2641_v1 = vpop.f32.mrf.mxu0  ;;  %v1938_v40 = vadd.f32 %v9784_v45, %v10976_v20  ;;  %v2916_v19 = vadd.f32 %v9052_v25, %v2776_v59  ;;  %v1944_v5 = vadd.f32 %v1943_v57, %v10978_v47  ;;  %v10979_v45 = vld [vmem:[#allocation145_spill] sm:$0xff] }
 0x33a   : > { %v9832_v22 = vmax.f32 %v3039_v53, %v3043_v50  ;;  %4197 = vmatmul.mubr.bf16.gmra.mxu1 %v9824_v10  ;;  %4938 = vmatmul.mubr.bf16.gmra.mxu0 %v9824_v10  ;;  %v2917_v36 = vadd.f32 %v9055_v58, %v2777_v33  ;;  %v2778_v14 = vadd.f32 %v2641_v1, %v1936_v54 }
 0x33b   : > { %7870 = vrot.lane.b32.xlu0 %v7869_v13, %s8337_s15  ;;  %v2643_v0 = vpop.f32.mrf.mxu0  ;;  %v1946_v53 = vadd.f32 %v1945_v8, %v10979_v45  ;;  %v1948_v50 = vadd.f32 %v1947_v16, %v10980_v37  ;;  %v3044_v13 = vmax.f32 %v2916_v19, 0.0  ;;  %v10981_v19 = vld [vmem:[#allocation24_spill] sm:$0xff]  ;;  %v10982_v45 = vld [vmem:[#allocation25_spill] sm:$0xff] }
 0x33c   : > { %v7874_v2 = vpack.i.bf16 %v9832_v22, %v9826_v30  ;;  %v7801_v32 = vpop.permute.xlu0 %7800  ;;  %v2779_v9 = vadd.f32 %v2643_v0, %v1938_v40  ;;  %v3045_v12 = vmax.f32 %v2917_v36, 0.0  ;;  %v2918_v20 = vadd.f32 %v9052_v25, %v2778_v14 }
 0x33d   : > { %v2647_v51 = vpop.f32.mrf.mxu0  ;;  %v7803_v56 = vunpack.i.h.bf16 %v7801_v32  ;;  %v7802_v4 = vunpack.i.l.bf16 %v7801_v32 }
 0x33e   : > { %7875 = vrot.lane.b32.xlu1 %v7874_v2, %s8337_s15  ;;  %v2780_v59 = vadd.f32 %v2647_v51, %v1942_v35  ;;  %v2919_v2 = vadd.f32 %v9055_v58, %v2779_v9  ;;  %v3046_v9 = vmax.f32 %v2918_v20, 0.0 }
 0x33f   : > { %v2649_v33 = vpop.f32.mrf.mxu0  ;;  %v3323_v27 = vsel %vm3308_vm0, %v7802_v4, %v7803_v56  ;;  %v3451_v8 = vsel %vm3308_vm0, %v7803_v56, %v7802_v4  ;;  %v10983_v56 = vld [vmem:[#allocation72_spill] sm:$0xff] }
 0x340   : > { %v2781_v1 = vadd.f32 %v2649_v33, %v1944_v5  ;;  %v7806_v54 = vpop.permute.xlu1 %7805  ;;  %v2920_v57 = vadd.f32 %v9052_v25, %v2780_v59  ;;  %v3497_v36 = vmax.f32 %v10981_v19, %v3323_v27  ;;  %v3498_v4 = vmax.f32 %v10983_v56, %v3451_v8  ;;  %v8112_v27 = vld [vmem:[#allocation8 + $0x40] sm:$0xff]  }
 0x341   : > { %v7808_v0 = vunpack.i.h.bf16 %v7806_v54  ;;  %v7807_v40 = vunpack.i.l.bf16 %v7806_v54  ;;  %v2651_v55 = vpop.f32.mrf.mxu0  ;;  %7156 = vmatprep.subr.bf16.mxu1 %v8112_v27 }
 0x342   : > { %v2921_v16 = vadd.f32 %v9055_v58, %v2781_v1  ;;  %v2782_v35 = vadd.f32 %v2651_v55, %v1946_v53  ;;  %v3048_v32 = vmax.f32 %v2920_v57, 0.0  ;;  %v10984_v53 = vld [vmem:[#allocation75_spill] sm:$0xff]  ;;  %v8113_v57 = vld [vmem:[#allocation8] sm:$0xff]  }
 0x343   : > { %v3324_v51 = vsel %vm3308_vm0, %v7807_v40, %v7808_v0  ;;  %v3452_v47 = vsel %vm3308_vm0, %v7808_v0, %v7807_v40  ;;  %v2653_v14 = vpop.f32.mrf.mxu0  ;;  %7157 = vmatpush3.bf16.msra.mxu1 %v8113_v57 }
 0x344   : > { %v3049_v5 = vmax.f32 %v2921_v16, 0.0  ;;  %v3499_v37 = vmax.f32 %v10982_v45, %v3324_v51  ;;  %v2922_v59 = vadd.f32 %v9052_v25, %v2782_v35  ;;  %v2783_v33 = vadd.f32 %v2653_v14, %v1948_v50 }
 0x345   : > { %v9861_v54 = vmax.f32 %v3044_v13, %v3048_v32  ;;  %v3500_v1 = vmax.f32 %v10984_v53, %v3452_v47  ;;  %v3047_v25 = vmax.f32 %v2919_v2, 0.0 }
 0x346   : > { %v9865_v55 = vmax.f32 %v3045_v12, %v3049_v5  ;;  %v3050_v19 = vmax.f32 %v2922_v59, 0.0  ;;  %v2923_v0 = vadd.f32 %v9055_v58, %v2783_v33  ;;  %v9868_v40 = vpack.c.bf16 %v3499_v37, %v3497_v36 }
 0x347   : > { %v9870_v16 = vpack.c.bf16 %v3500_v1, %v3498_v4 }
 0x348   : > { %v9872_v50 = vmax.f32 %v3046_v9, %v3050_v19  ;;  %v3051_v13 = vmax.f32 %v2923_v0, 0.0  ;;  %v7879_v20 = vpack.i.bf16 %v9865_v55, %v9861_v54 }
 0x349   : > { %4204 = vmatprep.mubr.bf16.mxu1 %v9870_v16  ;;  %4945 = vmatprep.mubr.bf16.mxu0 %v9870_v16 }
 0x34a   : > { %v9878_v12 = vmax.f32 %v3047_v25, %v3051_v13  ;;  %4205 = vmatmul.mubr.bf16.gmra.mxu1 %v9868_v40  ;;  %4946 = vmatmul.mubr.bf16.gmra.mxu0 %v9868_v40 }
 0x34b   : > { %7880 = vrot.lane.b32.xlu0 %v7879_v20, %s8337_s15 }
 0x34c   : > { %v7811_v58 = vpop.permute.xlu0 %7810  ;;  %v7884_v2 = vpack.i.bf16 %v9878_v12, %v9872_v50 }
 0x34d   : > { %v7813_v8 = vunpack.i.h.bf16 %v7811_v58  ;;  %v7812_v35 = vunpack.i.l.bf16 %v7811_v58 }
 0x34e   : > { %7885 = vrot.lane.b32.xlu1 %v7884_v2, %s8337_s15 }
 0x34f   : > { %v3325_v32 = vsel %vm3308_vm0, %v7812_v35, %v7813_v8  ;;  %v3453_v51 = vsel %vm3308_vm0, %v7813_v8, %v7812_v35 }
 0x350   : > { %v3501_v37 = vmax.f32 %v9448_v52, %v3325_v32  ;;  %v3502_v33 = vmax.f32 %v9454_v7, %v3453_v51 }
 0x351   : > { %v7816_v36 = vpop.permute.xlu1 %7815 }
 0x352   : > { %v7818_v47 = vunpack.i.h.bf16 %v7816_v36  ;;  %v7817_v14 = vunpack.i.l.bf16 %v7816_v36 }
 0x354   : > { %v3326_v5 = vsel %vm3308_vm0, %v7817_v14, %v7818_v47  ;;  %v3454_v45 = vsel %vm3308_vm0, %v7818_v47, %v7817_v14 }
 0x355   : > { %v3503_v59 = vmax.f32 %v9465_v62, %v3326_v5  ;;  %v3504_v9 = vmax.f32 %v9474_v41, %v3454_v45 }
 0x357   : > { %v9894_v56 = vpack.c.bf16 %v3504_v9, %v3502_v33  ;;  %v9896_v4 = vpack.c.bf16 %v3503_v59, %v3501_v37 }
 0x359   : > { %4212 = vmatprep.mubr.bf16.mxu1 %v9894_v56  ;;  %4953 = vmatprep.mubr.bf16.mxu0 %v9894_v56 }
 0x35a   : > { %4213 = vmatmul.mubr.bf16.gmra.mxu1 %v9896_v4  ;;  %4954 = vmatmul.mubr.bf16.gmra.mxu0 %v9896_v4 }
 0x35d   : > { %v7821_v53 = vpop.permute.xlu0 %7820 }
 0x35e   : > { %v7823_v52 = vunpack.i.h.bf16 %v7821_v53  ;;  %v7822_v1 = vunpack.i.l.bf16 %v7821_v53 }
 0x360   : > { %v3327_v7 = vsel %vm3308_vm0, %v7822_v1, %v7823_v52  ;;  %v3455_v41 = vsel %vm3308_vm0, %v7823_v52, %v7822_v1 }
 0x361   : > { %v7826_v62 = vpop.permute.xlu1 %7825  ;;  %v3505_v25 = vmax.f32 %v9510_v61, %v3327_v7  ;;  %v3506_v20 = vmax.f32 %v9516_v15, %v3455_v41 }
 0x362   : > { %v7828_v27 = vunpack.i.h.bf16 %v7826_v62  ;;  %v7827_v57 = vunpack.i.l.bf16 %v7826_v62 }
 0x364   : > { %v3328_v19 = vsel %vm3308_vm0, %v7827_v57, %v7828_v27  ;;  %v3456_v0 = vsel %vm3308_vm0, %v7828_v27, %v7827_v57 }
 0x365   : > { %v3507_v13 = vmax.f32 %v9525_v3, %v3328_v19  ;;  %v3508_v58 = vmax.f32 %v9536_v17, %v3456_v0 }
 0x367   : > { %v9910_v2 = vpack.c.bf16 %v3508_v58, %v3506_v20  ;;  %v9912_v8 = vpack.c.bf16 %v3507_v13, %v3505_v25 }
 0x369   : > { %4220 = vmatprep.mubr.bf16.mxu1 %v9910_v2  ;;  %4961 = vmatprep.mubr.bf16.mxu0 %v9910_v2 }
 0x36a   : > { %4221 = vmatmul.mubr.bf16.gmra.mxu1 %v9912_v8  ;;  %4962 = vmatmul.mubr.bf16.gmra.mxu0 %v9912_v8 }
 0x36d   : > { %v7831_v35 = vpop.permute.xlu0 %7830 }
 0x36e   : > { %v7833_v61 = vunpack.i.h.bf16 %v7831_v35  ;;  %v7832_v36 = vunpack.i.l.bf16 %v7831_v35 }
 0x370   : > { %v7836_v3 = vpop.permute.xlu1 %7835  ;;  %v3329_v15 = vsel %vm3308_vm0, %v7832_v36, %v7833_v61  ;;  %v3457_v17 = vsel %vm3308_vm0, %v7833_v61, %v7832_v36 }
 0x371   : > { %v7838_v32 = vunpack.i.h.bf16 %v7836_v3  ;;  %v7837_v51 = vunpack.i.l.bf16 %v7836_v3  ;;  %v3509_v5 = vmax.f32 %v9574_v39, %v3329_v15  ;;  %v3510_v37 = vmax.f32 %v9578_v24, %v3457_v17 }
 0x373   : > { %v3330_v47 = vsel %vm3308_vm0, %v7837_v51, %v7838_v32  ;;  %v3458_v14 = vsel %vm3308_vm0, %v7838_v32, %v7837_v51 }
 0x374   : > { %v3511_v45 = vmax.f32 %v9587_v21, %v3330_v47  ;;  %v3512_v59 = vmax.f32 %v9595_v6, %v3458_v14 }
 0x376   : > { %v9926_v33 = vpack.c.bf16 %v3512_v59, %v3510_v37  ;;  %v9928_v9 = vpack.c.bf16 %v3511_v45, %v3509_v5 }
 0x378   : > { %4228 = vmatprep.mubr.bf16.mxu1 %v9926_v33  ;;  %4969 = vmatprep.mubr.bf16.mxu0 %v9926_v33 }
 0x379   : > { %4229 = vmatmul.mubr.bf16.gmra.mxu1 %v9928_v9  ;;  %4970 = vmatmul.mubr.bf16.gmra.mxu0 %v9928_v9 }
 0x37d   : > { %v7841_v53 = vpop.permute.xlu0 %7840 }
 0x37e   : > { %v7843_v39 = vunpack.i.h.bf16 %v7841_v53  ;;  %v7842_v52 = vunpack.i.l.bf16 %v7841_v53 }
 0x380   : > { %v7846_v21 = vpop.permute.xlu1 %7845  ;;  %v3331_v24 = vsel %vm3308_vm0, %v7842_v52, %v7843_v39  ;;  %v3459_v6 = vsel %vm3308_vm0, %v7843_v39, %v7842_v52 }
 0x381   : > { %v7848_v1 = vunpack.i.h.bf16 %v7846_v21  ;;  %v7847_v62 = vunpack.i.l.bf16 %v7846_v21  ;;  %v3513_v27 = vmax.f32 %v9636_v29, %v3331_v24  ;;  %v3514_v19 = vmax.f32 %v9640_v63, %v3459_v6 }
 0x383   : > { %v3332_v7 = vsel %vm3308_vm0, %v7847_v62, %v7848_v1  ;;  %v3460_v41 = vsel %vm3308_vm0, %v7848_v1, %v7847_v62 }
 0x384   : > { %v3515_v57 = vmax.f32 %v9649_v31, %v3332_v7  ;;  %v3516_v0 = vmax.f32 %v9655_v23, %v3460_v41 }
 0x386   : > { %v9942_v25 = vpack.c.bf16 %v3516_v0, %v3514_v19  ;;  %v9944_v13 = vpack.c.bf16 %v3515_v57, %v3513_v27 }
 0x388   : > { %4236 = vmatprep.mubr.bf16.mxu1 %v9942_v25  ;;  %4977 = vmatprep.mubr.bf16.mxu0 %v9942_v25 }
 0x389   : > { %4237 = vmatmul.mubr.bf16.gmra.mxu1 %v9944_v13  ;;  %4978 = vmatmul.mubr.bf16.gmra.mxu0 %v9944_v13 }
 0x38d   : > { %v7851_v20 = vpop.permute.xlu0 %7850 }
 0x38e   : > { %v7853_v29 = vunpack.i.h.bf16 %v7851_v20  ;;  %v7852_v58 = vunpack.i.l.bf16 %v7851_v20 }
 0x390   : > { %v7856_v31 = vpop.permute.xlu1 %7855  ;;  %v3333_v63 = vsel %vm3308_vm0, %v7852_v58, %v7853_v29  ;;  %v3461_v23 = vsel %vm3308_vm0, %v7853_v29, %v7852_v58 }
 0x391   : > { %v7858_v35 = vunpack.i.h.bf16 %v7856_v31  ;;  %v7857_v61 = vunpack.i.l.bf16 %v7856_v31  ;;  %v3517_v15 = vmax.f32 %v9698_v28, %v3333_v63  ;;  %v3518_v32 = vmax.f32 %v9702_v43, %v3461_v23 }
 0x393   : > { %v3334_v36 = vsel %vm3308_vm0, %v7857_v61, %v7858_v35  ;;  %v3462_v3 = vsel %vm3308_vm0, %v7858_v35, %v7857_v61 }
 0x394   : > { %v3519_v17 = vmax.f32 %v9711_v44, %v3334_v36  ;;  %v3520_v51 = vmax.f32 %v9717_v38, %v3462_v3 }
 0x396   : > { %v9958_v47 = vpack.c.bf16 %v3520_v51, %v3518_v32  ;;  %v9960_v14 = vpack.c.bf16 %v3519_v17, %v3517_v15 }
 0x398   : > { %4244 = vmatprep.mubr.bf16.mxu1 %v9958_v47  ;;  %4985 = vmatprep.mubr.bf16.mxu0 %v9958_v47 }
 0x399   : > { %4245 = vmatmul.mubr.bf16.gmra.mxu1 %v9960_v14  ;;  %4986 = vmatmul.mubr.bf16.gmra.mxu0 %v9960_v14 }
 0x39a   : > { %v7046_v5 = vpop.f32.mrf.mxu1 }
 0x39c   : > { %v7047_v28 = vpop.f32.mrf.mxu1 }
 0x39d   : > { %v9966_v45 = vadd.f32 %v7047_v28, %v7046_v5  ;;  %v7861_v44 = vpop.permute.xlu0 %7860 }
 0x39e   : > { %v7863_v43 = vunpack.i.h.bf16 %v7861_v44  ;;  %v7862_v37 = vunpack.i.l.bf16 %v7861_v44  ;;  %v9973_v1 = vpop.f32.mrf.mxu1 }
 0x3a0   : > { %v7866_v38 = vpop.permute.xlu1 %7865  ;;  %v3335_v59 = vsel %vm3308_vm0, %v7862_v37, %v7863_v43  ;;  %v3463_v53 = vsel %vm3308_vm0, %v7863_v43, %v7862_v37  ;;  %v9982_v19 = vpop.f32.mrf.mxu1 }
 0x3a1   : > { %v7868_v39 = vunpack.i.h.bf16 %v7866_v38  ;;  %v7867_v52 = vunpack.i.l.bf16 %v7866_v38  ;;  %v3521_v6 = vmax.f32 %v9758_v48, %v3335_v59  ;;  %v3522_v7 = vmax.f32 %v9762_v42, %v3463_v53 }
 0x3a3   : > { %v3336_v21 = vsel %vm3308_vm0, %v7867_v52, %v7868_v39  ;;  %v3464_v24 = vsel %vm3308_vm0, %v7868_v39, %v7867_v52 }
 0x3a4   : > { %v3523_v62 = vmax.f32 %v9771_v49, %v3336_v21  ;;  %v3524_v41 = vmax.f32 %v9777_v18, %v3464_v24 }
 0x3a6   : > { %v9978_v27 = vpack.c.bf16 %v3524_v41, %v3522_v7  ;;  %v9980_v57 = vpack.c.bf16 %v3523_v62, %v3521_v6 }
 0x3a8   : > { %4252 = vmatprep.mubr.bf16.mxu1 %v9978_v27  ;;  %4993 = vmatprep.mubr.bf16.mxu0 %v9978_v27 }
 0x3a9   : > { %4253 = vmatmul.mubr.bf16.gmra.mxu1 %v9980_v57  ;;  %4994 = vmatmul.mubr.bf16.gmra.mxu0 %v9980_v57 }
 0x3aa   : > { %v7052_v48 = vpop.f32.mrf.mxu1 }
 0x3ac   : > { %v7053_v49 = vpop.f32.mrf.mxu1 }
 0x3ad   : > { %v9988_v0 = vadd.f32 %v7053_v49, %v7052_v48  ;;  %v7871_v42 = vpop.permute.xlu0 %7870 }
 0x3ae   : > { %v7873_v18 = vunpack.i.h.bf16 %v7871_v42  ;;  %v7872_v20 = vunpack.i.l.bf16 %v7871_v42  ;;  %v9992_v35 = vpop.f32.mrf.mxu1  ;;  %v10985_v42 = vmov 0  }
 0x3b0   : > { %v7876_v29 = vpop.permute.xlu1 %7875  ;;  %v3337_v58 = vsel %vm3308_vm0, %v7872_v20, %v7873_v18  ;;  %v3465_v31 = vsel %vm3308_vm0, %v7873_v18, %v7872_v20  ;;  %v10004_v28 = vpop.f32.mrf.mxu1  ;;  %v6575_v18 = vcombine.high %v10985_v42, %v10985_v42 }
 0x3b1   : > { %v7878_v63 = vunpack.i.h.bf16 %v7876_v29  ;;  %v7877_v23 = vunpack.i.l.bf16 %v7876_v29  ;;  %v3525_v3 = vmax.f32 %v9815_v60, %v3337_v58  ;;  %v3526_v17 = vmax.f32 %v9819_v34, %v3465_v31 }
 0x3b3   : > { %v3338_v61 = vsel %vm3308_vm0, %v7877_v23, %v7878_v63  ;;  %v3466_v36 = vsel %vm3308_vm0, %v7878_v63, %v7877_v23  ;;  %v10986_v63 = vld [vmem:[#allocation28_spill] sm:$0xff] }
 0x3b4   : > { %v3527_v15 = vmax.f32 %v9826_v30, %v3338_v61  ;;  %v3528_v32 = vmax.f32 %v9832_v22, %v3466_v36  ;;  %v10987_v36 = vld [vmem:[#allocation84_spill] sm:$0xff] }
 0x3b6   : > { %v10000_v51 = vpack.c.bf16 %v3528_v32, %v3526_v17  ;;  %v10002_v5 = vpack.c.bf16 %v3527_v15, %v3525_v3  ;;  %v10988_v3 = vld [vmem:[#allocation27_spill] sm:$0xff]  ;;  %v10989_v32 = vld [vmem:[#allocation81_spill] sm:$0xff] }
 0x3b8   : > { %4260 = vmatprep.mubr.bf16.mxu1 %v10000_v51  ;;  %5001 = vmatprep.mubr.bf16.mxu0 %v10000_v51 }
 0x3b9   : > { %4261 = vmatmul.mubr.bf16.gmra.mxu1 %v10002_v5  ;;  %5002 = vmatmul.mubr.bf16.gmra.mxu0 %v10002_v5 }
 0x3ba   : > { %v7058_v44 = vpop.f32.mrf.mxu1 }
 0x3bc   : > { %v7059_v60 = vpop.f32.mrf.mxu1 }
 0x3bd   : > { %v10010_v30 = vadd.f32 %v7059_v60, %v7058_v44  ;;  %v7881_v34 = vpop.permute.xlu0 %7880  ;;  %v10990_v44 = vld [vmem:[#allocation29_spill] sm:$0xff] }
 0x3be   : > { %v7883_v22 = vunpack.i.h.bf16 %v7881_v34  ;;  %v7882_v43 = vunpack.i.l.bf16 %v7881_v34  ;;  %v10014_v52 = vpop.f32.mrf.mxu1  ;;  %v10991_v34 = vld [vmem:[#allocation87_spill] sm:$0xff] }
 0x3c0   : > { %v7886_v37 = vpop.permute.xlu1 %7885  ;;  %v3339_v38 = vsel %vm3308_vm0, %v7882_v43, %v7883_v22  ;;  %v3467_v59 = vsel %vm3308_vm0, %v7883_v22, %v7882_v43  ;;  %v10024_v20 = vpop.f32.mrf.mxu1  ;;  %v10992_v22 = vld [vmem:[#allocation30_spill] sm:$0xff] }
 0x3c1   : > { %v7888_v53 = vunpack.i.h.bf16 %v7886_v37  ;;  %v7887_v39 = vunpack.i.l.bf16 %v7886_v37  ;;  %v3529_v6 = vmax.f32 %v9861_v54, %v3339_v38  ;;  %v3530_v7 = vmax.f32 %v9865_v55, %v3467_v59  ;;  %v10993_v59 = vld [vmem:[#allocation90_spill] sm:$0xff] }
 0x3c2   : > { %v6574_v55 = vcombine.low %v10985_v42, %v10985_v42 }
 0x3c3   : > { %v3340_v21 = vsel %vm3308_vm0, %v7887_v39, %v7888_v53  ;;  %v3468_v24 = vsel %vm3308_vm0, %v7888_v53, %v7887_v39  ;;  %v10994_v53 = vld [vmem:[#allocation31_spill] sm:$0xff] }
 0x3c4   : > { %v3531_v62 = vmax.f32 %v9872_v50, %v3340_v21  ;;  %v3532_v41 = vmax.f32 %v9878_v12, %v3468_v24  ;;  %v10995_v24 = vld [vmem:[#allocation93_spill] sm:$0xff] }
 0x3c6   : > { %v7029_v48 = vpack.c.bf16 %v3532_v41, %v3530_v7  ;;  %v7028_v49 = vpack.c.bf16 %v3531_v62, %v3529_v6 }
 0x3c8   : > { %4268 = vmatprep.mubr.bf16.mxu1 %v7029_v48  ;;  %5009 = vmatprep.mubr.bf16.mxu0 %v7029_v48 }
 0x3c9   : > { %4269 = vmatmul.mubr.bf16.gmra.mxu1 %v7028_v49  ;;  %5010 = vmatmul.mubr.bf16.gmra.mxu0 %v7028_v49 }
 0x3ca   : > { %v7064_v29 = vpop.f32.mrf.mxu1  ;;  %4415 = vmatprep.mubr.bf16.mxu1 %v6575_v18  ;;  %5017 = vmatprep.mubr.bf16.mxu0 %v6575_v18 }
 0x3cc   : > { %v7065_v54 = vpop.f32.mrf.mxu1 }
 0x3cd   : > { %v10026_v50 = vadd.f32 %v7065_v54, %v7064_v29 }
 0x3ce   : > { %v10031_v12 = vpop.f32.mrf.mxu1 }
 0x3d0   : > { %v10033_v58 = vpop.f32.mrf.mxu1 }
 0x3d1   : > { %4416 = vmatmul.mubr.bf16.vlgmr.msra.gmra.mxu1 %v6574_v55  ;;  %5018 = vmatmul.mubr.bf16.gmra.mxu0 %v6574_v55 }
 0x3d2   : > { %4423 = vmatprep.mubr.bf16.mxu1 %v9461_v26 }
 0x3d9   : > { %4424 = vmatmul.mubr.bf16.gmra.mxu1 %v9458_v46 }
 0x3da   : > { %v7070_v31 = vpop.f32.mrf.mxu1  ;;  %4431 = vmatprep.mubr.bf16.mxu1 %v10986_v63 }
 0x3dc   : > { %v7071_v23 = vpop.f32.mrf.mxu1 }
 0x3dd   : > { %v10037_v61 = vadd.f32 %v7071_v23, %v7070_v31 }
 0x3de   : > { %v10041_v15 = vpop.f32.mrf.mxu1 }
 0x3e0   : > { %v10043_v17 = vpop.f32.mrf.mxu1 }
 0x3e1   : > { %4432 = vmatmul.mubr.bf16.gmra.mxu1 %v10987_v36 }
 0x3e2   : > { %4439 = vmatprep.mubr.bf16.mxu1 %v10988_v3 }
 0x3e9   : > { %4440 = vmatmul.mubr.bf16.gmra.mxu1 %v10989_v32  ;;  %v10636_v32 = vmov 0.0  }
 0x3ea   : > { %v7076_v26 = vpop.f32.mrf.mxu1  ;;  %4447 = vmatprep.mubr.bf16.mxu1 %v10990_v44  ;;  %7456 = vmatprep.subr.bf16.mxu1 %v10636_v32 }
 0x3eb   : > { %7536 = vmatprep.subr.bf16.mxu0 %v10636_v32 }
 0x3ec   : > { %v7077_v60 = vpop.f32.mrf.mxu1 }
 0x3ed   : > { %v10047_v46 = vadd.f32 %v7077_v60, %v7076_v26  ;;  %v8114_v26 = vld [vmem:[#allocation9 + $0x78] sm:$0xff]  }
 0x3ee   : > { %v10051_v43 = vpop.f32.mrf.mxu1  ;;  %7457 = vmatpush3.bf16.msra.mxu1 %v8114_v26 }
 0x3ef   : > { %7458 = vmatprep.subr.bf16.mxu1 %v10636_v32 }
 0x3f0   : > { %v10053_v37 = vpop.f32.mrf.mxu1 }
 0x3f1   : > { %4448 = vmatmul.mubr.bf16.gmra.mxu1 %v10991_v34 }
 0x3f2   : > { %4455 = vmatprep.mubr.bf16.mxu1 %v10992_v22 }
 0x3f9   : > { %4456 = vmatmul.mubr.bf16.gmra.mxu1 %v10993_v59 }
 0x3fa   : > { %v7082_v38 = vpop.f32.mrf.mxu1  ;;  %4463 = vmatprep.mubr.bf16.mxu1 %v10994_v53  ;;  %v8115_v53 = vld [vmem:[#allocation9 + $0x70] sm:$0xff]  }
 0x3fb   : > { %7459 = vmatpush3.bf16.msra.mxu1 %v8115_v53 }
 0x3fc   : > { %v7083_v39 = vpop.f32.mrf.mxu1  ;;  %7460 = vmatprep.subr.bf16.mxu1 %v10636_v32 }
 0x3fd   : > { %v10057_v21 = vadd.f32 %v7083_v39, %v7082_v38 }
 0x3fe   : > { %v10061_v6 = vpop.f32.mrf.mxu1 }
 0x400   : > { %v10063_v62 = vpop.f32.mrf.mxu1 }
 0x401   : > { %4464 = vmatmul.mubr.bf16.gmra.mxu1 %v10995_v24 }
 0x402   : > { %4471 = vmatprep.mubr.bf16.mxu1 %v9822_v11 }
 0x409   : > { %4472 = vmatmul.mubr.bf16.gmra.mxu1 %v9824_v10 }
 0x40a   : > { %v7088_v7 = vpop.f32.mrf.mxu1  ;;  %4479 = vmatprep.mubr.bf16.mxu1 %v9870_v16 }
 0x40c   : > { %v7089_v41 = vpop.f32.mrf.mxu1 }
 0x40d   : > { %v10067_v48 = vadd.f32 %v7089_v41, %v7088_v7 }
 0x40e   : > { %v10071_v49 = vpop.f32.mrf.mxu1 }
 0x40f   : > { %10996 = vst [vmem:[#allocation32_spill] sm:$0xff] %v10067_v48  ;;  %10997 = vst [vmem:[#allocation96_spill] sm:$0xff] %v10071_v49 }
 0x410   : > { %v10073_v42 = vpop.f32.mrf.mxu1 }
 0x411   : > { %4480 = vmatmul.mubr.bf16.gmra.mxu1 %v9868_v40  ;;  %10998 = vst [vmem:[#allocation33_spill] sm:$0xff] %v10073_v42 }
 0x412   : > { %4487 = vmatprep.mubr.bf16.mxu1 %v9894_v56 }
 0x419   : > { %4488 = vmatmul.mubr.bf16.gmra.mxu1 %v9896_v4 }
 0x41a   : > { %v7094_v11 = vpop.f32.mrf.mxu1  ;;  %4495 = vmatprep.mubr.bf16.mxu1 %v9910_v2  ;;  %v10089_v2 = vpop.f32.mrf.mxu0 }
 0x41c   : > { %v7095_v18 = vpop.f32.mrf.mxu1  ;;  %v10092_v54 = vpop.f32.mrf.mxu0 }
 0x41d   : > { %v10077_v10 = vadd.f32 %v7095_v18, %v7094_v11 }
 0x41e   : > { %v10081_v16 = vpop.f32.mrf.mxu1 }
 0x41f   : > { %10999 = vst [vmem:[#allocation99_spill] sm:$0xff] %v10077_v10  ;;  %11000 = vst [vmem:[#allocation34_spill] sm:$0xff] %v10081_v16  ;;  %v11019_v16 = vmov 0.0  }
 0x420   : > { %v10083_v40 = vpop.f32.mrf.mxu1  ;;  %7552 = vmatprep.mubr.msk.bf16.mxu0 %vm8339_vm1, %v11019_v16 }
 0x421   : > { %4496 = vmatmul.mubr.bf16.gmra.mxu1 %v9912_v8  ;;  %11001 = vst [vmem:[#allocation102_spill] sm:$0xff] %v10083_v40 }
 0x422   : > { %4503 = vmatprep.mubr.bf16.mxu1 %v9926_v33  ;;  %v10097_v33 = vpop.f32.mrf.mxu0 }
 0x429   : > { %4504 = vmatmul.mubr.bf16.gmra.mxu1 %v9928_v9 }
 0x42a   : > { %v7100_v56 = vpop.f32.mrf.mxu1  ;;  %4511 = vmatprep.mubr.bf16.mxu1 %v9942_v25  ;;  %v10102_v25 = vpop.f32.mrf.mxu0 }
 0x42c   : > { %v7101_v29 = vpop.f32.mrf.mxu1 }
 0x42d   : > { %v10087_v4 = vadd.f32 %v7101_v29, %v7100_v56 }
 0x42e   : > { %v10094_v8 = vpop.f32.mrf.mxu1 }
 0x42f   : > { %11002 = vst [vmem:[#allocation36_spill] sm:$0xff] %v10087_v4  ;;  %11003 = vst [vmem:[#allocation108_spill] sm:$0xff] %v10094_v8 }
 0x430   : > { %v10099_v55 = vpop.f32.mrf.mxu1 }
 0x431   : > { %4512 = vmatmul.mubr.bf16.gmra.mxu1 %v9944_v13  ;;  %11004 = vst [vmem:[#allocation35_spill] sm:$0xff] %v10099_v55  ;;  %v10107_v13 = vpop.f32.mrf.mxu0 }
 0x432   : > { %4519 = vmatprep.mubr.bf16.mxu1 %v9958_v47 }
 0x433   : > { %v10111_v47 = vpop.f32.mrf.mxu0 }
 0x439   : > { %v7106_v9 = vpop.f32.mrf.mxu1  ;;  %4520 = vmatmul.mubr.bf16.gmra.mxu1 %v9960_v14  ;;  %v10118_v14 = vpop.f32.mrf.mxu0 }
 0x43a   : > { %4527 = vmatprep.mubr.bf16.mxu1 %v9978_v27 }
 0x43b   : > { %v7107_v31 = vpop.f32.mrf.mxu1  ;;  %v10120_v27 = vpop.f32.mrf.mxu0 }
 0x43c   : > { %v10105_v63 = vadd.f32 %v7107_v31, %v7106_v9 }
 0x43d   : > { %v7109_v23 = vpop.f32.mrf.mxu1  ;;  %v10123_v60 = vpop.f32.mrf.mxu0 }
 0x43e   : > { %11005 = vst [vmem:[#allocation105_spill] sm:$0xff] %v10105_v63 }
 0x43f   : > { %v7110_v36 = vpop.f32.mrf.mxu1  ;;  %v10127_v38 = vpop.f32.mrf.mxu0 }
 0x440   : > { %v10109_v3 = vadd.f32 %v7110_v36, %v7109_v23  ;;  %v8116_v23 = vld [vmem:[#allocation9 + $0x68] sm:$0xff]  }
 0x441   : > { %4528 = vmatmul.mubr.bf16.gmra.mxu1 %v9980_v57  ;;  %v10131_v39 = vpop.f32.mrf.mxu0 }
 0x442   : > { %11006 = vst [vmem:[#allocation37_spill] sm:$0xff] %v10109_v3  ;;  %4535 = vmatprep.mubr.bf16.mxu1 %v10000_v51  ;;  %7461 = vmatpush3.bf16.msra.mxu1 %v8116_v23 }
 0x443   : > { %v10134_v24 = vpop.f32.mrf.mxu0  ;;  %7462 = vmatprep.subr.bf16.mxu1 %v10636_v32 }
 0x449   : > { %v7112_v44 = vpop.f32.mrf.mxu1  ;;  %4536 = vmatmul.mubr.bf16.gmra.mxu1 %v10002_v5  ;;  %v10136_v5 = vpop.f32.mrf.mxu0 }
 0x44a   : > { %7472 = vmatprep.mubr.msk.bf16.mxu1 %vm8339_vm1, %v11019_v16 }
 0x44b   : > { %v7113_v57 = vpop.f32.mrf.mxu1  ;;  %v10140_v18 = vpop.f32.mrf.mxu0 }
 0x44c   : > { %v10125_v34 = vadd.f32 %v7113_v57, %v7112_v44 }
 0x44d   : > { %v7115_v22 = vpop.f32.mrf.mxu1  ;;  %v10144_v31 = vpop.f32.mrf.mxu0 }
 0x44e   : > { %11007 = vst [vmem:[#allocation111_spill] sm:$0xff] %v10125_v34 }
 0x44f   : > { %v7116_v51 = vpop.f32.mrf.mxu1  ;;  %v10147_v36 = vpop.f32.mrf.mxu0 }
 0x450   : > { %v10129_v59 = vadd.f32 %v7116_v51, %v7115_v22 }
 0x451   : > { %v10149_v26 = vpop.f32.mrf.mxu0 }
 0x452   : > { %11008 = vst [vmem:[#allocation38_spill] sm:$0xff] %v10129_v59 }
 0x453   : > { %v10151_v57 = vpop.f32.mrf.mxu0 }
 0x459   : > { %v7118_v7 = vpop.f32.mrf.mxu1 }
 0x45b   : > { %v7119_v41 = vpop.f32.mrf.mxu1 }
 0x45c   : > { %v10138_v11 = vadd.f32 %v7119_v41, %v7118_v7  ;;  %v10155_v7 = vpop.f32.mrf.mxu0 }
 0x45d   : > { %v7121_v56 = vpop.f32.mrf.mxu1 }
 0x45e   : > { %11009 = vst [vmem:[#allocation114_spill] sm:$0xff] %v10138_v11  ;;  %v10159_v23 = vpop.f32.mrf.mxu0 }
 0x45f   : > { %v7122_v29 = vpop.f32.mrf.mxu1 }
 0x460   : > { %v10142_v9 = vadd.f32 %v7122_v29, %v7121_v56  ;;  %v8117_v29 = vld [vmem:[#allocation9 + $0x60] sm:$0xff]  }
 0x461   : > { %7463 = vmatpush3.bf16.msra.mxu1 %v8117_v29 }
 0x462   : > { %11010 = vst [vmem:[#allocation39_spill] sm:$0xff] %v10142_v9  ;;  %7464 = vmatprep.subr.bf16.mxu1 %v10636_v32  ;;  %v10162_v9 = vpop.f32.mrf.mxu0 }
 0x464   : > { %v10164_v11 = vpop.f32.mrf.mxu0 }
 0x469   : > { %v7124_v44 = vpop.f32.mrf.mxu1 }
 0x46b   : > { %v7125_v22 = vpop.f32.mrf.mxu1 }
 0x46c   : > { %v10153_v51 = vadd.f32 %v7125_v22, %v7124_v44  ;;  %v10166_v44 = vpop.f32.mrf.mxu0 }
 0x46d   : > { %v7127_v53 = vpop.f32.mrf.mxu1 }
 0x46e   : > { %11011 = vst [vmem:[#allocation117_spill] sm:$0xff] %v10153_v51 }
 0x46f   : > { %v7128_v41 = vpop.f32.mrf.mxu1 }
 0x470   : > { %v10157_v56 = vadd.f32 %v7128_v41, %v7127_v53  ;;  %v10170_v53 = vpop.f32.mrf.mxu0 }
 0x472   : > { %11012 = vst [vmem:[#allocation40_spill] sm:$0xff] %v10157_v56  ;;  %v8118_v56 = vld [vmem:[#allocation9 + $0x58] sm:$0xff]   ;;  %v10174_v29 = vpop.f32.mrf.mxu0 }
 0x473   : > { %7465 = vmatpush3.bf16.msra.mxu1 %v8118_v56 }
 0x474   : > { %7466 = vmatprep.subr.bf16.mxu1 %v10636_v32  ;;  %v10177_v63 = vpop.f32.mrf.mxu0 }
 0x476   : > { %v10179_v8 = vpop.f32.mrf.mxu0 }
 0x479   : > { %v7130_v59 = vpop.f32.mrf.mxu1 }
 0x47b   : > { %v7131_v34 = vpop.f32.mrf.mxu1 }
 0x47c   : > { %v10168_v22 = vadd.f32 %v7131_v34, %v7130_v59 }
 0x47d   : > { %v7133_v51 = vpop.f32.mrf.mxu1 }
 0x47e   : > { %11013 = vst [vmem:[#allocation120_spill] sm:$0xff] %v10168_v22  ;;  %v10183_v22 = vpop.f32.mrf.mxu0 }
 0x47f   : > { %v7134_v3 = vpop.f32.mrf.mxu1  ;;  %11016 = vst [vmem:[#allocation43_spill] sm:$0xff] %v10183_v22  ;;  %v8120_v22 = vld [vmem:[#allocation9 + $0x48] sm:$0xff]  }
 0x480   : > { %v10172_v41 = vadd.f32 %v7134_v3, %v7133_v51  ;;  %v10185_v3 = vpop.f32.mrf.mxu0 }
 0x481   : > { %11017 = vst [vmem:[#allocation126_spill] sm:$0xff] %v10185_v3 }
 0x482   : > { %11014 = vst [vmem:[#allocation41_spill] sm:$0xff] %v10172_v41  ;;  %v8119_v41 = vld [vmem:[#allocation9 + $0x50] sm:$0xff]   ;;  %v10190_v10 = vpop.f32.mrf.mxu0 }
 0x483   : > { %7467 = vmatpush3.bf16.msra.mxu1 %v8119_v41  ;;  %v7051_v41 = vadd.f32 %v9982_v19, %v9973_v1  ;;  %v7278_v1 = vadd.f32 %v10111_v47, %v10107_v13 }
 0x484   : > { %7468 = vmatprep.subr.bf16.mxu1 %v11019_v16 }
 0x487   : > { %7469 = vmatpush3.bf16.msra.mxu1 %v8120_v22 }
 0x488   : > { %7470 = vmatprep.subr.bf16.mxu1 %v11019_v16 }
 0x489   : > { %v7136_v55 = vpop.f32.mrf.mxu1 }
 0x48b   : > { %v7137_v4 = vpop.f32.mrf.mxu1 }
 0x48c   : > { %v10181_v34 = vadd.f32 %v7137_v4, %v7136_v55 }
 0x48d   : > { %v7139_v59 = vpop.f32.mrf.mxu1 }
 0x48e   : > { %11015 = vst [vmem:[#allocation123_spill] sm:$0xff] %v10181_v34  ;;  %v10193_v34 = vpop.f32.mrf.mxu0 }
 0x48f   : > { %v7140_v40 = vpop.f32.mrf.mxu1 }
 0x490   : > { %v10187_v51 = vadd.f32 %v7140_v40, %v7139_v59  ;;  %v7272_v40 = vadd.f32 %v10092_v54, %v10089_v2  ;;  %v7275_v2 = vadd.f32 %v10102_v25, %v10097_v33  ;;  %v7281_v33 = vadd.f32 %v10120_v27, %v10118_v14 }
 0x491   : > { %v7158_v56 = vpop.f32.mrf.mxu1 }
 0x492   : > { %11018 = vst [vmem:[#allocation46_spill] sm:$0xff] %v10187_v51 }
 0x493   : > { %v7159_v32 = vpop.f32.mrf.mxu1 }
 0x494   : > { %v7160_v42 = vadd.f32 %v7159_v32, %v7158_v56  ;;  %v10200_v32 = vpop.f32.mrf.mxu0 }
 0x495   : > { %v7161_v49 = vpop.f32.mrf.mxu1  ;;  %11020 = vst [vmem:[#allocation132_spill] sm:$0xff] %v10200_v32 }
 0x496   : > { %v4418_v4 = vadd.f32 %v7160_v42, %v9966_v45  ;;  %v10205_v45 = vld [vmem:[%s10590_s4] ss:$0 sm:$0xff]  ;;  %v10211_v19 = vpop.f32.mrf.mxu0 }
 0x497   : > { %v7162_v55 = vpop.f32.mrf.mxu1  ;;  %11021 = vst [vmem:[#allocation44_spill] sm:$0xff] %v10211_v19 }
 0x498   : > { %v7163_v48 = vadd.f32 %v7162_v55, %v7161_v49  ;;  %v5026_v51 = vadd.f32 %v7272_v40, %v4418_v4  ;;  %v7057_v55 = vadd.f32 %v10004_v28, %v9992_v35  ;;  %v10219_v25 = vpop.f32.mrf.mxu0  ;;  %v8121_v28 = vld [vmem:[#allocation9 + $0x40] sm:$0xff]  }
 0x499   : > { %v7164_v59 = vpop.f32.mrf.mxu1  ;;  %7471 = vmatpush3.bf16.msra.mxu1 %v8121_v28 }
 0x49a   : > { %v4421_v49 = vadd.f32 %v7163_v48, %v7051_v41  ;;  %v5065_v22 = vadd.f32 %v10205_v45, %v5026_v51  ;;  %7476 = vmatprep.subr.bf16.mxu1 %v11019_v16 }
 0x49b   : > { %v7165_v3 = vpop.f32.mrf.mxu1 }
 0x49c   : > { %v7166_v42 = vadd.f32 %v7165_v3, %v7164_v59  ;;  %v5027_v40 = vadd.f32 %v7275_v2, %v4421_v49  ;;  %v5097_v41 = vmax.f32 %v5065_v22, 0.0  ;;  %v10223_v49 = vpop.f32.mrf.mxu0 }
 0x49d   : > { %v7167_v56 = vpop.f32.mrf.mxu1 }
 0x49e   : > { %v4426_v54 = vadd.f32 %v7166_v42, %v9988_v0  ;;  %v5066_v51 = vadd.f32 %v10205_v45, %v5027_v40  ;;  %v7063_v40 = vadd.f32 %v10024_v20, %v10014_v52  ;;  %v7290_v52 = vadd.f32 %v10140_v18, %v10136_v5 }
 0x49f   : > { %v7168_v4 = vpop.f32.mrf.mxu1 }
 0x4a0   : > { %v5028_v48 = vadd.f32 %v7278_v1, %v4426_v54  ;;  %v7169_v3 = vadd.f32 %v7168_v4, %v7167_v56  ;;  %v5098_v1 = vmax.f32 %v5066_v51, 0.0  ;;  %v7284_v4 = vadd.f32 %v10127_v38, %v10123_v60 }
 0x4a1   : > { %v7170_v59 = vpop.f32.mrf.mxu1  ;;  %v7287_v60 = vadd.f32 %v10134_v24, %v10131_v39  ;;  %v7293_v39 = vadd.f32 %v10147_v36, %v10144_v31 }
 0x4a2   : > { %v5067_v13 = vadd.f32 %v10205_v45, %v5028_v48  ;;  %v4429_v47 = vadd.f32 %v7169_v3, %v7057_v55  ;;  %v10234_v48 = vpop.f32.mrf.mxu0 }
 0x4a3   : > { %v7171_v0 = vpop.f32.mrf.mxu1 }
 0x4a4   : > { %v5099_v42 = vmax.f32 %v5067_v13, 0.0  ;;  %v5029_v19 = vadd.f32 %v7281_v33, %v4429_v47  ;;  %v7172_v32 = vadd.f32 %v7171_v0, %v7170_v59  ;;  %v7069_v0 = vadd.f32 %v10033_v58, %v10031_v12 }
 0x4a5   : > { %v7173_v35 = vpop.f32.mrf.mxu1 }
 0x4a6   : > { %v5068_v56 = vadd.f32 %v10205_v45, %v5029_v19  ;;  %v10226_v2 = vmax.f32 %v5097_v41, %v5099_v42  ;;  %v4434_v14 = vadd.f32 %v7172_v32, %v10010_v30  ;;  %v10238_v32 = vpop.f32.mrf.mxu0 }
 0x4a7   : > { %v7174_v27 = vpop.f32.mrf.mxu1 }
 0x4a8   : > { %v5100_v54 = vmax.f32 %v5068_v56, 0.0  ;;  %v7175_v22 = vadd.f32 %v7174_v27, %v7173_v35  ;;  %v5030_v3 = vadd.f32 %v7284_v4, %v4434_v14  ;;  %v10251_v51 = vpop.f32.mrf.mxu0 }
 0x4a9   : > { %v7176_v55 = vpop.f32.mrf.mxu1 }
 0x4aa   : > { %v10236_v19 = vmax.f32 %v5098_v1, %v5100_v54  ;;  %v4437_v59 = vadd.f32 %v7175_v22, %v7063_v40  ;;  %v5069_v38 = vadd.f32 %v10205_v45, %v5030_v3  ;;  %v10256_v14 = vpop.f32.mrf.mxu0  ;;  %v8122_v22 = vld [vmem:[#allocation9 + $0x138] sm:$0xff]  }
 0x4ab   : > { %v7177_v30 = vpop.f32.mrf.mxu1  ;;  %7537 = vmatpush3.bf16.msra.mxu0 %v8122_v22 }
 0x4ac   : > { %v7178_v33 = vadd.f32 %v7177_v30, %v7176_v55  ;;  %v7894_v13 = vpack.i.bf16 %v10236_v19, %v10226_v2  ;;  %v5031_v42 = vadd.f32 %v7287_v60, %v4437_v59  ;;  %v5101_v5 = vmax.f32 %v5069_v38, 0.0  ;;  %v10267_v40 = vpop.f32.mrf.mxu0  ;;  %7538 = vmatprep.subr.bf16.mxu0 %v11019_v16 }
 0x4ad   : > { %v7179_v47 = vpop.f32.mrf.mxu1 }
 0x4ae   : > { %v4442_v20 = vadd.f32 %v7178_v33, %v10026_v50  ;;  %7895 = vrot.lane.b32.xlu1 %v7894_v13, %s8337_s15  ;;  %v5070_v27 = vadd.f32 %v10205_v45, %v5031_v42  ;;  %v7296_v33 = vadd.f32 %v10151_v57, %v10149_v26  ;;  %v10274_v60 = vpop.f32.mrf.mxu0  ;;  %v7302_v26 = vadd.f32 %v10164_v11, %v10162_v9 }
 0x4af   : > { %v7180_v41 = vpop.f32.mrf.mxu1 }
 0x4b0   : > { %v5032_v35 = vadd.f32 %v7290_v52, %v4442_v20  ;;  %v7181_v28 = vadd.f32 %v7180_v41, %v7179_v47  ;;  %v5102_v3 = vmax.f32 %v5070_v27, 0.0  ;;  %v7075_v47 = vadd.f32 %v10043_v17, %v10041_v15  ;;  %v10284_v57 = vpop.f32.mrf.mxu0 }
 0x4b1   : > { %v7182_v56 = vpop.f32.mrf.mxu1 }
 0x4b2   : > { %v5071_v24 = vadd.f32 %v10205_v45, %v5032_v35  ;;  %v4445_v50 = vadd.f32 %v7181_v28, %v7069_v0  ;;  %v7299_v35 = vadd.f32 %v10159_v23, %v10155_v7  ;;  %v7305_v7 = vadd.f32 %v10170_v53, %v10166_v44  ;;  %v10293_v11 = vpop.f32.mrf.mxu0 }
 0x4b3   : > { %v7183_v18 = vpop.f32.mrf.mxu1 }
 0x4b4   : > { %v5103_v1 = vmax.f32 %v5071_v24, 0.0  ;;  %v5033_v12 = vadd.f32 %v7293_v39, %v4445_v50  ;;  %v7184_v58 = vadd.f32 %v7183_v18, %v7182_v56  ;;  %v7081_v56 = vadd.f32 %v10053_v37, %v10051_v43  ;;  %v8127_v37 = vld [vmem:[#allocation9 + $0x130] sm:$0xff]  }
 0x4b5   : > { %v7185_v54 = vpop.f32.mrf.mxu1  ;;  %7539 = vmatpush3.bf16.msra.mxu0 %v8127_v37 }
 0x4b6   : > { %v5072_v4 = vadd.f32 %v10205_v45, %v5033_v12  ;;  %v10260_v55 = vmax.f32 %v5101_v5, %v5103_v1  ;;  %v4450_v31 = vadd.f32 %v7184_v58, %v10037_v61  ;;  %7540 = vmatprep.subr.bf16.mxu0 %v11019_v16 }
 0x4b7   : > { %v7186_v36 = vpop.f32.mrf.mxu1 }
 0x4b8   : > { %v5104_v30 = vmax.f32 %v5072_v4, 0.0  ;;  %v7187_v59 = vadd.f32 %v7186_v36, %v7185_v54  ;;  %v5034_v61 = vadd.f32 %v7296_v33, %v4450_v31  ;;  %v10297_v54 = vpop.f32.mrf.mxu0 }
 0x4b9   : > { %v7188_v13 = vpop.f32.mrf.mxu1 }
 0x4ba   : > { %v10276_v52 = vmax.f32 %v5102_v3, %v5104_v30  ;;  %v4453_v38 = vadd.f32 %v7187_v59, %v7075_v47  ;;  %v5073_v17 = vadd.f32 %v10205_v45, %v5034_v61  ;;  %v10303_v31 = vpop.f32.mrf.mxu0  ;;  %v7308_v59 = vadd.f32 %v10177_v63, %v10174_v29  ;;  %v11023_v63 = vld [vmem:[#allocation126_spill] sm:$0xff] }
 0x4bb   : > { %v7189_v20 = vpop.f32.mrf.mxu1  ;;  %v7314_v29 = vadd.f32 %v10190_v10, %v11023_v63  ;;  %v11027_v10 = vld [vmem:[#allocation132_spill] sm:$0xff] }
 0x4bc   : > { %v7190_v41 = vadd.f32 %v7189_v20, %v7188_v13  ;;  %v7889_v0 = vpack.i.bf16 %v10276_v52, %v10260_v55  ;;  %v5035_v39 = vadd.f32 %v7299_v35, %v4453_v38  ;;  %v5105_v23 = vmax.f32 %v5073_v17, 0.0  ;;  %v10312_v20 = vpop.f32.mrf.mxu0  ;;  %v11022_v35 = vld [vmem:[#allocation43_spill] sm:$0xff] }
 0x4bd   : > { %v7191_v42 = vpop.f32.mrf.mxu1  ;;  %v7087_v13 = vadd.f32 %v10063_v62, %v10061_v6 }
 0x4be   : > { %v4458_v15 = vadd.f32 %v7190_v41, %v10047_v46  ;;  %7890 = vrot.lane.b32.xlu0 %v7889_v0, %s8337_s15  ;;  %v5074_v27 = vadd.f32 %v10205_v45, %v5035_v39  ;;  %v11026_v39 = vld [vmem:[#allocation33_spill] sm:$0xff] }
 0x4bf   : > { %v7192_v28 = vpop.f32.mrf.mxu1 }
 0x4c0   : > { %v5036_v24 = vadd.f32 %v7302_v26, %v4458_v15  ;;  %v7193_v50 = vadd.f32 %v7192_v28, %v7191_v42  ;;  %v5106_v36 = vmax.f32 %v5074_v27, 0.0  ;;  %v7311_v26 = vadd.f32 %v11022_v35, %v10179_v8  ;;  %v11024_v15 = vld [vmem:[#allocation32_spill] sm:$0xff]  ;;  %v8131_v28 = vld [vmem:[#allocation9 + $0x128] sm:$0xff]   ;;  %v11030_v35 = vld [vmem:[#allocation34_spill] sm:$0xff] }
 0x4c1   : > { %v7194_v5 = vpop.f32.mrf.mxu1  ;;  %7541 = vmatpush3.bf16.msra.mxu0 %v8131_v28 }
 0x4c2   : > { %v5075_v9 = vadd.f32 %v10205_v45, %v5036_v24  ;;  %v4461_v46 = vadd.f32 %v7193_v50, %v7081_v56  ;;  %v11025_v56 = vld [vmem:[#allocation96_spill] sm:$0xff]  ;;  %v10325_v50 = vpop.f32.mrf.mxu0  ;;  %7542 = vmatprep.subr.bf16.mxu0 %v11019_v16 }
 0x4c3   : > { %v7195_v18 = vpop.f32.mrf.mxu1  ;;  %v7093_v24 = vadd.f32 %v11026_v39, %v11025_v56 }
 0x4c4   : > { %v5107_v1 = vmax.f32 %v5075_v9, 0.0  ;;  %v5037_v12 = vadd.f32 %v7305_v7, %v4461_v46  ;;  %v7196_v58 = vadd.f32 %v7195_v18, %v7194_v5  ;;  %v7317_v46 = vadd.f32 %v11027_v10, %v10193_v34 }
 0x4c5   : > { %v7197_v43 = vpop.f32.mrf.mxu1 }
 0x4c6   : > { %v5076_v22 = vadd.f32 %v10205_v45, %v5037_v12  ;;  %v10300_v4 = vmax.f32 %v5105_v23, %v5107_v1  ;;  %v4466_v44 = vadd.f32 %v7196_v58, %v10057_v21  ;;  %v8133_v12 = vld [vmem:[#allocation9 + $0x120] sm:$0xff]   ;;  %v10331_v58 = vpop.f32.mrf.mxu0 }
 0x4c7   : > { %v7198_v53 = vpop.f32.mrf.mxu1  ;;  %7543 = vmatpush3.bf16.msra.mxu0 %v8133_v12 }
 0x4c8   : > { %v5108_v3 = vmax.f32 %v5076_v22, 0.0  ;;  %v7199_v30 = vadd.f32 %v7198_v53, %v7197_v43  ;;  %v5038_v61 = vadd.f32 %v7308_v59, %v4466_v44  ;;  %7544 = vmatprep.subr.bf16.mxu0 %v11019_v16 }
 0x4c9   : > { %v7200_v33 = vpop.f32.mrf.mxu1 }
 0x4ca   : > { %v10310_v47 = vmax.f32 %v5106_v36, %v5108_v3  ;;  %v4469_v38 = vadd.f32 %v7199_v30, %v7087_v13  ;;  %v5077_v62 = vadd.f32 %v10205_v45, %v5038_v61  ;;  %v10334_v36 = vpop.f32.mrf.mxu0  ;;  %v11028_v30 = vld [vmem:[#allocation99_spill] sm:$0xff]  ;;  %v8135_v13 = vld [vmem:[#allocation9 + $0x118] sm:$0xff]  }
 0x4cb   : > { %v7201_v21 = vpop.f32.mrf.mxu1  ;;  %7545 = vmatpush3.bf16.msra.mxu0 %v8135_v13 }
 0x4cc   : > { %v7202_v41 = vadd.f32 %v7201_v21, %v7200_v33  ;;  %v7899_v0 = vpack.i.bf16 %v10310_v47, %v10300_v4  ;;  %v5039_v5 = vadd.f32 %v7311_v26, %v4469_v38  ;;  %v5109_v27 = vmax.f32 %v5077_v62, 0.0  ;;  %v11031_v26 = vld [vmem:[#allocation102_spill] sm:$0xff]  ;;  %7546 = vmatprep.subr.bf16.mxu0 %v11019_v16 }
 0x4cd   : > { %v7203_v42 = vpop.f32.mrf.mxu1  ;;  %v7099_v63 = vadd.f32 %v11031_v26, %v11030_v35 }
 0x4ce   : > { %v4474_v6 = vadd.f32 %v7202_v41, %v11024_v15  ;;  %7900 = vrot.lane.b32.xlu0 %v7899_v0, %s8337_s15  ;;  %v5078_v43 = vadd.f32 %v10205_v45, %v5039_v5  ;;  %v11029_v41 = vld [vmem:[#allocation44_spill] sm:$0xff]  ;;  %v7326_v5 = vadd.f32 %v10251_v51, %v10238_v32  ;;  %v7329_v32 = vadd.f32 %v10267_v40, %v10256_v14 }
 0x4cf   : > { %v7204_v17 = vpop.f32.mrf.mxu1  ;;  %v7320_v0 = vadd.f32 %v10219_v25, %v11029_v41 }
 0x4d0   : > { %v5040_v7 = vadd.f32 %v7314_v29, %v4474_v6  ;;  %v7205_v9 = vadd.f32 %v7204_v17, %v7203_v42  ;;  %v5110_v61 = vmax.f32 %v5078_v43, 0.0  ;;  %v10345_v29 = vpop.f32.mrf.mxu0  ;;  %v8137_v17 = vld [vmem:[#allocation9 + $0x110] sm:$0xff]  }
 0x4d1   : > { %v7206_v8 = vpop.f32.mrf.mxu1  ;;  %7547 = vmatpush3.bf16.msra.mxu0 %v8137_v17 }
 0x4d2   : > { %v5079_v23 = vadd.f32 %v10205_v45, %v5040_v7  ;;  %v4477_v18 = vadd.f32 %v7205_v9, %v7093_v24  ;;  %v7323_v24 = vadd.f32 %v10234_v48, %v10223_v49  ;;  %v10356_v7 = vpop.f32.mrf.mxu0  ;;  %v11032_v9 = vld [vmem:[#allocation36_spill] sm:$0xff]  ;;  %7548 = vmatprep.subr.bf16.mxu0 %v11019_v16 }
 0x4d3   : > { %v7207_v1 = vpop.f32.mrf.mxu1 }
 0x4d4   : > { %v5111_v37 = vmax.f32 %v5079_v23, 0.0  ;;  %v5041_v22 = vadd.f32 %v7317_v46, %v4477_v18  ;;  %v7208_v44 = vadd.f32 %v7207_v1, %v7206_v8  ;;  %v8139_v23 = vld [vmem:[#allocation9 + $0x108] sm:$0xff]   ;;  %v11033_v18 = vld [vmem:[#allocation108_spill] sm:$0xff]  ;;  %v10366_v51 = vpop.f32.mrf.mxu0 }
 0x4d5   : > { %v7209_v53 = vpop.f32.mrf.mxu1  ;;  %7549 = vmatpush3.bf16.msra.mxu0 %v8139_v23 }
 0x4d6   : > { %v5080_v34 = vadd.f32 %v10205_v45, %v5041_v22  ;;  %v10337_v3 = vmax.f32 %v5109_v27, %v5111_v37  ;;  %v4482_v59 = vadd.f32 %v7208_v44, %v11028_v30  ;;  %v11034_v27 = vld [vmem:[#allocation35_spill] sm:$0xff]  ;;  %7550 = vmatprep.subr.bf16.mxu0 %v11019_v16  ;;  %v10370_v30 = vpop.f32.mrf.mxu0 }
 0x4d7   : > { %v7210_v33 = vpop.f32.mrf.mxu1  ;;  %v7105_v1 = vadd.f32 %v11034_v27, %v11033_v18 }
 0x4d8   : > { %v5112_v21 = vmax.f32 %v5080_v34, 0.0  ;;  %v7211_v38 = vadd.f32 %v7210_v33, %v7209_v53  ;;  %v5042_v6 = vadd.f32 %v7320_v0, %v4482_v59  ;;  %v8141_v34 = vld [vmem:[#allocation9 + $0x100] sm:$0xff]  }
 0x4d9   : > { %v7212_v42 = vpop.f32.mrf.mxu1  ;;  %7551 = vmatpush3.bf16.msra.mxu0 %v8141_v34 }
 0x4da   : > { %v10347_v15 = vmax.f32 %v5110_v61, %v5112_v21  ;;  %v4485_v28 = vadd.f32 %v7211_v38, %v7099_v63  ;;  %v5081_v10 = vadd.f32 %v10205_v45, %v5042_v6  ;;  %7576 = vmatprep.subr.bf16.mxu0 %v11019_v16  ;;  %v11035_v38 = vld [vmem:[#allocation105_spill] sm:$0xff]  ;;  %v7332_v6 = vadd.f32 %v10284_v57, %v10274_v60  ;;  %v11037_v60 = vld [vmem:[#allocation111_spill] sm:$0xff] }
 0x4db   : > { %v7213_v62 = vpop.f32.mrf.mxu1 }
 0x4dc   : > { %v7214_v56 = vadd.f32 %v7213_v62, %v7212_v42  ;;  %v7904_v39 = vpack.i.bf16 %v10347_v15, %v10337_v3  ;;  %v5043_v12 = vadd.f32 %v7323_v24, %v4485_v28  ;;  %v5113_v44 = vmax.f32 %v5081_v10, 0.0  ;;  %v7349_v42 = vpop.f32.mrf.mxu0 }
 0x4dd   : > { %v7215_v25 = vpop.f32.mrf.mxu1  ;;  %v7335_v10 = vadd.f32 %v10297_v54, %v10293_v11  ;;  %v11038_v54 = vld [vmem:[#allocation38_spill] sm:$0xff] }
 0x4de   : > { %v4490_v8 = vadd.f32 %v7214_v56, %v11032_v9  ;;  %7905 = vrot.lane.b32.xlu1 %v7904_v39, %s8337_s15  ;;  %v5082_v59 = vadd.f32 %v10205_v45, %v5043_v12  ;;  %v7351_v39 = vpop.f32.mrf.mxu0 }
 0x4df   : > { %v7216_v46 = vpop.f32.mrf.mxu1 }
 0x4e0   : > { %v5044_v49 = vadd.f32 %v7326_v5, %v4490_v8  ;;  %v7217_v48 = vadd.f32 %v7216_v46, %v7215_v25  ;;  %v5114_v35 = vmax.f32 %v5082_v59, 0.0  ;;  %v11036_v25 = vld [vmem:[#allocation37_spill] sm:$0xff]  ;;  %v7338_v46 = vadd.f32 %v10312_v20, %v10303_v31  ;;  %v7352_v27 = vpop.f32.mrf.mxu0 }
 0x4e1   : > { %v7218_v43 = vpop.f32.mrf.mxu1 }
 0x4e2   : > { %v5083_v37 = vadd.f32 %v10205_v45, %v5044_v49  ;;  %v4493_v22 = vadd.f32 %v7217_v48, %v7105_v1 }
 0x4e3   : > { %v7219_v53 = vpop.f32.mrf.mxu1 }
 0x4e4   : > { %v5115_v33 = vmax.f32 %v5083_v37, 0.0  ;;  %v5045_v13 = vadd.f32 %v7329_v32, %v4493_v22  ;;  %v7220_v61 = vadd.f32 %v7219_v53, %v7218_v43  ;;  %v7341_v43 = vadd.f32 %v10331_v58, %v10325_v50  ;;  %v7354_v32 = vpop.f32.mrf.mxu0 }
 0x4e5   : > { %v7221_v21 = vpop.f32.mrf.mxu1 }
 0x4e6   : > { %v5084_v14 = vadd.f32 %v10205_v45, %v5045_v13  ;;  %v10374_v40 = vmax.f32 %v5113_v44, %v5115_v33  ;;  %v4498_v41 = vadd.f32 %v7220_v61, %v11035_v38  ;;  %v7355_v33 = vpop.f32.mrf.mxu0 }
 0x4e7   : > { %v7222_v0 = vpop.f32.mrf.mxu1 }
 0x4e8   : > { %v5116_v26 = vmax.f32 %v5084_v14, 0.0  ;;  %v7223_v63 = vadd.f32 %v7222_v0, %v7221_v21  ;;  %v5046_v28 = vadd.f32 %v7332_v6, %v4498_v41  ;;  %v11039_v21 = vld [vmem:[#allocation114_spill] sm:$0xff]  ;;  %v7344_v0 = vadd.f32 %v10345_v29, %v10334_v36  ;;  %v11041_v36 = vld [vmem:[#allocation117_spill] sm:$0xff] }
 0x4e9   : > { %v7224_v62 = vpop.f32.mrf.mxu1 }
 0x4ea   : > { %v10380_v17 = vmax.f32 %v5114_v35, %v5116_v26  ;;  %v4501_v24 = vadd.f32 %v7223_v63, %v11036_v25  ;;  %v5085_v23 = vadd.f32 %v10205_v45, %v5046_v28  ;;  %v7357_v26 = vpop.f32.mrf.mxu0  ;;  %v11040_v28 = vld [vmem:[#allocation39_spill] sm:$0xff] }
 0x4eb   : > { %v7225_v56 = vpop.f32.mrf.mxu1 }
 0x4ec   : > { %v7226_v5 = vadd.f32 %v7225_v56, %v7224_v62  ;;  %v7909_v9 = vpack.i.bf16 %v10380_v17, %v10374_v40  ;;  %v5047_v1 = vadd.f32 %v7335_v10, %v4501_v24  ;;  %v5117_v20 = vmax.f32 %v5085_v23, 0.0  ;;  %v7358_v10 = vpop.f32.mrf.mxu0 }
 0x4ed   : > { %v7227_v8 = vpop.f32.mrf.mxu1 }
 0x4ee   : > { %v4506_v57 = vadd.f32 %v7226_v5, %v11037_v60  ;;  %7910 = vrot.lane.b32.xlu0 %v7909_v9, %s8337_s15  ;;  %v5086_v22 = vadd.f32 %v10205_v45, %v5047_v1  ;;  %v7347_v9 = vadd.f32 %v10366_v51, %v10356_v7  ;;  %v7360_v1 = vpop.f32.mrf.mxu0 }
 0x4ef   : > { %v7228_v18 = vpop.f32.mrf.mxu1 }
 0x4f0   : > { %v5048_v12 = vadd.f32 %v7338_v46, %v4506_v57  ;;  %v7229_v49 = vadd.f32 %v7228_v18, %v7227_v8  ;;  %v5118_v14 = vmax.f32 %v5086_v22, 0.0  ;;  %v7350_v8 = vadd.f32 %v7349_v42, %v10370_v30 }
 0x4f1   : > { %v7230_v48 = vpop.f32.mrf.mxu1 }
 0x4f2   : > { %v5087_v11 = vadd.f32 %v10205_v45, %v5048_v12  ;;  %v4509_v31 = vadd.f32 %v7229_v49, %v11038_v54  ;;  %v7353_v49 = vadd.f32 %v7352_v27, %v7351_v39  ;;  %v11043_v27 = vld [vmem:[#allocation120_spill] sm:$0xff] }
 0x4f3   : > { %v7231_v37 = vpop.f32.mrf.mxu1 }
 0x4f4   : > { %v5119_v44 = vmax.f32 %v5087_v11, 0.0  ;;  %v5049_v53 = vadd.f32 %v7341_v43, %v4509_v31  ;;  %v7232_v34 = vadd.f32 %v7231_v37, %v7230_v48  ;;  %v11042_v43 = vld [vmem:[#allocation40_spill] sm:$0xff] }
 0x4f5   : > { %v7233_v59 = vpop.f32.mrf.mxu1 }
 0x4f6   : > { %v5088_v13 = vadd.f32 %v10205_v45, %v5049_v53  ;;  %v10398_v61 = vmax.f32 %v5117_v20, %v5119_v44  ;;  %v4514_v50 = vadd.f32 %v7232_v34, %v11039_v21  ;;  %v7361_v20 = vpop.f32.mrf.mxu0 }
 0x4f7   : > { %v7234_v58 = vpop.f32.mrf.mxu1 }
 0x4f8   : > { %v5120_v38 = vmax.f32 %v5088_v13, 0.0  ;;  %v7235_v41 = vadd.f32 %v7234_v58, %v7233_v59  ;;  %v5050_v6 = vadd.f32 %v7344_v0, %v4514_v50  ;;  %v7363_v21 = vpop.f32.mrf.mxu0  ;;  %v7356_v58 = vadd.f32 %v7355_v33, %v7354_v32 }
 0x4f9   : > { %v7236_v35 = vpop.f32.mrf.mxu1 }
 0x4fa   : > { %v10403_v63 = vmax.f32 %v5118_v14, %v5120_v38  ;;  %v4517_v56 = vadd.f32 %v7235_v41, %v11040_v28  ;;  %v5089_v46 = vadd.f32 %v10205_v45, %v5050_v6  ;;  %v7362_v41 = vadd.f32 %v7361_v20, %v7360_v1  ;;  %v8123_v20 = vld [vmem:[#allocation9 + $0x38] sm:$0xff]  }
 0x4fb   : > { %v7237_v62 = vpop.f32.mrf.mxu1 }
 0x4fc   : > { %v7238_v25 = vadd.f32 %v7237_v62, %v7236_v35  ;;  %v7914_v24 = vpack.i.bf16 %v10403_v63, %v10398_v61  ;;  %v5051_v57 = vadd.f32 %v7347_v9, %v4517_v56  ;;  %v5121_v51 = vmax.f32 %v5089_v46, 0.0  ;;  %v11044_v35 = vld [vmem:[#allocation41_spill] sm:$0xff]  ;;  %v7364_v56 = vpop.f32.mrf.mxu0 }
 0x4fd   : > { %v7239_v5 = vpop.f32.mrf.mxu1  ;;  %v7365_v32 = vadd.f32 %v7364_v56, %v7363_v21 }
 0x4fe   : > { %v4522_v29 = vadd.f32 %v7238_v25, %v11041_v36  ;;  %7915 = vrot.lane.b32.xlu1 %v7914_v24, %s8337_s15  ;;  %v5090_v42 = vadd.f32 %v10205_v45, %v5051_v57  ;;  %v7359_v24 = vadd.f32 %v7358_v10, %v7357_v26  ;;  %v11046_v57 = vld [vmem:[#allocation46_spill] sm:$0xff] }
 0x4ff   : > { %v7240_v60 = vpop.f32.mrf.mxu1 }
 0x500   : > { %v5052_v23 = vadd.f32 %v7350_v8, %v4522_v29  ;;  %v7241_v18 = vadd.f32 %v7240_v60, %v7239_v5  ;;  %v5122_v34 = vmax.f32 %v5090_v42, 0.0  ;;  %v11045_v5 = vld [vmem:[#allocation123_spill] sm:$0xff] }
 0x501   : > { %v7242_v12 = vpop.f32.mrf.mxu1 }
 0x502   : > { %v5091_v48 = vadd.f32 %v10205_v45, %v5052_v23  ;;  %v4525_v7 = vadd.f32 %v7241_v18, %v11042_v43 }
 0x503   : > { %v7243_v30 = vpop.f32.mrf.mxu1 }
 0x504   : > { %v5123_v11 = vmax.f32 %v5091_v48, 0.0  ;;  %v5053_v54 = vadd.f32 %v7353_v49, %v4525_v7  ;;  %v7244_v31 = vadd.f32 %v7243_v30, %v7242_v12 }
 0x505   : > { %v7245_v37 = vpop.f32.mrf.mxu1 }
 0x506   : > { %v5092_v22 = vadd.f32 %v10205_v45, %v5053_v54  ;;  %v10418_v44 = vmax.f32 %v5121_v51, %v5123_v11  ;;  %v4530_v59 = vadd.f32 %v7244_v31, %v11043_v27 }
 0x507   : > { %v7246_v53 = vpop.f32.mrf.mxu1 }
 0x508   : > { %v5124_v39 = vmax.f32 %v5092_v22, 0.0  ;;  %v7247_v13 = vadd.f32 %v7246_v53, %v7245_v37  ;;  %v5054_v0 = vadd.f32 %v7356_v58, %v4530_v59  ;;  %v8124_v37 = vld [vmem:[#allocation9 + $0x30] sm:$0xff]   ;;  %v8125_v22 = vld [vmem:[#allocation9 + $0x28] sm:$0xff]   ;;  %v8126_v53 = vld [vmem:[#allocation9 + $0x20] sm:$0xff]  }
 0x509   : > { %v7248_v50 = vpop.f32.mrf.mxu1  ;;  %v8134_v58 = vld [vmem:[#allocation9 + $0xb8] sm:$0xff]  }
 0x50a   : > { %v10421_v14 = vmax.f32 %v5122_v34, %v5124_v39  ;;  %v4533_v6 = vadd.f32 %v7247_v13, %v11044_v35  ;;  %v5093_v33 = vadd.f32 %v10205_v45, %v5054_v0  ;;  %v8130_v39 = vld [vmem:[#allocation9 + $0x8] sm:$0xff]   ;;  %v8132_v13 = vld [vmem:[#allocation9] sm:$0xff]  }
 0x50b   : > { %v7249_v38 = vpop.f32.mrf.mxu1  ;;  %v8140_v35 = vld [vmem:[#allocation9 + $0xa0] sm:$0xff]  }
 0x50c   : > { %v7250_v62 = vadd.f32 %v7249_v38, %v7248_v50  ;;  %v7919_v28 = vpack.i.bf16 %v10421_v14, %v10418_v44  ;;  %v5055_v36 = vadd.f32 %v7359_v24, %v4533_v6  ;;  %v5125_v18 = vmax.f32 %v5093_v33, 0.0  ;;  %v8143_v24 = vld [vmem:[#allocation9 + $0x1b8] sm:$0xff]  }
 0x50d   : > { %v7251_v25 = vpop.f32.mrf.mxu1 }
 0x50e   : > { %v4538_v9 = vadd.f32 %v7250_v62, %v11045_v5  ;;  %7920 = vrot.lane.b32.xlu0 %v7919_v28, %s8337_s15  ;;  %v5094_v1 = vadd.f32 %v10205_v45, %v5055_v36  ;;  %v8148_v36 = vld [vmem:[#allocation9 + $0x80] sm:$0xff]  }
 0x50f   : > { %v7252_v8 = vpop.f32.mrf.mxu1 }
 0x510   : > { %v5056_v29 = vadd.f32 %v7362_v41, %v4538_v9  ;;  %v7253_v46 = vadd.f32 %v7252_v8, %v7251_v25  ;;  %v5126_v48 = vmax.f32 %v5094_v1, 0.0  ;;  %v8136_v41 = vld [vmem:[#allocation9 + $0xb0] sm:$0xff]   ;;  %v8142_v25 = vld [vmem:[#allocation9 + $0x98] sm:$0xff]  }
 0x511   : > { %v8144_v9 = vld [vmem:[#allocation9 + $0x90] sm:$0xff]  }
 0x512   : > { %v5095_v60 = vadd.f32 %v10205_v45, %v5056_v29  ;;  %v4541_v23 = vadd.f32 %v7253_v46, %v11046_v57  ;;  %v8145_v8 = vld [vmem:[#allocation9 + $0x1b0] sm:$0xff]   ;;  %v8149_v29 = vld [vmem:[#allocation9 + $0x1a0] sm:$0xff]   ;;  %v8150_v57 = vld [vmem:[#allocation9 + $0xf8] sm:$0xff]  }
 0x513   : > { %v8152_v1 = vld [vmem:[#allocation9 + $0xf0] sm:$0xff]  }
 0x514   : > { %v5127_v12 = vmax.f32 %v5095_v60, 0.0  ;;  %v5057_v26 = vadd.f32 %v7365_v32, %v4541_v23  ;;  %v8151_v23 = vld [vmem:[#allocation9 + $0x198] sm:$0xff]  }
 0x516   : > { %v5096_v10 = vadd.f32 %v10205_v45, %v5057_v26  ;;  %v10433_v49 = vmax.f32 %v5125_v18, %v5127_v12  ;;  %v8155_v12 = vld [vmem:[#allocation9 + $0x188] sm:$0xff]  }
 0x518   : > { %v5128_v43 = vmax.f32 %v5096_v10, 0.0  ;;  %v8156_v10 = vld [vmem:[#allocation9 + $0xe0] sm:$0xff]  }
 0x51a   : > { %v10435_v7 = vmax.f32 %v5126_v48, %v5128_v43  ;;  %v8157_v48 = vld [vmem:[#allocation9 + $0x180] sm:$0xff]  }
 0x51c   : > { %v7924_v51 = vpack.i.bf16 %v10435_v7, %v10433_v49 }
 0x51e   : > { %7925 = vrot.lane.b32.xlu1 %v7924_v51, %s8337_s15 }
 0x520   : > { %v7896_v34 = vpop.permute.xlu1 %7895 }
 0x521   : > { %v7898_v27 = vunpack.i.h.bf16 %v7896_v34  ;;  %v7897_v59 = vunpack.i.l.bf16 %v7896_v34  ;;  %v8163_v34 = vld [vmem:[#allocation9 + $0x170] sm:$0xff]  }
 0x523   : > { %v5210_v21 = vmax.f32 %v10236_v19, %v7898_v27  ;;  %v5209_v50 = vmax.f32 %v10226_v2, %v7897_v59  ;;  %v8138_v19 = vld [vmem:[#allocation9 + $0xa8] sm:$0xff]   ;;  %v8167_v27 = vld [vmem:[#allocation9 + $0x150] sm:$0xff]  }
 0x525   : > { %v5225_v38 = vpack.c.bf16 %v5210_v21, %v5209_v50 }
 0x530   : > { %v7891_v30 = vpop.permute.xlu0 %7890 }
 0x531   : > { %v7893_v42 = vunpack.i.h.bf16 %v7891_v30  ;;  %v7892_v11 = vunpack.i.l.bf16 %v7891_v30 }
 0x533   : > { %v5212_v54 = vmax.f32 %v10276_v52, %v7893_v42  ;;  %v5211_v31 = vmax.f32 %v10260_v55, %v7892_v11  ;;  %v8128_v55 = vld [vmem:[#allocation9 + $0x18] sm:$0xff]   ;;  %v8129_v52 = vld [vmem:[#allocation9 + $0x10] sm:$0xff]  }
 0x534   : > { %v8158_v11 = vld [vmem:[#allocation9 + $0xd8] sm:$0xff]  }
 0x535   : > { %v5226_v45 = vpack.c.bf16 %v5212_v54, %v5211_v31  ;;  %v8159_v31 = vld [vmem:[#allocation9 + $0xd0] sm:$0xff]  }
 0x537   : > { %7473 = vmatmul.mubr.bf16.vlgmr.msra.gmra.mxu1 %v5226_v45  ;;  %v8160_v45 = vld [vmem:[#allocation9 + $0xc8] sm:$0xff]  }
 0x538   : > { %7477 = vmatpush3.bf16.msra.mxu1 %v8123_v20  ;;  %7492 = vmatprep.mubr.msk.bf16.mxu1 %vm8339_vm1, %v11019_v16 }
 0x539   : > { %7478 = vmatprep.subr.bf16.mxu1 %v11019_v16 }
 0x53c   : > { %7479 = vmatpush3.bf16.msra.mxu1 %v8124_v37 }
 0x53d   : > { %7480 = vmatprep.subr.bf16.mxu1 %v11019_v16 }
 0x540   : > { %7481 = vmatpush3.bf16.msra.mxu1 %v8125_v22  ;;  %v7901_v0 = vpop.permute.xlu0 %7900 }
 0x541   : > { %7482 = vmatprep.subr.bf16.mxu1 %v11019_v16  ;;  %v7903_v32 = vunpack.i.h.bf16 %v7901_v0  ;;  %v7902_v33 = vunpack.i.l.bf16 %v7901_v0  ;;  %v8170_v0 = vld [vmem:[#allocation9 + $0x1f8] sm:$0xff]  }
 0x543   : > { %v5214_v46 = vmax.f32 %v10310_v47, %v7903_v32  ;;  %v5213_v60 = vmax.f32 %v10300_v4, %v7902_v33  ;;  %v8153_v47 = vld [vmem:[#allocation9 + $0x190] sm:$0xff]   ;;  %v8154_v4 = vld [vmem:[#allocation9 + $0xe8] sm:$0xff]  }
 0x544   : > { %7483 = vmatpush3.bf16.msra.mxu1 %v8126_v53 }
 0x545   : > { %7484 = vmatprep.subr.bf16.mxu1 %v11019_v16  ;;  %v5227_v18 = vpack.c.bf16 %v5214_v46, %v5213_v60  ;;  %v6113_v46 = vld [vmem:[%s10593_s7 + $0x50] sm:$0xff]  ;;  %v6112_v60 = vld [vmem:[%s10593_s7 + $0x48] sm:$0xff] }
 0x548   : > { %7485 = vmatpush3.bf16.msra.mxu1 %v8128_v55  ;;  %v8162_v55 = vld [vmem:[#allocation9 + $0x178] sm:$0xff]  }
 0x549   : > { %7486 = vmatprep.subr.bf16.mxu1 %v11019_v16 }
 0x54c   : > { %7487 = vmatpush3.bf16.msra.mxu1 %v8129_v52 }
 0x54d   : > { %7488 = vmatprep.subr.bf16.mxu1 %v11019_v16 }
 0x550   : > { %7489 = vmatpush3.bf16.msra.mxu1 %v8130_v39  ;;  %v7906_v20 = vpop.permute.xlu1 %7905  ;;  %v8164_v39 = vld [vmem:[#allocation9 + $0x168] sm:$0xff]  }
 0x551   : > { %7490 = vmatprep.subr.bf16.mxu1 %v11019_v16  ;;  %v7908_v37 = vunpack.i.h.bf16 %v7906_v20  ;;  %v7907_v22 = vunpack.i.l.bf16 %v7906_v20 }
 0x553   : > { %v5215_v53 = vmax.f32 %v10337_v3, %v7907_v22  ;;  %v8165_v3 = vld [vmem:[#allocation9 + $0x160] sm:$0xff]  }
 0x554   : > { %7491 = vmatpush3.bf16.msra.mxu1 %v8132_v13  ;;  %v8168_v13 = vld [vmem:[#allocation9 + $0x148] sm:$0xff]  }
 0x555   : > { %7496 = vmatprep.subr.bf16.mxu1 %v11019_v16 }
 0x557   : > { %7493 = vmatmul.mubr.bf16.vlgmr.msra.gmra.mxu1 %v5225_v38 }
 0x558   : > { %7497 = vmatpush3.bf16.msra.mxu1 %v8134_v58  ;;  %7512 = vmatprep.mubr.msk.bf16.mxu1 %vm8339_vm1, %v11019_v16  ;;  %v8169_v58 = vld [vmem:[#allocation9 + $0x140] sm:$0xff]  }
 0x559   : > { %7498 = vmatprep.subr.bf16.mxu1 %v11019_v16 }
 0x55c   : > { %7499 = vmatpush3.bf16.msra.mxu1 %v8136_v41 }
 0x55d   : > { %7500 = vmatprep.subr.bf16.mxu1 %v11019_v16 }
 0x560   : > { %7501 = vmatpush3.bf16.msra.mxu1 %v8138_v19  ;;  %v7911_v2 = vpop.permute.xlu0 %7910 }
 0x561   : > { %v7913_v6 = vunpack.i.h.bf16 %v7911_v2  ;;  %v7912_v62 = vunpack.i.l.bf16 %v7911_v2  ;;  %7502 = vmatprep.subr.bf16.mxu1 %v11019_v16  ;;  %v8171_v2 = vld [vmem:[#allocation9 + $0x1f0] sm:$0xff]  }
 0x563   : > { %v5218_v28 = vmax.f32 %v10380_v17, %v7913_v6  ;;  %v5217_v56 = vmax.f32 %v10374_v40, %v7912_v62  ;;  %v8146_v40 = vld [vmem:[#allocation9 + $0x88] sm:$0xff]   ;;  %v8175_v6 = vld [vmem:[#allocation9 + $0x1d0] sm:$0xff]  }
 0x564   : > { %7503 = vmatpush3.bf16.msra.mxu1 %v8140_v35  ;;  %v8147_v17 = vld [vmem:[#allocation9 + $0x1a8] sm:$0xff]  }
 0x565   : > { %v5229_v5 = vpack.c.bf16 %v5218_v28, %v5217_v56  ;;  %7504 = vmatprep.subr.bf16.mxu1 %v11019_v16  ;;  %v8172_v35 = vld [vmem:[#allocation9 + $0x1e8] sm:$0xff]  }
 0x566   : > { %v8176_v28 = vld [vmem:[#allocation9 + $0x1c8] sm:$0xff]  }
 0x567   : > { %7553 = vmatmul.mubr.bf16.vlgmr.msra.gmra.mxu0 %v5229_v5 }
 0x568   : > { %7505 = vmatpush3.bf16.msra.mxu1 %v8142_v25  ;;  %7577 = vmatpush3.bf16.msra.mxu0 %v8143_v24  ;;  %v8177_v24 = vld [vmem:[#allocation9 + $0x1c0] sm:$0xff]  }
 0x569   : > { %7506 = vmatprep.subr.bf16.mxu1 %v11019_v16  ;;  %7578 = vmatprep.subr.bf16.mxu0 %v11019_v16 }
 0x56a   : > { %7592 = vmatprep.mubr.msk.bf16.mxu0 %vm8339_vm1, %v11019_v16 }
 0x56c   : > { %7507 = vmatpush3.bf16.msra.mxu1 %v8144_v9  ;;  %7579 = vmatpush3.bf16.msra.mxu0 %v8145_v8 }
 0x56d   : > { %7508 = vmatprep.subr.bf16.mxu1 %v11019_v16  ;;  %7580 = vmatprep.subr.bf16.mxu0 %v11019_v16 }
 0x570   : > { %7509 = vmatpush3.bf16.msra.mxu1 %v8146_v40  ;;  %7581 = vmatpush3.bf16.msra.mxu0 %v8147_v17  ;;  %v7916_v59 = vpop.permute.xlu1 %7915 }
 0x571   : > { %7510 = vmatprep.subr.bf16.mxu1 %v11019_v16  ;;  %7582 = vmatprep.subr.bf16.mxu0 %v11019_v16  ;;  %v7918_v21 = vunpack.i.h.bf16 %v7916_v59  ;;  %v7917_v50 = vunpack.i.l.bf16 %v7916_v59 }
 0x573   : > { %v5220_v38 = vmax.f32 %v10403_v63, %v7918_v21  ;;  %v5219_v41 = vmax.f32 %v10398_v61, %v7917_v50  ;;  %v8173_v61 = vld [vmem:[#allocation9 + $0x1e0] sm:$0xff]   ;;  %v8174_v63 = vld [vmem:[#allocation9 + $0x1d8] sm:$0xff]  }
 0x574   : > { %7511 = vmatpush3.bf16.msra.mxu1 %v8148_v36  ;;  %7583 = vmatpush3.bf16.msra.mxu0 %v8149_v29  ;;  %v6118_v36 = vld [vmem:[%s10593_s7 + $0x78] sm:$0xff]  ;;  %v6117_v29 = vld [vmem:[%s10593_s7 + $0x70] sm:$0xff] }
 0x575   : > { %7516 = vmatprep.subr.bf16.mxu1 %v11019_v16  ;;  %7584 = vmatprep.subr.bf16.mxu0 %v11019_v16  ;;  %v5230_v19 = vpack.c.bf16 %v5220_v38, %v5219_v41 }
 0x577   : > { %7513 = vmatmul.mubr.bf16.vlgmr.msra.gmra.mxu1 %v5227_v18  ;;  %v6109_v18 = vld [vmem:[%s10593_s7 + $0x30] sm:$0xff] }
 0x578   : > { %7517 = vmatpush3.bf16.msra.mxu1 %v8150_v57  ;;  %7585 = vmatpush3.bf16.msra.mxu0 %v8151_v23  ;;  %v6111_v57 = vld [vmem:[%s10593_s7 + $0x40] sm:$0xff]  ;;  %v6110_v23 = vld [vmem:[%s10593_s7 + $0x38] sm:$0xff] }
 0x579   : > { %7518 = vmatprep.subr.bf16.mxu1 %v11019_v16  ;;  %7586 = vmatprep.subr.bf16.mxu0 %v11019_v16 }
 0x57a   : > { %7532 = vmatprep.mubr.msk.bf16.mxu1 %vm8339_vm1, %v11019_v16 }
 0x57c   : > { %7519 = vmatpush3.bf16.msra.mxu1 %v8152_v1  ;;  %7587 = vmatpush3.bf16.msra.mxu0 %v8153_v47  ;;  %v6108_v1 = vld [vmem:[%s10593_s7 + $0x28] sm:$0xff] }
 0x57d   : > { %7520 = vmatprep.subr.bf16.mxu1 %v11019_v16  ;;  %7588 = vmatprep.subr.bf16.mxu0 %v11019_v16 }
 0x580   : > { %7521 = vmatpush3.bf16.msra.mxu1 %v8154_v4  ;;  %v7921_v26 = vpop.permute.xlu0 %7920  ;;  %7589 = vmatpush3.bf16.msra.mxu0 %v8155_v12  ;;  %v6107_v4 = vld [vmem:[%s10593_s7 + $0x20] sm:$0xff] }
 0x581   : > { %v7923_v43 = vunpack.i.h.bf16 %v7921_v26  ;;  %v7922_v51 = vunpack.i.l.bf16 %v7921_v26  ;;  %7522 = vmatprep.subr.bf16.mxu1 %v11019_v16  ;;  %7590 = vmatprep.subr.bf16.mxu0 %v11019_v16 }
 0x583   : > { %v5222_v30 = vmax.f32 %v10421_v14, %v7923_v43  ;;  %v5221_v42 = vmax.f32 %v10418_v44, %v7922_v51  ;;  %v8161_v44 = vld [vmem:[#allocation9 + $0xc0] sm:$0xff]   ;;  %v5216_v14 = vmax.f32 %v10347_v15, %v7908_v37  ;;  %v8166_v15 = vld [vmem:[#allocation9 + $0x158] sm:$0xff]  }
 0x584   : > { %7523 = vmatpush3.bf16.msra.mxu1 %v8156_v10  ;;  %7591 = vmatpush3.bf16.msra.mxu0 %v8157_v48  ;;  %v6106_v10 = vld [vmem:[%s10593_s7 + $0x18] sm:$0xff]  ;;  %v6105_v43 = vld [vmem:[%s10593_s7 + $0x10] sm:$0xff] }
 0x585   : > { %v5231_v54 = vpack.c.bf16 %v5222_v30, %v5221_v42  ;;  %7524 = vmatprep.subr.bf16.mxu1 %v11019_v16  ;;  %v5228_v52 = vpack.c.bf16 %v5216_v14, %v5215_v53  ;;  %7616 = vmatprep.subr.mxu0 %v6118_v36  ;;  %v6104_v42 = vld [vmem:[%s10593_s7 + $0x8] sm:$0xff] }
 0x587   : > { %7593 = vmatmul.mubr.bf16.vlgmr.msra.gmra.mxu0 %v5231_v54 }
 0x588   : > { %7525 = vmatpush3.bf16.msra.mxu1 %v8158_v11  ;;  %7617 = vmatpush3.msra.mxu0 %v6118_v36  ;;  %v6103_v11 = vld [vmem:[%s10593_s7] sm:$0xff] }
 0x589   : > { %7526 = vmatprep.subr.bf16.mxu1 %v11019_v16  ;;  %7618 = vmatprep.subr.mxu0 %v6117_v29  ;;  %v6706_v36 = vld [vmem:[%s10594_s8] ss:$0 sm:$0xff] }
 0x58a   : > { %7619 = vmatpush3.msra.mxu0 %v6117_v29 }
 0x58c   : > { %7527 = vmatpush3.bf16.msra.mxu1 %v8159_v31 }
 0x58d   : > { %7528 = vmatprep.subr.bf16.mxu1 %v11019_v16 }
 0x590   : > { %7529 = vmatpush3.bf16.msra.mxu1 %v8160_v45  ;;  %v7926_v62 = vpop.permute.xlu1 %7925 }
 0x591   : > { %7530 = vmatprep.subr.bf16.mxu1 %v11019_v16  ;;  %v7928_v56 = vunpack.i.h.bf16 %v7926_v62  ;;  %v7927_v25 = vunpack.i.l.bf16 %v7926_v62 }
 0x593   : > { %v5224_v5 = vmax.f32 %v10435_v7, %v7928_v56  ;;  %v5223_v9 = vmax.f32 %v10433_v49, %v7927_v25  ;;  %v6115_v49 = vld [vmem:[%s10593_s7 + $0x60] sm:$0xff]  ;;  %v6114_v7 = vld [vmem:[%s10593_s7 + $0x58] sm:$0xff] }
 0x594   : > { %7531 = vmatpush3.bf16.msra.mxu1 %v8161_v44 }
 0x595   : > { %7556 = vmatprep.subr.bf16.mxu1 %v11019_v16  ;;  %v5232_v8 = vpack.c.bf16 %v5224_v5, %v5223_v9 }
 0x597   : > { %7533 = vmatmul.mubr.bf16.vlgmr.msra.gmra.mxu1 %v5228_v52 }
 0x598   : > { %7557 = vmatpush3.bf16.msra.mxu1 %v8162_v55  ;;  %7572 = vmatprep.mubr.msk.bf16.mxu1 %vm8339_vm1, %v11019_v16 }
 0x599   : > { %7558 = vmatprep.subr.bf16.mxu1 %v11019_v16 }
 0x59c   : > { %7559 = vmatpush3.bf16.msra.mxu1 %v8163_v34 }
 0x59d   : > { %7560 = vmatprep.subr.bf16.mxu1 %v11019_v16 }
 0x5a0   : > { %7561 = vmatpush3.bf16.msra.mxu1 %v8164_v39 }
 0x5a1   : > { %7562 = vmatprep.subr.bf16.mxu1 %v11019_v16 }
 0x5a4   : > { %7563 = vmatpush3.bf16.msra.mxu1 %v8165_v3 }
 0x5a5   : > { %7564 = vmatprep.subr.bf16.mxu1 %v11019_v16 }
 0x5a8   : > { %7565 = vmatpush3.bf16.msra.mxu1 %v8166_v15 }
 0x5a9   : > { %7566 = vmatprep.subr.bf16.mxu1 %v11019_v16 }
 0x5ac   : > { %7567 = vmatpush3.bf16.msra.mxu1 %v8167_v27 }
 0x5ad   : > { %7568 = vmatprep.subr.bf16.mxu1 %v11019_v16 }
 0x5b0   : > { %7569 = vmatpush3.bf16.msra.mxu1 %v8168_v13 }
 0x5b1   : > { %7570 = vmatprep.subr.bf16.mxu1 %v11019_v16 }
 0x5b4   : > { %7571 = vmatpush3.bf16.msra.mxu1 %v8169_v58 }
 0x5b5   : > { %7596 = vmatprep.subr.bf16.mxu1 %v11019_v16 }
 0x5b7   : > { %7573 = vmatmul.mubr.bf16.vlgmr.msra.gmra.mxu1 %v5230_v19 }
 0x5b8   : > { %7597 = vmatpush3.bf16.msra.mxu1 %v8170_v0  ;;  %7612 = vmatprep.mubr.msk.bf16.mxu1 %vm8339_vm1, %v11019_v16 }
 0x5b9   : > { %7598 = vmatprep.subr.bf16.mxu1 %v11019_v16 }
 0x5bc   : > { %7599 = vmatpush3.bf16.msra.mxu1 %v8171_v2 }
 0x5bd   : > { %7600 = vmatprep.subr.bf16.mxu1 %v11019_v16 }
 0x5c0   : > { %7601 = vmatpush3.bf16.msra.mxu1 %v8172_v35 }
 0x5c1   : > { %7602 = vmatprep.subr.bf16.mxu1 %v11019_v16 }
 0x5c4   : > { %7603 = vmatpush3.bf16.msra.mxu1 %v8173_v61 }
 0x5c5   : > { %7604 = vmatprep.subr.bf16.mxu1 %v11019_v16 }
 0x5c8   : > { %7605 = vmatpush3.bf16.msra.mxu1 %v8174_v63 }
 0x5c9   : > { %7606 = vmatprep.subr.bf16.mxu1 %v11019_v16 }
 0x5cc   : > { %7607 = vmatpush3.bf16.msra.mxu1 %v8175_v6 }
 0x5cd   : > { %7608 = vmatprep.subr.bf16.mxu1 %v11019_v16 }
 0x5d0   : > { %7609 = vmatpush3.bf16.msra.mxu1 %v8176_v28  ;;  %v6705_v28 = vld [vmem:[%s10592_s6] ss:$0 sm:$0xff] }
 0x5d1   : > { %7610 = vmatprep.subr.bf16.mxu1 %v11019_v16  ;;  %v6116_v16 = vld [vmem:[%s10593_s7 + $0x68] sm:$0xff] }
 0x5d2   : > { %7620 = vmatprep.subr.mxu0 %v6116_v16 }
 0x5d3   : > { %7621 = vmatpush3.msra.mxu0 %v6116_v16 }
 0x5d4   : > { %7611 = vmatpush3.bf16.msra.mxu1 %v8177_v24  ;;  %7622 = vmatprep.subr.mxu0 %v6115_v49 }
 0x5d5   : > { %7623 = vmatpush3.msra.mxu0 %v6115_v49 }
 0x5d6   : > { %7624 = vmatprep.subr.mxu0 %v6114_v7 }
 0x5d7   : > { %7613 = vmatmul.mubr.bf16.vlgmr.msra.gmra.mxu1 %v5232_v8  ;;  %7625 = vmatpush3.msra.mxu0 %v6114_v7 }
 0x5d8   : > { %7626 = vmatprep.subr.mxu0 %v6113_v46 }
 0x5d9   : > { %7627 = vmatpush3.msra.mxu0 %v6113_v46 }
 0x5da   : > { %7628 = vmatprep.subr.mxu0 %v6112_v60 }
 0x5db   : > { %7629 = vmatpush3.msra.mxu0 %v6112_v60 }
 0x5dc   : > { %7630 = vmatprep.subr.mxu0 %v6111_v57 }
 0x5dd   : > { %7631 = vmatpush3.msra.mxu0 %v6111_v57 }
 0x5de   : > { %7632 = vmatprep.subr.mxu0 %v6110_v23 }
 0x5df   : > { %7633 = vmatpush3.msra.mxu0 %v6110_v23 }
 0x5e0   : > { %7634 = vmatprep.subr.mxu0 %v6109_v18 }
 0x5e1   : > { %7635 = vmatpush3.msra.mxu0 %v6109_v18 }
 0x5e2   : > { %7636 = vmatprep.subr.mxu0 %v6108_v1 }
 0x5e3   : > { %7637 = vmatpush3.msra.mxu0 %v6108_v1 }
 0x5e4   : > { %7638 = vmatprep.subr.mxu0 %v6107_v4 }
 0x5e5   : > { %7639 = vmatpush3.msra.mxu0 %v6107_v4 }
 0x5e6   : > { %7640 = vmatprep.subr.mxu0 %v6106_v10 }
 0x5e7   : > { %7641 = vmatpush3.msra.mxu0 %v6106_v10 }
 0x5e8   : > { %7642 = vmatprep.subr.mxu0 %v6105_v43 }
 0x5e9   : > { %7643 = vmatpush3.msra.mxu0 %v6105_v43 }
 0x5ea   : > { %7644 = vmatprep.subr.mxu0 %v6104_v42 }
 0x5eb   : > { %7645 = vmatpush3.msra.mxu0 %v6104_v42 }
 0x5ec   : > { %7646 = vmatprep.subr.mxu0 %v6103_v11 }
 0x5ed   : > { %7647 = vmatpush3.msra.mxu0 %v6103_v11 }
 0x5f7   : > { %v5348_v40 = vpop.f32.mrf.mxu1 }
 0x5f9   : > { %v7474_v17 = vpop.f32.mrf.mxu1 }
 0x5fb   : > { %v5351_v32 = vpop.f32.mrf.mxu1 }
 0x5fd   : > { %v7475_v33 = vpop.f32.mrf.mxu1 }
 0x617   : > { %v5437_v47 = vpop.f32.mrf.mxu1 }
 0x618   : > { %v5438_v12 = vadd.f32 %v5437_v47, %v5348_v40 }
 0x619   : > { %v7494_v26 = vpop.f32.mrf.mxu1 }
 0x61b   : > { %v5440_v48 = vpop.f32.mrf.mxu1 }
 0x61c   : > { %v5441_v51 = vadd.f32 %v5440_v48, %v5351_v32 }
 0x61d   : > { %v7495_v30 = vpop.f32.mrf.mxu1 }
 0x627   : > { %v5759_v54 = vpop.f32.mrf.mxu0 }
 0x629   : > { %v7554_v31 = vpop.f32.mrf.mxu0 }
 0x62b   : > { %v5762_v20 = vpop.f32.mrf.mxu0 }
 0x62d   : > { %v7555_v45 = vpop.f32.mrf.mxu0 }
 0x637   : > { %v5543_v37 = vpop.f32.mrf.mxu1 }
 0x638   : > { %v5550_v22 = vadd.f32 %v5543_v37, %v5438_v12 }
 0x639   : > { %v7514_v44 = vpop.f32.mrf.mxu1 }
 0x63b   : > { %v5546_v14 = vpop.f32.mrf.mxu1 }
 0x63c   : > { %v5551_v53 = vadd.f32 %v5546_v14, %v5441_v51 }
 0x63d   : > { %v7515_v55 = vpop.f32.mrf.mxu1 }
 0x647   : > { %v5975_v52 = vpop.f32.mrf.mxu0 }
 0x649   : > { %v7594_v34 = vpop.f32.mrf.mxu0 }
 0x64b   : > { %v5978_v39 = vpop.f32.mrf.mxu0 }
 0x64d   : > { %v7595_v3 = vpop.f32.mrf.mxu0 }
 0x657   : > { %v5651_v15 = vpop.f32.mrf.mxu1 }
 0x658   : > { %v5658_v27 = vadd.f32 %v5651_v15, %v5550_v22 }
 0x659   : > { %v7534_v59 = vpop.f32.mrf.mxu1 }
 0x65a   : > { %v5766_v13 = vadd.f32 %v5759_v54, %v5658_v27 }
 0x65b   : > { %v5654_v21 = vpop.f32.mrf.mxu1 }
 0x65c   : > { %v5659_v50 = vadd.f32 %v5654_v21, %v5551_v53 }
 0x65d   : > { %v7535_v58 = vpop.f32.mrf.mxu1 }
 0x65e   : > { %v5767_v38 = vadd.f32 %v5762_v20, %v5659_v50 }
 0x677   : > { %v5867_v41 = vpop.f32.mrf.mxu1 }
 0x678   : > { %v5874_v0 = vadd.f32 %v5867_v41, %v5766_v13 }
 0x679   : > { %v7574_v19 = vpop.f32.mrf.mxu1 }
 0x67a   : > { %v5982_v2 = vadd.f32 %v5975_v52, %v5874_v0 }
 0x67b   : > { %v5870_v35 = vpop.f32.mrf.mxu1 }
 0x67c   : > { %v5875_v61 = vadd.f32 %v5870_v35, %v5767_v38 }
 0x67d   : > { %v7575_v63 = vpop.f32.mrf.mxu1 }
 0x67e   : > { %v5983_v6 = vadd.f32 %v5978_v39, %v5875_v61 }
 0x697   : > { %v6083_v62 = vpop.f32.mrf.mxu1 }
 0x698   : > { %v6090_v56 = vadd.f32 %v6083_v62, %v5982_v2 }
 0x699   : > { %v7614_v25 = vpop.f32.mrf.mxu1 }
 0x69a   : > { %v6099_v24 = vadd.f32 %v6705_v28, %v6090_v56 }
 0x69b   : > { %v6086_v5 = vpop.f32.mrf.mxu1 }
 0x69c   : > { %v6101_v9 = vmax.f32 %v6099_v24, 0.0  ;;  %v6091_v8 = vadd.f32 %v6086_v5, %v5983_v6 }
 0x69d   : > { %v7615_v40 = vpop.f32.mrf.mxu1 }
 0x69e   : > { %v6100_v17 = vadd.f32 %v6705_v28, %v6091_v8  ;;  %7648 = vmatprep.mubr.f32.mxu0 %v6101_v9 }
 0x6a0   : > { %v6102_v32 = vmax.f32 %v6100_v17, 0.0 }
 0x6a2   : > { %7649 = vmatmul.mubr.f32.vlgmr.msra.gmra.mxu0 %v6102_v32 }
 0x762   : > { %v7650_v33 = vpop.f32.mrf.mxu0 }
 0x763   : > { %v6198_v49 = vadd.f32 %v7650_v33, %v6706_v36 }
 0x764   : > { %v6192_v29 = vpop.f32.mrf.mxu0 }
 0x765   : > { %v6193_v16 = vadd.f32 %v6706_v36, %v6192_v29  ;;  %6203 = vst.msk [vmem:[%s396_s18 + $0x8] sm:$0xff] %vm6201_vm2, %v6198_v49 }
 0x767   : > { %6202 = vst.msk [vmem:[%s396_s18] sm:$0xff] %vm6201_vm2, %v6193_v16 }
 0x768 PF: > { %p21_p7 = scmp.ge.s32.totalorder %s8458_s22, 4   ;;  %s11048_s30 = smov %s8318_s10 }
 0x769   : > { %s11049_s10 = smov %s8322_s11  ;;  %s11050_s11 = smov %s8476_s19 }
 0x76a   : > { %s11051_s12 = smov %s8458_s22  ;;  %23 = sbr.rel (!%p21_p7) target bundleno = 5 (0x5), region = 119 }
 0x76f   :  { %6226 = vsyncpa [#allocation5], 1 }
 0x770   :  { %6228 = vsyncpa [#allocation5 + $0x1], 1 }
 0x771   :  { %6229 = vsyncpa [#allocation7], 1 }
 0x772   :  { %6230 = vsyncpa [#allocation10], 1 }

</bundles_post_ra>
